<compile_context>
chip_gen: v7x
topology: tpu7x:2x2x1
jax: 0.10.0
libtpu: 0.0.40
codegen_flags: <defaults>
</compile_context>

<pallas_src>
import functools

import numpy as np
import jax
import jax.numpy as jnp
from jax import lax
from jax.experimental import pallas as pl
from jax.experimental.pallas import tpu as pltpu

VMEM = pltpu.MemorySpace.VMEM
_LN_EPS = 1e-5


def _build_avg_operator(batch, seq_len, kernel_size):
    """Host-side (B*L, B*L) block-diagonal operator implementing the
    edge-replicated moving average (replicate-pad + AvgPool1d(stride=1), i.e.
    Autoformer's moving_avg) along the sequence axis for every batch element
    with ONE 2-D matmul.  out[t] = (1/k) * sum_j x[clip(t + j - (k-1)//2)]
    which matches torch's front/end replication for both odd and even k."""
    L, k = seq_len, kernel_size
    f = (k - 1) // 2
    avg = np.zeros((L, L), np.float32)
    for t in range(L):
        for j in range(k):
            s = min(max(t + j - f, 0), L - 1)
            avg[t, s] += 1.0 / k
    return jnp.asarray(np.kron(np.eye(batch, dtype=np.float32), avg))


def _decoder_kernel(
    # ---- inputs ----
    x_ref, cross_ref, avg_ref,
    wih0_ref, whh0_ref, bih0_ref, bhh0_ref,      # lstm  (GRU stack 0)
    wih1_ref, whh1_ref, bih1_ref, bhh1_ref,      # lstm1 (GRU stack 1)
    wih2_ref, whh2_ref, bih2_ref, bhh2_ref,      # lstm2 (GRU stack 2)
    w3_ref, b3_ref, w4_ref, b4_ref,              # conv3 -> relu -> conv4
    w1_ref, b1_ref, w2_ref, b2_ref,              # conv1 -> relu -> conv2
    n1g_ref, n1b_ref, n3g_ref, n3b_ref,          # norm1 / norm3 params
    projw_ref,                                   # (3, D, c_out) circular-conv taps
    # ---- outputs ----
    out_ref, trend_ref, hidden_ref,
    *, num_layers):
    B, L, D = x_ref.shape
    G = 3 * D
    c_out = trend_ref.shape[-1]
    scale = 1.0 / float(D) ** 0.5

    avg_op = avg_ref[...]                         # (B*L, B*L) block-diag average

    # --------------------------------- helpers --------------------------------
    def softmax_last(v):
        # exp + approximate reciprocal (EUP slot) instead of a VPU divide.
        m = jnp.max(v, axis=-1, keepdims=True)
        e = jnp.exp(v - m)
        s = jnp.sum(e, axis=-1, keepdims=True)
        return e * pl.reciprocal(s, approx=True)

    def gru_layer(inp_btd, wih, whh, bih, bhh):
        """One torch-style GRU layer; gates (r|z|n) fused on the lane dim."""
        x2 = inp_btd.reshape(B * L, D)
        # Hoisted input projection: ONE matmul over all timesteps and gates.
        gx = (jnp.dot(x2, wih, preferred_element_type=jnp.float32)
              + bih).reshape(B, L, G)
        bhh_b = jnp.broadcast_to(bhh, (B, G))     # hoisted broadcast
        h = jnp.zeros((B, D), jnp.float32)
        hs = []
        # Static unroll: serial recurrence fully visible to the scheduler;
        # per-step results stay in vregs (no scratch stores / reloads).
        for t in range(L):
            gh = jnp.dot(h, whh, preferred_element_type=jnp.float32) + bhh_b
            g = gx[:, t, :]                       # (B, 3D)
            rz = jax.nn.sigmoid(g[:, :2 * D] + gh[:, :2 * D])   # fused r,z
            r = rz[:, :D]
            z = rz[:, D:]
            n = jnp.tanh(g[:, 2 * D:] + r * gh[:, 2 * D:])
            h = (1.0 - z) * n + z * h
            hs.append(h)
        y = jnp.stack(hs, axis=1)                 # (B, L, D), one concat
        return y, h

    def gru_stack(inp_btd, wih_r, whh_r, bih_r, bhh_r, write_hidden):
        cur = inp_btd
        for layer in range(num_layers):
            cur, h_last = gru_layer(cur, wih_r[layer], whh_r[layer],
                                    bih_r[layer], bhh_r[layer])
            if write_hidden:
                hidden_ref[layer] = h_last
        return cur

    def attn(q, k, v):
        # Parameter-free scaled-dot-product attention; masks are None here.
        s = jnp.einsum('bqd,bkd->bqk', q, k,
                       preferred_element_type=jnp.float32) * scale
        p = softmax_last(s)
        return jnp.einsum('bqk,bkd->bqd', p, v,
                          preferred_element_type=jnp.float32)

    def layernorm(v, g, b):
        mu = jnp.mean(v, axis=-1, keepdims=True)
        var = jnp.mean(jnp.square(v - mu), axis=-1, keepdims=True)
        return (v - mu) * lax.rsqrt(var + _LN_EPS) * g + b

    def ffn(v, w_a, b_a, w_b, b_b):
        v2 = v.reshape(B * L, D)
        hdd = jnp.maximum(
            jnp.dot(v2, w_a, preferred_element_type=jnp.float32) + b_a, 0.0)
        o = jnp.dot(hdd, w_b, preferred_element_type=jnp.float32) + b_b
        return o.reshape(B, L, D)

    def decomp(v):
        # Edge-replicated moving average: ONE 2-D matmul covers the whole
        # batch (block-diagonal operator); no (B,L,L) broadcast.
        v2 = v.reshape(B * L, D)
        mean2 = jnp.dot(avg_op, v2, preferred_element_type=jnp.float32)
        return (v2 - mean2).reshape(B, L, D), mean2.reshape(B, L, D)

    # ------------------------------ forward chain ------------------------------
    x = x_ref[...]
    cross = cross_ref[...]

    # y1 = GRU(x); y1 = softmax(y1, -1) * x + x            (dropout == identity)
    y1 = gru_stack(x, wih0_ref, whh0_ref, bih0_ref, bhh0_ref, True)
    y1 = softmax_last(y1) * x + x

    # x = self_attention(x, x, x) + y1 ; norm1
    x = attn(x, x, x) + y1
    x = layernorm(x, n1g_ref[...], n1b_ref[...])

    # new_y = conv4(relu(conv3(x)))
    new_y = ffn(x, w3_ref[...], b3_ref[...], w4_ref[...], b4_ref[...])

    # decomp1
    x, trend1 = decomp(x)

    # y1 = GRU1(x); new_x = x + x*softmax(y1) + cross_attention(x, cross, cross)
    y1b = gru_stack(x, wih1_ref, whh1_ref, bih1_ref, bhh1_ref, False)
    new_x = x + x * softmax_last(y1b) + attn(x, cross, cross)

    # decomp2
    x, trend2 = decomp(new_x)

    # y = conv2(relu(conv1(x)))
    y = ffn(x, w1_ref[...], b1_ref[...], w2_ref[...], b2_ref[...])

    # decomp3
    x, trend3 = decomp(x + y)

    x = (x + new_y) * 0.5

    # residual trend: GRU2 then circular Conv1d(kernel=3, bias=False)
    rt = gru_stack(trend1 + trend2 + trend3,
                   wih2_ref, whh2_ref, bih2_ref, bhh2_ref, False)
    # Circular shifts on the XLU (free slot) instead of permutation matmuls.
    rt_prev = pltpu.roll(rt, shift=1, axis=1)       # rt[:, (t-1) % L, :]
    rt_next = pltpu.roll(rt, shift=L - 1, axis=1)   # rt[:, (t+1) % L, :]
    pw = projw_ref[...]
    acc = (jnp.dot(rt_prev.reshape(B * L, D), pw[0], preferred_element_type=jnp.float32)
           + jnp.dot(rt.reshape(B * L, D), pw[1], preferred_element_type=jnp.float32)
           + jnp.dot(rt_next.reshape(B * L, D), pw[2], preferred_element_type=jnp.float32))
    trend_ref[...] = acc.reshape(B, L, c_out)

    # TODO(synk): norm3 is referenced in the torch forward but never defined in
    #             __init__; synthesized here as LayerNorm(d_model).
    out_ref[...] = layernorm(x, n3g_ref[...], n3b_ref[...])


# --------------------------------- wrapper -----------------------------------
def decoder_layer_forward(params, x, cross, step_len):
    B, L, D = x.shape
    num_layers = params['lstm'][0].shape[0]
    c_out = params['proj_w'].shape[-1]
    avg_op = _build_avg_operator(B, L, step_len)

    inputs = (x.astype(jnp.float32), cross.astype(jnp.float32), avg_op,
              *params['lstm'], *params['lstm1'], *params['lstm2'],
              *params['conv34'], *params['conv12'],
              params['norm1_g'], params['norm1_b'],
              params['norm3_g'], params['norm3_b'],
              params['proj_w'])

    out, trend, hidden = pl.pallas_call(
        functools.partial(_decoder_kernel, num_layers=num_layers),
        out_shape=(jax.ShapeDtypeStruct((B, L, D), jnp.float32),
                   jax.ShapeDtypeStruct((B, L, c_out), jnp.float32),
                   jax.ShapeDtypeStruct((num_layers, B, D), jnp.float32)),
        in_specs=[pl.BlockSpec(memory_space=VMEM)] * len(inputs),
        out_specs=(pl.BlockSpec(memory_space=VMEM),
                   pl.BlockSpec(memory_space=VMEM),
                   pl.BlockSpec(memory_space=VMEM)),
    )(*inputs)
    return out, trend, hidden


# ------------------------------ parameter init --------------------------------
def init_params(key, d_model, d_ff, c_out, dec_lstm):
    keys = iter(jax.random.split(key, 64))

    def nrm(shape, s=0.1):
        return jax.random.normal(next(keys), shape, jnp.float32) * s

    def gru_params():
        # Fused per-layer layout (torch gate order r|z|n concatenated along the
        # output/lane dim):
        #   wih[l] == torch weight_ih_l{l}.T      -> (D, 3D)
        #   whh[l] == torch weight_hh_l{l}.T      -> (D, 3D)
        #   bih[l] == torch bias_ih_l{l}[None, :] -> (1, 3D)
        #   bhh[l] == torch bias_hh_l{l}[None, :] -> (1, 3D)
        return (nrm((dec_lstm, d_model, 3 * d_model)),
                nrm((dec_lstm, d_model, 3 * d_model)),
                nrm((dec_lstm, 1, 3 * d_model)),
                nrm((dec_lstm, 1, 3 * d_model)))

    return dict(
        lstm=gru_params(), lstm1=gru_params(), lstm2=gru_params(),
        # conv3/conv4 and conv1/conv2 pairs (kernel_size=1 -> feature matmuls)
        conv34=(nrm((d_model, d_ff)), nrm((1, d_ff)),
                nrm((d_ff, d_model)), nrm((1, d_model))),
        conv12=(nrm((d_model, d_ff)), nrm((1, d_ff)),
                nrm((d_ff, d_model)), nrm((1, d_model))),
        norm1_g=jnp.ones((1, d_model), jnp.float32),
        norm1_b=jnp.zeros((1, d_model), jnp.float32),
        norm3_g=jnp.ones((1, d_model), jnp.float32),
        norm3_b=jnp.zeros((1, d_model), jnp.float32),
        # taps of circular Conv1d(k=3): proj_w[j] == torch_w[:, :, j].T
        proj_w=nrm((3, d_model, c_out)),
    )


if __name__ == "__main__":
    B, L, d_model, d_ff, c_out = 2, 8, 32, 64, 8
    step_len, dec_lstm = 5, 1

    kx, kc = jax.random.split(jax.random.PRNGKey(0))
    x = jax.random.normal(kx, (B, L, d_model), jnp.float32)
    cross = jax.random.normal(kc, (B, L, d_model), jnp.float32)

    params = init_params(jax.random.PRNGKey(42), d_model, d_ff, c_out, dec_lstm)

    out, residual_trend, hidden = decoder_layer_forward(params, x, cross, step_len)
    jax.block_until_ready((out, residual_trend, hidden))

    assert out.shape == (B, L, d_model)
    assert residual_trend.shape == (B, L, c_out)
    assert hidden.shape == (dec_lstm, B, d_model)
    print("KERNEL_OK")
</pallas_src>

<mosaic_0001>
module attributes {stable_mosaic.version = 11 : i64} {
  func.func @_decoder_kernel(%arg0: memref<2x8x32xf32, #tpu.memory_space<vmem>>, %arg1: memref<2x8x32xf32, #tpu.memory_space<vmem>>, %arg2: memref<16x16xf32, #tpu.memory_space<vmem>>, %arg3: memref<1x32x96xf32, #tpu.memory_space<vmem>>, %arg4: memref<1x32x96xf32, #tpu.memory_space<vmem>>, %arg5: memref<1x1x96xf32, #tpu.memory_space<vmem>>, %arg6: memref<1x1x96xf32, #tpu.memory_space<vmem>>, %arg7: memref<1x32x96xf32, #tpu.memory_space<vmem>>, %arg8: memref<1x32x96xf32, #tpu.memory_space<vmem>>, %arg9: memref<1x1x96xf32, #tpu.memory_space<vmem>>, %arg10: memref<1x1x96xf32, #tpu.memory_space<vmem>>, %arg11: memref<1x32x96xf32, #tpu.memory_space<vmem>>, %arg12: memref<1x32x96xf32, #tpu.memory_space<vmem>>, %arg13: memref<1x1x96xf32, #tpu.memory_space<vmem>>, %arg14: memref<1x1x96xf32, #tpu.memory_space<vmem>>, %arg15: memref<32x64xf32, #tpu.memory_space<vmem>>, %arg16: memref<1x64xf32, #tpu.memory_space<vmem>>, %arg17: memref<64x32xf32, #tpu.memory_space<vmem>>, %arg18: memref<1x32xf32, #tpu.memory_space<vmem>>, %arg19: memref<32x64xf32, #tpu.memory_space<vmem>>, %arg20: memref<1x64xf32, #tpu.memory_space<vmem>>, %arg21: memref<64x32xf32, #tpu.memory_space<vmem>>, %arg22: memref<1x32xf32, #tpu.memory_space<vmem>>, %arg23: memref<1x32xf32, #tpu.memory_space<vmem>>, %arg24: memref<1x32xf32, #tpu.memory_space<vmem>>, %arg25: memref<1x32xf32, #tpu.memory_space<vmem>>, %arg26: memref<1x32xf32, #tpu.memory_space<vmem>>, %arg27: memref<3x32x8xf32, #tpu.memory_space<vmem>>, %arg28: memref<2x8x32xf32, #tpu.memory_space<vmem>>, %arg29: memref<2x8x8xf32, #tpu.memory_space<vmem>>, %arg30: memref<1x2x32xf32, #tpu.memory_space<vmem>>) attributes {dimension_semantics = [], scalar_prefetch = 0 : i64, scratch_operands = 0 : i64, tpu.core_type = #tpu.core_type<tc>} {
    %c0 = arith.constant 0 : index
    %c0_0 = arith.constant 0 : index
    %0 = vector.load %arg2[%c0, %c0_0] : memref<16x16xf32, #tpu.memory_space<vmem>>, vector<16x16xf32>
    %c0_1 = arith.constant 0 : index
    %c0_2 = arith.constant 0 : index
    %c0_3 = arith.constant 0 : index
    %1 = vector.load %arg0[%c0_1, %c0_2, %c0_3] : memref<2x8x32xf32, #tpu.memory_space<vmem>>, vector<2x8x32xf32>
    %c0_4 = arith.constant 0 : index
    %c0_5 = arith.constant 0 : index
    %c0_6 = arith.constant 0 : index
    %2 = vector.load %arg1[%c0_4, %c0_5, %c0_6] : memref<2x8x32xf32, #tpu.memory_space<vmem>>, vector<2x8x32xf32>
    %c0_7 = arith.constant 0 : index
    %c0_8 = arith.constant 0 : index
    %c0_9 = arith.constant 0 : index
    %3 = vector.load %arg3[%c0_7, %c0_8, %c0_9] : memref<1x32x96xf32, #tpu.memory_space<vmem>>, vector<1x32x96xf32>
    %4 = vector.shape_cast %3 : vector<1x32x96xf32> to vector<32x96xf32>
    %c0_10 = arith.constant 0 : index
    %c0_11 = arith.constant 0 : index
    %c0_12 = arith.constant 0 : index
    %5 = vector.load %arg4[%c0_10, %c0_11, %c0_12] : memref<1x32x96xf32, #tpu.memory_space<vmem>>, vector<1x32x96xf32>
    %6 = vector.shape_cast %5 : vector<1x32x96xf32> to vector<32x96xf32>
    %c0_13 = arith.constant 0 : index
    %c0_14 = arith.constant 0 : index
    %c0_15 = arith.constant 0 : index
    %7 = vector.load %arg5[%c0_13, %c0_14, %c0_15] : memref<1x1x96xf32, #tpu.memory_space<vmem>>, vector<1x1x96xf32>
    %8 = vector.shape_cast %7 : vector<1x1x96xf32> to vector<1x96xf32>
    %c0_16 = arith.constant 0 : index
    %c0_17 = arith.constant 0 : index
    %c0_18 = arith.constant 0 : index
    %9 = vector.load %arg6[%c0_16, %c0_17, %c0_18] : memref<1x1x96xf32, #tpu.memory_space<vmem>>, vector<1x1x96xf32>
    %10 = vector.shape_cast %9 : vector<1x1x96xf32> to vector<1x96xf32>
    %11 = vector.shape_cast %1 : vector<2x8x32xf32> to vector<16x32xf32>
    %cst = arith.constant dense<0.000000e+00> : vector<16x96xf32>
    %12 = tpu.matmul %11, %4, %cst {dimension_numbers = #tpu.dot_dimension_numbers<[1], [0], [0], [1], [0, 0, 1, 1], [], []>} : vector<16x32xf32>, vector<32x96xf32>, vector<16x96xf32> -> vector<16x96xf32>
    %13 = vector.broadcast %8 : vector<1x96xf32> to vector<16x96xf32>
    %14 = arith.addf %12, %13 : vector<16x96xf32>
    %15 = vector.shape_cast %14 : vector<16x96xf32> to vector<2x8x96xf32>
    %16 = vector.shape_cast %10 : vector<1x96xf32> to vector<1x96xf32>
    %17 = vector.broadcast %16 : vector<1x96xf32> to vector<2x96xf32>
    %cst_19 = arith.constant 0.000000e+00 : f32
    %18 = vector.broadcast %cst_19 : f32 to vector<2x32xf32>
    %cst_20 = arith.constant dense<0.000000e+00> : vector<2x96xf32>
    %19 = tpu.matmul %18, %6, %cst_20 {dimension_numbers = #tpu.dot_dimension_numbers<[1], [0], [0], [1], [0, 0, 1, 1], [], []>} : vector<2x32xf32>, vector<32x96xf32>, vector<2x96xf32> -> vector<2x96xf32>
    %20 = arith.addf %19, %17 : vector<2x96xf32>
    %21 = vector.extract_strided_slice %15 {offsets = [0, 0, 0], sizes = [2, 1, 96], strides = [1, 1, 1]} : vector<2x8x96xf32> to vector<2x1x96xf32>
    %22 = vector.shape_cast %21 : vector<2x1x96xf32> to vector<2x96xf32>
    %23 = vector.extract_strided_slice %22 {offsets = [0, 0], sizes = [2, 64], strides = [1, 1]} : vector<2x96xf32> to vector<2x64xf32>
    %24 = vector.extract_strided_slice %20 {offsets = [0, 0], sizes = [2, 64], strides = [1, 1]} : vector<2x96xf32> to vector<2x64xf32>
    %25 = arith.addf %23, %24 : vector<2x64xf32>
    %26 = arith.negf %25 : vector<2x64xf32>
    %27 = math.exp %26 : vector<2x64xf32>
    %cst_21 = arith.constant 1.000000e+00 : f32
    %28 = vector.broadcast %cst_21 : f32 to vector<2x64xf32>
    %29 = arith.addf %28, %27 : vector<2x64xf32>
    %30 = arith.divf %28, %29 : vector<2x64xf32>
    %31 = vector.extract_strided_slice %30 {offsets = [0, 0], sizes = [2, 32], strides = [1, 1]} : vector<2x64xf32> to vector<2x32xf32>
    %32 = vector.extract_strided_slice %30 {offsets = [0, 32], sizes = [2, 32], strides = [1, 1]} : vector<2x64xf32> to vector<2x32xf32>
    %33 = vector.extract_strided_slice %22 {offsets = [0, 64], sizes = [2, 32], strides = [1, 1]} : vector<2x96xf32> to vector<2x32xf32>
    %34 = vector.extract_strided_slice %20 {offsets = [0, 64], sizes = [2, 32], strides = [1, 1]} : vector<2x96xf32> to vector<2x32xf32>
    %35 = arith.mulf %31, %34 : vector<2x32xf32>
    %36 = arith.addf %33, %35 : vector<2x32xf32>
    %37 = math.tanh %36 : vector<2x32xf32>
    %cst_22 = arith.constant 1.000000e+00 : f32
    %38 = vector.broadcast %cst_22 : f32 to vector<2x32xf32>
    %39 = arith.subf %38, %32 : vector<2x32xf32>
    %40 = arith.mulf %39, %37 : vector<2x32xf32>
    %41 = arith.mulf %32, %18 : vector<2x32xf32>
    %42 = arith.addf %40, %41 : vector<2x32xf32>
    %cst_23 = arith.constant dense<0.000000e+00> : vector<2x96xf32>
    %43 = tpu.matmul %42, %6, %cst_23 {dimension_numbers = #tpu.dot_dimension_numbers<[1], [0], [0], [1], [0, 0, 1, 1], [], []>} : vector<2x32xf32>, vector<32x96xf32>, vector<2x96xf32> -> vector<2x96xf32>
    %44 = arith.addf %43, %17 : vector<2x96xf32>
    %45 = vector.extract_strided_slice %15 {offsets = [0, 1, 0], sizes = [2, 1, 96], strides = [1, 1, 1]} : vector<2x8x96xf32> to vector<2x1x96xf32>
    %46 = vector.shape_cast %45 : vector<2x1x96xf32> to vector<2x96xf32>
    %47 = vector.extract_strided_slice %46 {offsets = [0, 0], sizes = [2, 64], strides = [1, 1]} : vector<2x96xf32> to vector<2x64xf32>
    %48 = vector.extract_strided_slice %44 {offsets = [0, 0], sizes = [2, 64], strides = [1, 1]} : vector<2x96xf32> to vector<2x64xf32>
    %49 = arith.addf %47, %48 : vector<2x64xf32>
    %50 = arith.negf %49 : vector<2x64xf32>
    %51 = math.exp %50 : vector<2x64xf32>
    %cst_24 = arith.constant 1.000000e+00 : f32
    %52 = vector.broadcast %cst_24 : f32 to vector<2x64xf32>
    %53 = arith.addf %52, %51 : vector<2x64xf32>
    %54 = arith.divf %52, %53 : vector<2x64xf32>
    %55 = vector.extract_strided_slice %54 {offsets = [0, 0], sizes = [2, 32], strides = [1, 1]} : vector<2x64xf32> to vector<2x32xf32>
    %56 = vector.extract_strided_slice %54 {offsets = [0, 32], sizes = [2, 32], strides = [1, 1]} : vector<2x64xf32> to vector<2x32xf32>
    %57 = vector.extract_strided_slice %46 {offsets = [0, 64], sizes = [2, 32], strides = [1, 1]} : vector<2x96xf32> to vector<2x32xf32>
    %58 = vector.extract_strided_slice %44 {offsets = [0, 64], sizes = [2, 32], strides = [1, 1]} : vector<2x96xf32> to vector<2x32xf32>
    %59 = arith.mulf %55, %58 : vector<2x32xf32>
    %60 = arith.addf %57, %59 : vector<2x32xf32>
    %61 = math.tanh %60 : vector<2x32xf32>
    %cst_25 = arith.constant 1.000000e+00 : f32
    %62 = vector.broadcast %cst_25 : f32 to vector<2x32xf32>
    %63 = arith.subf %62, %56 : vector<2x32xf32>
    %64 = arith.mulf %63, %61 : vector<2x32xf32>
    %65 = arith.mulf %56, %42 : vector<2x32xf32>
    %66 = arith.addf %64, %65 : vector<2x32xf32>
    %cst_26 = arith.constant dense<0.000000e+00> : vector<2x96xf32>
    %67 = tpu.matmul %66, %6, %cst_26 {dimension_numbers = #tpu.dot_dimension_numbers<[1], [0], [0], [1], [0, 0, 1, 1], [], []>} : vector<2x32xf32>, vector<32x96xf32>, vector<2x96xf32> -> vector<2x96xf32>
    %68 = arith.addf %67, %17 : vector<2x96xf32>
    %69 = vector.extract_strided_slice %15 {offsets = [0, 2, 0], sizes = [2, 1, 96], strides = [1, 1, 1]} : vector<2x8x96xf32> to vector<2x1x96xf32>
    %70 = vector.shape_cast %69 : vector<2x1x96xf32> to vector<2x96xf32>
    %71 = vector.extract_strided_slice %70 {offsets = [0, 0], sizes = [2, 64], strides = [1, 1]} : vector<2x96xf32> to vector<2x64xf32>
    %72 = vector.extract_strided_slice %68 {offsets = [0, 0], sizes = [2, 64], strides = [1, 1]} : vector<2x96xf32> to vector<2x64xf32>
    %73 = arith.addf %71, %72 : vector<2x64xf32>
    %74 = arith.negf %73 : vector<2x64xf32>
    %75 = math.exp %74 : vector<2x64xf32>
    %cst_27 = arith.constant 1.000000e+00 : f32
    %76 = vector.broadcast %cst_27 : f32 to vector<2x64xf32>
    %77 = arith.addf %76, %75 : vector<2x64xf32>
    %78 = arith.divf %76, %77 : vector<2x64xf32>
    %79 = vector.extract_strided_slice %78 {offsets = [0, 0], sizes = [2, 32], strides = [1, 1]} : vector<2x64xf32> to vector<2x32xf32>
    %80 = vector.extract_strided_slice %78 {offsets = [0, 32], sizes = [2, 32], strides = [1, 1]} : vector<2x64xf32> to vector<2x32xf32>
    %81 = vector.extract_strided_slice %70 {offsets = [0, 64], sizes = [2, 32], strides = [1, 1]} : vector<2x96xf32> to vector<2x32xf32>
    %82 = vector.extract_strided_slice %68 {offsets = [0, 64], sizes = [2, 32], strides = [1, 1]} : vector<2x96xf32> to vector<2x32xf32>
    %83 = arith.mulf %79, %82 : vector<2x32xf32>
    %84 = arith.addf %81, %83 : vector<2x32xf32>
    %85 = math.tanh %84 : vector<2x32xf32>
    %cst_28 = arith.constant 1.000000e+00 : f32
    %86 = vector.broadcast %cst_28 : f32 to vector<2x32xf32>
    %87 = arith.subf %86, %80 : vector<2x32xf32>
    %88 = arith.mulf %87, %85 : vector<2x32xf32>
    %89 = arith.mulf %80, %66 : vector<2x32xf32>
    %90 = arith.addf %88, %89 : vector<2x32xf32>
    %cst_29 = arith.constant dense<0.000000e+00> : vector<2x96xf32>
    %91 = tpu.matmul %90, %6, %cst_29 {dimension_numbers = #tpu.dot_dimension_numbers<[1], [0], [0], [1], [0, 0, 1, 1], [], []>} : vector<2x32xf32>, vector<32x96xf32>, vector<2x96xf32> -> vector<2x96xf32>
    %92 = arith.addf %91, %17 : vector<2x96xf32>
    %93 = vector.extract_strided_slice %15 {offsets = [0, 3, 0], sizes = [2, 1, 96], strides = [1, 1, 1]} : vector<2x8x96xf32> to vector<2x1x96xf32>
    %94 = vector.shape_cast %93 : vector<2x1x96xf32> to vector<2x96xf32>
    %95 = vector.extract_strided_slice %94 {offsets = [0, 0], sizes = [2, 64], strides = [1, 1]} : vector<2x96xf32> to vector<2x64xf32>
    %96 = vector.extract_strided_slice %92 {offsets = [0, 0], sizes = [2, 64], strides = [1, 1]} : vector<2x96xf32> to vector<2x64xf32>
    %97 = arith.addf %95, %96 : vector<2x64xf32>
    %98 = arith.negf %97 : vector<2x64xf32>
    %99 = math.exp %98 : vector<2x64xf32>
    %cst_30 = arith.constant 1.000000e+00 : f32
    %100 = vector.broadcast %cst_30 : f32 to vector<2x64xf32>
    %101 = arith.addf %100, %99 : vector<2x64xf32>
    %102 = arith.divf %100, %101 : vector<2x64xf32>
    %103 = vector.extract_strided_slice %102 {offsets = [0, 0], sizes = [2, 32], strides = [1, 1]} : vector<2x64xf32> to vector<2x32xf32>
    %104 = vector.extract_strided_slice %102 {offsets = [0, 32], sizes = [2, 32], strides = [1, 1]} : vector<2x64xf32> to vector<2x32xf32>
    %105 = vector.extract_strided_slice %94 {offsets = [0, 64], sizes = [2, 32], strides = [1, 1]} : vector<2x96xf32> to vector<2x32xf32>
    %106 = vector.extract_strided_slice %92 {offsets = [0, 64], sizes = [2, 32], strides = [1, 1]} : vector<2x96xf32> to vector<2x32xf32>
    %107 = arith.mulf %103, %106 : vector<2x32xf32>
    %108 = arith.addf %105, %107 : vector<2x32xf32>
    %109 = math.tanh %108 : vector<2x32xf32>
    %cst_31 = arith.constant 1.000000e+00 : f32
    %110 = vector.broadcast %cst_31 : f32 to vector<2x32xf32>
    %111 = arith.subf %110, %104 : vector<2x32xf32>
    %112 = arith.mulf %111, %109 : vector<2x32xf32>
    %113 = arith.mulf %104, %90 : vector<2x32xf32>
    %114 = arith.addf %112, %113 : vector<2x32xf32>
    %cst_32 = arith.constant dense<0.000000e+00> : vector<2x96xf32>
    %115 = tpu.matmul %114, %6, %cst_32 {dimension_numbers = #tpu.dot_dimension_numbers<[1], [0], [0], [1], [0, 0, 1, 1], [], []>} : vector<2x32xf32>, vector<32x96xf32>, vector<2x96xf32> -> vector<2x96xf32>
    %116 = arith.addf %115, %17 : vector<2x96xf32>
    %117 = vector.extract_strided_slice %15 {offsets = [0, 4, 0], sizes = [2, 1, 96], strides = [1, 1, 1]} : vector<2x8x96xf32> to vector<2x1x96xf32>
    %118 = vector.shape_cast %117 : vector<2x1x96xf32> to vector<2x96xf32>
    %119 = vector.extract_strided_slice %118 {offsets = [0, 0], sizes = [2, 64], strides = [1, 1]} : vector<2x96xf32> to vector<2x64xf32>
    %120 = vector.extract_strided_slice %116 {offsets = [0, 0], sizes = [2, 64], strides = [1, 1]} : vector<2x96xf32> to vector<2x64xf32>
    %121 = arith.addf %119, %120 : vector<2x64xf32>
    %122 = arith.negf %121 : vector<2x64xf32>
    %123 = math.exp %122 : vector<2x64xf32>
    %cst_33 = arith.constant 1.000000e+00 : f32
    %124 = vector.broadcast %cst_33 : f32 to vector<2x64xf32>
    %125 = arith.addf %124, %123 : vector<2x64xf32>
    %126 = arith.divf %124, %125 : vector<2x64xf32>
    %127 = vector.extract_strided_slice %126 {offsets = [0, 0], sizes = [2, 32], strides = [1, 1]} : vector<2x64xf32> to vector<2x32xf32>
    %128 = vector.extract_strided_slice %126 {offsets = [0, 32], sizes = [2, 32], strides = [1, 1]} : vector<2x64xf32> to vector<2x32xf32>
    %129 = vector.extract_strided_slice %118 {offsets = [0, 64], sizes = [2, 32], strides = [1, 1]} : vector<2x96xf32> to vector<2x32xf32>
    %130 = vector.extract_strided_slice %116 {offsets = [0, 64], sizes = [2, 32], strides = [1, 1]} : vector<2x96xf32> to vector<2x32xf32>
    %131 = arith.mulf %127, %130 : vector<2x32xf32>
    %132 = arith.addf %129, %131 : vector<2x32xf32>
    %133 = math.tanh %132 : vector<2x32xf32>
    %cst_34 = arith.constant 1.000000e+00 : f32
    %134 = vector.broadcast %cst_34 : f32 to vector<2x32xf32>
    %135 = arith.subf %134, %128 : vector<2x32xf32>
    %136 = arith.mulf %135, %133 : vector<2x32xf32>
    %137 = arith.mulf %128, %114 : vector<2x32xf32>
    %138 = arith.addf %136, %137 : vector<2x32xf32>
    %cst_35 = arith.constant dense<0.000000e+00> : vector<2x96xf32>
    %139 = tpu.matmul %138, %6, %cst_35 {dimension_numbers = #tpu.dot_dimension_numbers<[1], [0], [0], [1], [0, 0, 1, 1], [], []>} : vector<2x32xf32>, vector<32x96xf32>, vector<2x96xf32> -> vector<2x96xf32>
    %140 = arith.addf %139, %17 : vector<2x96xf32>
    %141 = vector.extract_strided_slice %15 {offsets = [0, 5, 0], sizes = [2, 1, 96], strides = [1, 1, 1]} : vector<2x8x96xf32> to vector<2x1x96xf32>
    %142 = vector.shape_cast %141 : vector<2x1x96xf32> to vector<2x96xf32>
    %143 = vector.extract_strided_slice %142 {offsets = [0, 0], sizes = [2, 64], strides = [1, 1]} : vector<2x96xf32> to vector<2x64xf32>
    %144 = vector.extract_strided_slice %140 {offsets = [0, 0], sizes = [2, 64], strides = [1, 1]} : vector<2x96xf32> to vector<2x64xf32>
    %145 = arith.addf %143, %144 : vector<2x64xf32>
    %146 = arith.negf %145 : vector<2x64xf32>
    %147 = math.exp %146 : vector<2x64xf32>
    %cst_36 = arith.constant 1.000000e+00 : f32
    %148 = vector.broadcast %cst_36 : f32 to vector<2x64xf32>
    %149 = arith.addf %148, %147 : vector<2x64xf32>
    %150 = arith.divf %148, %149 : vector<2x64xf32>
    %151 = vector.extract_strided_slice %150 {offsets = [0, 0], sizes = [2, 32], strides = [1, 1]} : vector<2x64xf32> to vector<2x32xf32>
    %152 = vector.extract_strided_slice %150 {offsets = [0, 32], sizes = [2, 32], strides = [1, 1]} : vector<2x64xf32> to vector<2x32xf32>
    %153 = vector.extract_strided_slice %142 {offsets = [0, 64], sizes = [2, 32], strides = [1, 1]} : vector<2x96xf32> to vector<2x32xf32>
    %154 = vector.extract_strided_slice %140 {offsets = [0, 64], sizes = [2, 32], strides = [1, 1]} : vector<2x96xf32> to vector<2x32xf32>
    %155 = arith.mulf %151, %154 : vector<2x32xf32>
    %156 = arith.addf %153, %155 : vector<2x32xf32>
    %157 = math.tanh %156 : vector<2x32xf32>
    %cst_37 = arith.constant 1.000000e+00 : f32
    %158 = vector.broadcast %cst_37 : f32 to vector<2x32xf32>
    %159 = arith.subf %158, %152 : vector<2x32xf32>
    %160 = arith.mulf %159, %157 : vector<2x32xf32>
    %161 = arith.mulf %152, %138 : vector<2x32xf32>
    %162 = arith.addf %160, %161 : vector<2x32xf32>
    %cst_38 = arith.constant dense<0.000000e+00> : vector<2x96xf32>
    %163 = tpu.matmul %162, %6, %cst_38 {dimension_numbers = #tpu.dot_dimension_numbers<[1], [0], [0], [1], [0, 0, 1, 1], [], []>} : vector<2x32xf32>, vector<32x96xf32>, vector<2x96xf32> -> vector<2x96xf32>
    %164 = arith.addf %163, %17 : vector<2x96xf32>
    %165 = vector.extract_strided_slice %15 {offsets = [0, 6, 0], sizes = [2, 1, 96], strides = [1, 1, 1]} : vector<2x8x96xf32> to vector<2x1x96xf32>
    %166 = vector.shape_cast %165 : vector<2x1x96xf32> to vector<2x96xf32>
    %167 = vector.extract_strided_slice %166 {offsets = [0, 0], sizes = [2, 64], strides = [1, 1]} : vector<2x96xf32> to vector<2x64xf32>
    %168 = vector.extract_strided_slice %164 {offsets = [0, 0], sizes = [2, 64], strides = [1, 1]} : vector<2x96xf32> to vector<2x64xf32>
    %169 = arith.addf %167, %168 : vector<2x64xf32>
    %170 = arith.negf %169 : vector<2x64xf32>
    %171 = math.exp %170 : vector<2x64xf32>
    %cst_39 = arith.constant 1.000000e+00 : f32
    %172 = vector.broadcast %cst_39 : f32 to vector<2x64xf32>
    %173 = arith.addf %172, %171 : vector<2x64xf32>
    %174 = arith.divf %172, %173 : vector<2x64xf32>
    %175 = vector.extract_strided_slice %174 {offsets = [0, 0], sizes = [2, 32], strides = [1, 1]} : vector<2x64xf32> to vector<2x32xf32>
    %176 = vector.extract_strided_slice %174 {offsets = [0, 32], sizes = [2, 32], strides = [1, 1]} : vector<2x64xf32> to vector<2x32xf32>
    %177 = vector.extract_strided_slice %166 {offsets = [0, 64], sizes = [2, 32], strides = [1, 1]} : vector<2x96xf32> to vector<2x32xf32>
    %178 = vector.extract_strided_slice %164 {offsets = [0, 64], sizes = [2, 32], strides = [1, 1]} : vector<2x96xf32> to vector<2x32xf32>
    %179 = arith.mulf %175, %178 : vector<2x32xf32>
    %180 = arith.addf %177, %179 : vector<2x32xf32>
    %181 = math.tanh %180 : vector<2x32xf32>
    %cst_40 = arith.constant 1.000000e+00 : f32
    %182 = vector.broadcast %cst_40 : f32 to vector<2x32xf32>
    %183 = arith.subf %182, %176 : vector<2x32xf32>
    %184 = arith.mulf %183, %181 : vector<2x32xf32>
    %185 = arith.mulf %176, %162 : vector<2x32xf32>
    %186 = arith.addf %184, %185 : vector<2x32xf32>
    %cst_41 = arith.constant dense<0.000000e+00> : vector<2x96xf32>
    %187 = tpu.matmul %186, %6, %cst_41 {dimension_numbers = #tpu.dot_dimension_numbers<[1], [0], [0], [1], [0, 0, 1, 1], [], []>} : vector<2x32xf32>, vector<32x96xf32>, vector<2x96xf32> -> vector<2x96xf32>
    %188 = arith.addf %187, %17 : vector<2x96xf32>
    %189 = vector.extract_strided_slice %15 {offsets = [0, 7, 0], sizes = [2, 1, 96], strides = [1, 1, 1]} : vector<2x8x96xf32> to vector<2x1x96xf32>
    %190 = vector.shape_cast %189 : vector<2x1x96xf32> to vector<2x96xf32>
    %191 = vector.extract_strided_slice %190 {offsets = [0, 0], sizes = [2, 64], strides = [1, 1]} : vector<2x96xf32> to vector<2x64xf32>
    %192 = vector.extract_strided_slice %188 {offsets = [0, 0], sizes = [2, 64], strides = [1, 1]} : vector<2x96xf32> to vector<2x64xf32>
    %193 = arith.addf %191, %192 : vector<2x64xf32>
    %194 = arith.negf %193 : vector<2x64xf32>
    %195 = math.exp %194 : vector<2x64xf32>
    %cst_42 = arith.constant 1.000000e+00 : f32
    %196 = vector.broadcast %cst_42 : f32 to vector<2x64xf32>
    %197 = arith.addf %196, %195 : vector<2x64xf32>
    %198 = arith.divf %196, %197 : vector<2x64xf32>
    %199 = vector.extract_strided_slice %198 {offsets = [0, 0], sizes = [2, 32], strides = [1, 1]} : vector<2x64xf32> to vector<2x32xf32>
    %200 = vector.extract_strided_slice %198 {offsets = [0, 32], sizes = [2, 32], strides = [1, 1]} : vector<2x64xf32> to vector<2x32xf32>
    %201 = vector.extract_strided_slice %190 {offsets = [0, 64], sizes = [2, 32], strides = [1, 1]} : vector<2x96xf32> to vector<2x32xf32>
    %202 = vector.extract_strided_slice %188 {offsets = [0, 64], sizes = [2, 32], strides = [1, 1]} : vector<2x96xf32> to vector<2x32xf32>
    %203 = arith.mulf %199, %202 : vector<2x32xf32>
    %204 = arith.addf %201, %203 : vector<2x32xf32>
    %205 = math.tanh %204 : vector<2x32xf32>
    %cst_43 = arith.constant 1.000000e+00 : f32
    %206 = vector.broadcast %cst_43 : f32 to vector<2x32xf32>
    %207 = arith.subf %206, %200 : vector<2x32xf32>
    %208 = arith.mulf %207, %205 : vector<2x32xf32>
    %209 = arith.mulf %200, %186 : vector<2x32xf32>
    %210 = arith.addf %208, %209 : vector<2x32xf32>
    %211 = vector.shape_cast %42 : vector<2x32xf32> to vector<2x1x32xf32>
    %212 = vector.shape_cast %66 : vector<2x32xf32> to vector<2x1x32xf32>
    %213 = vector.shape_cast %90 : vector<2x32xf32> to vector<2x1x32xf32>
    %214 = vector.shape_cast %114 : vector<2x32xf32> to vector<2x1x32xf32>
    %215 = vector.shape_cast %138 : vector<2x32xf32> to vector<2x1x32xf32>
    %216 = vector.shape_cast %162 : vector<2x32xf32> to vector<2x1x32xf32>
    %217 = vector.shape_cast %186 : vector<2x32xf32> to vector<2x1x32xf32>
    %218 = vector.shape_cast %210 : vector<2x32xf32> to vector<2x1x32xf32>
    %219 = tpu.concatenate %211, %212, %213, %214, %215, %216, %217, %218 in 1 : vector<2x1x32xf32>, vector<2x1x32xf32>, vector<2x1x32xf32>, vector<2x1x32xf32>, vector<2x1x32xf32>, vector<2x1x32xf32>, vector<2x1x32xf32>, vector<2x1x32xf32> -> vector<2x8x32xf32>
    %c0_44 = arith.constant 0 : index
    %c0_45 = arith.constant 0 : index
    %c0_46 = arith.constant 0 : index
    %220 = vector.load %arg30[%c0_44, %c0_45, %c0_46] : memref<1x2x32xf32, #tpu.memory_space<vmem>>, vector<1x2x32xf32>
    %221 = vector.shape_cast %220 : vector<1x2x32xf32> to vector<2x32xf32>
    %222 = vector.shape_cast %210 : vector<2x32xf32> to vector<1x2x32xf32>
    tpu.vector_store %arg30[%c0_44, %c0_45, %c0_46], %222 {strides = array<i32>} : memref<1x2x32xf32, #tpu.memory_space<vmem>>, vector<1x2x32xf32>,
    %cst_47 = arith.constant dense<0xFF800000> : vector<2x8xf32>
    %223 = vector.multi_reduction <maximumf>, %219, %cst_47 [2] : vector<2x8x32xf32> to vector<2x8xf32>
    %224 = vector.shape_cast %223 : vector<2x8xf32> to vector<2x8x1xf32>
    %225 = vector.broadcast %224 : vector<2x8x1xf32> to vector<2x8x32xf32>
    %226 = arith.subf %219, %225 : vector<2x8x32xf32>
    %227 = math.exp %226 : vector<2x8x32xf32>
    %cst_48 = arith.constant dense<0.000000e+00> : vector<2x8xf32>
    %228 = vector.multi_reduction <add>, %227, %cst_48 [2] : vector<2x8x32xf32> to vector<2x8xf32>
    %229 = vector.shape_cast %228 : vector<2x8xf32> to vector<2x8x1xf32>
    %230 = tpu.reciprocal %229 {approx = true} : vector<2x8x1xf32> -> vector<2x8x1xf32>
    %231 = vector.broadcast %230 : vector<2x8x1xf32> to vector<2x8x32xf32>
    %232 = arith.mulf %227, %231 : vector<2x8x32xf32>
    %233 = arith.mulf %232, %1 : vector<2x8x32xf32>
    %234 = arith.addf %233, %1 : vector<2x8x32xf32>
    "tpu.trace_start"() <{level = 10 : i32, message = "bqd,bkd->bqk"}> : () -> ()
    %cst_49 = arith.constant dense<0.000000e+00> : vector<2x8x8xf32>
    %235 = tpu.matmul %1, %1, %cst_49 {dimension_numbers = #tpu.dot_dimension_numbers<[2], [2], [1], [1], [0, 0, 0, 1, 1, 1], [0], [0]>} : vector<2x8x32xf32>, vector<2x8x32xf32>, vector<2x8x8xf32> -> vector<2x8x8xf32>
    "tpu.trace_stop"() : () -> ()
    %cst_50 = arith.constant 0.176776692 : f32
    %236 = vector.broadcast %cst_50 : f32 to vector<2x8x8xf32>
    %237 = arith.mulf %235, %236 : vector<2x8x8xf32>
    %cst_51 = arith.constant dense<0xFF800000> : vector<2x8xf32>
    %238 = vector.multi_reduction <maximumf>, %237, %cst_51 [2] : vector<2x8x8xf32> to vector<2x8xf32>
    %239 = vector.shape_cast %238 : vector<2x8xf32> to vector<2x8x1xf32>
    %240 = vector.broadcast %239 : vector<2x8x1xf32> to vector<2x8x8xf32>
    %241 = arith.subf %237, %240 : vector<2x8x8xf32>
    %242 = math.exp %241 : vector<2x8x8xf32>
    %cst_52 = arith.constant dense<0.000000e+00> : vector<2x8xf32>
    %243 = vector.multi_reduction <add>, %242, %cst_52 [2] : vector<2x8x8xf32> to vector<2x8xf32>
    %244 = vector.shape_cast %243 : vector<2x8xf32> to vector<2x8x1xf32>
    %245 = tpu.reciprocal %244 {approx = true} : vector<2x8x1xf32> -> vector<2x8x1xf32>
    %246 = vector.broadcast %245 : vector<2x8x1xf32> to vector<2x8x8xf32>
    %247 = arith.mulf %242, %246 : vector<2x8x8xf32>
    "tpu.trace_start"() <{level = 10 : i32, message = "bqk,bkd->bqd"}> : () -> ()
    %cst_53 = arith.constant dense<0.000000e+00> : vector<2x8x32xf32>
    %248 = tpu.matmul %247, %1, %cst_53 {dimension_numbers = #tpu.dot_dimension_numbers<[2], [1], [1], [2], [0, 0, 0, 1, 1, 2], [0], [0]>} : vector<2x8x8xf32>, vector<2x8x32xf32>, vector<2x8x32xf32> -> vector<2x8x32xf32>
    "tpu.trace_stop"() : () -> ()
    %249 = arith.addf %248, %234 : vector<2x8x32xf32>
    %c0_54 = arith.constant 0 : index
    %c0_55 = arith.constant 0 : index
    %250 = vector.load %arg23[%c0_54, %c0_55] : memref<1x32xf32, #tpu.memory_space<vmem>>, vector<1x32xf32>
    %c0_56 = arith.constant 0 : index
    %c0_57 = arith.constant 0 : index
    %251 = vector.load %arg24[%c0_56, %c0_57] : memref<1x32xf32, #tpu.memory_space<vmem>>, vector<1x32xf32>
    %cst_58 = arith.constant dense<0.000000e+00> : vector<2x8xf32>
    %252 = vector.multi_reduction <add>, %249, %cst_58 [2] : vector<2x8x32xf32> to vector<2x8xf32>
    %253 = vector.shape_cast %252 : vector<2x8xf32> to vector<2x8x1xf32>
    %cst_59 = arith.constant 3.200000e+01 : f32
    %254 = vector.broadcast %cst_59 : f32 to vector<2x8x1xf32>
    %255 = arith.divf %253, %254 : vector<2x8x1xf32>
    %256 = vector.broadcast %255 : vector<2x8x1xf32> to vector<2x8x32xf32>
    %257 = arith.subf %249, %256 : vector<2x8x32xf32>
    %258 = arith.mulf %257, %257 : vector<2x8x32xf32>
    %cst_60 = arith.constant dense<0.000000e+00> : vector<2x8xf32>
    %259 = vector.multi_reduction <add>, %258, %cst_60 [2] : vector<2x8x32xf32> to vector<2x8xf32>
    %260 = vector.shape_cast %259 : vector<2x8xf32> to vector<2x8x1xf32>
    %cst_61 = arith.constant 3.200000e+01 : f32
    %261 = vector.broadcast %cst_61 : f32 to vector<2x8x1xf32>
    %262 = arith.divf %260, %261 : vector<2x8x1xf32>
    %263 = vector.broadcast %255 : vector<2x8x1xf32> to vector<2x8x32xf32>
    %264 = arith.subf %249, %263 : vector<2x8x32xf32>
    %cst_62 = arith.constant 9.99999974E-6 : f32
    %265 = vector.broadcast %cst_62 : f32 to vector<2x8x1xf32>
    %266 = arith.addf %262, %265 : vector<2x8x1xf32>
    %267 = math.rsqrt %266 : vector<2x8x1xf32>
    %268 = vector.broadcast %267 : vector<2x8x1xf32> to vector<2x8x32xf32>
    %269 = arith.mulf %264, %268 : vector<2x8x32xf32>
    %270 = vector.shape_cast %250 : vector<1x32xf32> to vector<1x1x32xf32>
    %271 = vector.broadcast %270 : vector<1x1x32xf32> to vector<2x8x32xf32>
    %272 = arith.mulf %269, %271 : vector<2x8x32xf32>
    %273 = vector.shape_cast %251 : vector<1x32xf32> to vector<1x1x32xf32>
    %274 = vector.broadcast %273 : vector<1x1x32xf32> to vector<2x8x32xf32>
    %275 = arith.addf %272, %274 : vector<2x8x32xf32>
    %c0_63 = arith.constant 0 : index
    %c0_64 = arith.constant 0 : index
    %276 = vector.load %arg15[%c0_63, %c0_64] : memref<32x64xf32, #tpu.memory_space<vmem>>, vector<32x64xf32>
    %c0_65 = arith.constant 0 : index
    %c0_66 = arith.constant 0 : index
    %277 = vector.load %arg16[%c0_65, %c0_66] : memref<1x64xf32, #tpu.memory_space<vmem>>, vector<1x64xf32>
    %c0_67 = arith.constant 0 : index
    %c0_68 = arith.constant 0 : index
    %278 = vector.load %arg17[%c0_67, %c0_68] : memref<64x32xf32, #tpu.memory_space<vmem>>, vector<64x32xf32>
    %c0_69 = arith.constant 0 : index
    %c0_70 = arith.constant 0 : index
    %279 = vector.load %arg18[%c0_69, %c0_70] : memref<1x32xf32, #tpu.memory_space<vmem>>, vector<1x32xf32>
    %280 = vector.shape_cast %275 : vector<2x8x32xf32> to vector<16x32xf32>
    %cst_71 = arith.constant dense<0.000000e+00> : vector<16x64xf32>
    %281 = tpu.matmul %280, %276, %cst_71 {dimension_numbers = #tpu.dot_dimension_numbers<[1], [0], [0], [1], [0, 0, 1, 1], [], []>} : vector<16x32xf32>, vector<32x64xf32>, vector<16x64xf32> -> vector<16x64xf32>
    %282 = vector.broadcast %277 : vector<1x64xf32> to vector<16x64xf32>
    %283 = arith.addf %281, %282 : vector<16x64xf32>
    %cst_72 = arith.constant 0.000000e+00 : f32
    %284 = vector.broadcast %cst_72 : f32 to vector<16x64xf32>
    %285 = arith.maximumf %283, %284 : vector<16x64xf32>
    %cst_73 = arith.constant dense<0.000000e+00> : vector<16x32xf32>
    %286 = tpu.matmul %285, %278, %cst_73 {dimension_numbers = #tpu.dot_dimension_numbers<[1], [0], [0], [1], [0, 0, 1, 1], [], []>} : vector<16x64xf32>, vector<64x32xf32>, vector<16x32xf32> -> vector<16x32xf32>
    %287 = vector.broadcast %279 : vector<1x32xf32> to vector<16x32xf32>
    %288 = arith.addf %286, %287 : vector<16x32xf32>
    %289 = vector.shape_cast %288 : vector<16x32xf32> to vector<2x8x32xf32>
    %290 = vector.shape_cast %275 : vector<2x8x32xf32> to vector<16x32xf32>
    %cst_74 = arith.constant dense<0.000000e+00> : vector<16x32xf32>
    %291 = tpu.matmul %0, %290, %cst_74 {dimension_numbers = #tpu.dot_dimension_numbers<[1], [0], [0], [1], [0, 0, 1, 1], [], []>} : vector<16x16xf32>, vector<16x32xf32>, vector<16x32xf32> -> vector<16x32xf32>
    %292 = arith.subf %290, %291 : vector<16x32xf32>
    %293 = vector.shape_cast %292 : vector<16x32xf32> to vector<2x8x32xf32>
    %294 = vector.shape_cast %291 : vector<16x32xf32> to vector<2x8x32xf32>
    %c0_75 = arith.constant 0 : index
    %c0_76 = arith.constant 0 : index
    %c0_77 = arith.constant 0 : index
    %295 = vector.load %arg7[%c0_75, %c0_76, %c0_77] : memref<1x32x96xf32, #tpu.memory_space<vmem>>, vector<1x32x96xf32>
    %296 = vector.shape_cast %295 : vector<1x32x96xf32> to vector<32x96xf32>
    %c0_78 = arith.constant 0 : index
    %c0_79 = arith.constant 0 : index
    %c0_80 = arith.constant 0 : index
    %297 = vector.load %arg8[%c0_78, %c0_79, %c0_80] : memref<1x32x96xf32, #tpu.memory_space<vmem>>, vector<1x32x96xf32>
    %298 = vector.shape_cast %297 : vector<1x32x96xf32> to vector<32x96xf32>
    %c0_81 = arith.constant 0 : index
    %c0_82 = arith.constant 0 : index
    %c0_83 = arith.constant 0 : index
    %299 = vector.load %arg9[%c0_81, %c0_82, %c0_83] : memref<1x1x96xf32, #tpu.memory_space<vmem>>, vector<1x1x96xf32>
    %300 = vector.shape_cast %299 : vector<1x1x96xf32> to vector<1x96xf32>
    %c0_84 = arith.constant 0 : index
    %c0_85 = arith.constant 0 : index
    %c0_86 = arith.constant 0 : index
    %301 = vector.load %arg10[%c0_84, %c0_85, %c0_86] : memref<1x1x96xf32, #tpu.memory_space<vmem>>, vector<1x1x96xf32>
    %302 = vector.shape_cast %301 : vector<1x1x96xf32> to vector<1x96xf32>
    %303 = vector.shape_cast %293 : vector<2x8x32xf32> to vector<16x32xf32>
    %cst_87 = arith.constant dense<0.000000e+00> : vector<16x96xf32>
    %304 = tpu.matmul %303, %296, %cst_87 {dimension_numbers = #tpu.dot_dimension_numbers<[1], [0], [0], [1], [0, 0, 1, 1], [], []>} : vector<16x32xf32>, vector<32x96xf32>, vector<16x96xf32> -> vector<16x96xf32>
    %305 = vector.broadcast %300 : vector<1x96xf32> to vector<16x96xf32>
    %306 = arith.addf %304, %305 : vector<16x96xf32>
    %307 = vector.shape_cast %306 : vector<16x96xf32> to vector<2x8x96xf32>
    %308 = vector.shape_cast %302 : vector<1x96xf32> to vector<1x96xf32>
    %309 = vector.broadcast %308 : vector<1x96xf32> to vector<2x96xf32>
    %cst_88 = arith.constant 0.000000e+00 : f32
    %310 = vector.broadcast %cst_88 : f32 to vector<2x32xf32>
    %cst_89 = arith.constant dense<0.000000e+00> : vector<2x96xf32>
    %311 = tpu.matmul %310, %298, %cst_89 {dimension_numbers = #tpu.dot_dimension_numbers<[1], [0], [0], [1], [0, 0, 1, 1], [], []>} : vector<2x32xf32>, vector<32x96xf32>, vector<2x96xf32> -> vector<2x96xf32>
    %312 = arith.addf %311, %309 : vector<2x96xf32>
    %313 = vector.extract_strided_slice %307 {offsets = [0, 0, 0], sizes = [2, 1, 96], strides = [1, 1, 1]} : vector<2x8x96xf32> to vector<2x1x96xf32>
    %314 = vector.shape_cast %313 : vector<2x1x96xf32> to vector<2x96xf32>
    %315 = vector.extract_strided_slice %314 {offsets = [0, 0], sizes = [2, 64], strides = [1, 1]} : vector<2x96xf32> to vector<2x64xf32>
    %316 = vector.extract_strided_slice %312 {offsets = [0, 0], sizes = [2, 64], strides = [1, 1]} : vector<2x96xf32> to vector<2x64xf32>
    %317 = arith.addf %315, %316 : vector<2x64xf32>
    %318 = arith.negf %317 : vector<2x64xf32>
    %319 = math.exp %318 : vector<2x64xf32>
    %cst_90 = arith.constant 1.000000e+00 : f32
    %320 = vector.broadcast %cst_90 : f32 to vector<2x64xf32>
    %321 = arith.addf %320, %319 : vector<2x64xf32>
    %322 = arith.divf %320, %321 : vector<2x64xf32>
    %323 = vector.extract_strided_slice %322 {offsets = [0, 0], sizes = [2, 32], strides = [1, 1]} : vector<2x64xf32> to vector<2x32xf32>
    %324 = vector.extract_strided_slice %322 {offsets = [0, 32], sizes = [2, 32], strides = [1, 1]} : vector<2x64xf32> to vector<2x32xf32>
    %325 = vector.extract_strided_slice %314 {offsets = [0, 64], sizes = [2, 32], strides = [1, 1]} : vector<2x96xf32> to vector<2x32xf32>
    %326 = vector.extract_strided_slice %312 {offsets = [0, 64], sizes = [2, 32], strides = [1, 1]} : vector<2x96xf32> to vector<2x32xf32>
    %327 = arith.mulf %323, %326 : vector<2x32xf32>
    %328 = arith.addf %325, %327 : vector<2x32xf32>
    %329 = math.tanh %328 : vector<2x32xf32>
    %cst_91 = arith.constant 1.000000e+00 : f32
    %330 = vector.broadcast %cst_91 : f32 to vector<2x32xf32>
    %331 = arith.subf %330, %324 : vector<2x32xf32>
    %332 = arith.mulf %331, %329 : vector<2x32xf32>
    %333 = arith.mulf %324, %310 : vector<2x32xf32>
    %334 = arith.addf %332, %333 : vector<2x32xf32>
    %cst_92 = arith.constant dense<0.000000e+00> : vector<2x96xf32>
    %335 = tpu.matmul %334, %298, %cst_92 {dimension_numbers = #tpu.dot_dimension_numbers<[1], [0], [0], [1], [0, 0, 1, 1], [], []>} : vector<2x32xf32>, vector<32x96xf32>, vector<2x96xf32> -> vector<2x96xf32>
    %336 = arith.addf %335, %309 : vector<2x96xf32>
    %337 = vector.extract_strided_slice %307 {offsets = [0, 1, 0], sizes = [2, 1, 96], strides = [1, 1, 1]} : vector<2x8x96xf32> to vector<2x1x96xf32>
    %338 = vector.shape_cast %337 : vector<2x1x96xf32> to vector<2x96xf32>
    %339 = vector.extract_strided_slice %338 {offsets = [0, 0], sizes = [2, 64], strides = [1, 1]} : vector<2x96xf32> to vector<2x64xf32>
    %340 = vector.extract_strided_slice %336 {offsets = [0, 0], sizes = [2, 64], strides = [1, 1]} : vector<2x96xf32> to vector<2x64xf32>
    %341 = arith.addf %339, %340 : vector<2x64xf32>
    %342 = arith.negf %341 : vector<2x64xf32>
    %343 = math.exp %342 : vector<2x64xf32>
    %cst_93 = arith.constant 1.000000e+00 : f32
    %344 = vector.broadcast %cst_93 : f32 to vector<2x64xf32>
    %345 = arith.addf %344, %343 : vector<2x64xf32>
    %346 = arith.divf %344, %345 : vector<2x64xf32>
    %347 = vector.extract_strided_slice %346 {offsets = [0, 0], sizes = [2, 32], strides = [1, 1]} : vector<2x64xf32> to vector<2x32xf32>
    %348 = vector.extract_strided_slice %346 {offsets = [0, 32], sizes = [2, 32], strides = [1, 1]} : vector<2x64xf32> to vector<2x32xf32>
    %349 = vector.extract_strided_slice %338 {offsets = [0, 64], sizes = [2, 32], strides = [1, 1]} : vector<2x96xf32> to vector<2x32xf32>
    %350 = vector.extract_strided_slice %336 {offsets = [0, 64], sizes = [2, 32], strides = [1, 1]} : vector<2x96xf32> to vector<2x32xf32>
    %351 = arith.mulf %347, %350 : vector<2x32xf32>
    %352 = arith.addf %349, %351 : vector<2x32xf32>
    %353 = math.tanh %352 : vector<2x32xf32>
    %cst_94 = arith.constant 1.000000e+00 : f32
    %354 = vector.broadcast %cst_94 : f32 to vector<2x32xf32>
    %355 = arith.subf %354, %348 : vector<2x32xf32>
    %356 = arith.mulf %355, %353 : vector<2x32xf32>
    %357 = arith.mulf %348, %334 : vector<2x32xf32>
    %358 = arith.addf %356, %357 : vector<2x32xf32>
    %cst_95 = arith.constant dense<0.000000e+00> : vector<2x96xf32>
    %359 = tpu.matmul %358, %298, %cst_95 {dimension_numbers = #tpu.dot_dimension_numbers<[1], [0], [0], [1], [0, 0, 1, 1], [], []>} : vector<2x32xf32>, vector<32x96xf32>, vector<2x96xf32> -> vector<2x96xf32>
    %360 = arith.addf %359, %309 : vector<2x96xf32>
    %361 = vector.extract_strided_slice %307 {offsets = [0, 2, 0], sizes = [2, 1, 96], strides = [1, 1, 1]} : vector<2x8x96xf32> to vector<2x1x96xf32>
    %362 = vector.shape_cast %361 : vector<2x1x96xf32> to vector<2x96xf32>
    %363 = vector.extract_strided_slice %362 {offsets = [0, 0], sizes = [2, 64], strides = [1, 1]} : vector<2x96xf32> to vector<2x64xf32>
    %364 = vector.extract_strided_slice %360 {offsets = [0, 0], sizes = [2, 64], strides = [1, 1]} : vector<2x96xf32> to vector<2x64xf32>
    %365 = arith.addf %363, %364 : vector<2x64xf32>
    %366 = arith.negf %365 : vector<2x64xf32>
    %367 = math.exp %366 : vector<2x64xf32>
    %cst_96 = arith.constant 1.000000e+00 : f32
    %368 = vector.broadcast %cst_96 : f32 to vector<2x64xf32>
    %369 = arith.addf %368, %367 : vector<2x64xf32>
    %370 = arith.divf %368, %369 : vector<2x64xf32>
    %371 = vector.extract_strided_slice %370 {offsets = [0, 0], sizes = [2, 32], strides = [1, 1]} : vector<2x64xf32> to vector<2x32xf32>
    %372 = vector.extract_strided_slice %370 {offsets = [0, 32], sizes = [2, 32], strides = [1, 1]} : vector<2x64xf32> to vector<2x32xf32>
    %373 = vector.extract_strided_slice %362 {offsets = [0, 64], sizes = [2, 32], strides = [1, 1]} : vector<2x96xf32> to vector<2x32xf32>
    %374 = vector.extract_strided_slice %360 {offsets = [0, 64], sizes = [2, 32], strides = [1, 1]} : vector<2x96xf32> to vector<2x32xf32>
    %375 = arith.mulf %371, %374 : vector<2x32xf32>
    %376 = arith.addf %373, %375 : vector<2x32xf32>
    %377 = math.tanh %376 : vector<2x32xf32>
    %cst_97 = arith.constant 1.000000e+00 : f32
    %378 = vector.broadcast %cst_97 : f32 to vector<2x32xf32>
    %379 = arith.subf %378, %372 : vector<2x32xf32>
    %380 = arith.mulf %379, %377 : vector<2x32xf32>
    %381 = arith.mulf %372, %358 : vector<2x32xf32>
    %382 = arith.addf %380, %381 : vector<2x32xf32>
    %cst_98 = arith.constant dense<0.000000e+00> : vector<2x96xf32>
    %383 = tpu.matmul %382, %298, %cst_98 {dimension_numbers = #tpu.dot_dimension_numbers<[1], [0], [0], [1], [0, 0, 1, 1], [], []>} : vector<2x32xf32>, vector<32x96xf32>, vector<2x96xf32> -> vector<2x96xf32>
    %384 = arith.addf %383, %309 : vector<2x96xf32>
    %385 = vector.extract_strided_slice %307 {offsets = [0, 3, 0], sizes = [2, 1, 96], strides = [1, 1, 1]} : vector<2x8x96xf32> to vector<2x1x96xf32>
    %386 = vector.shape_cast %385 : vector<2x1x96xf32> to vector<2x96xf32>
    %387 = vector.extract_strided_slice %386 {offsets = [0, 0], sizes = [2, 64], strides = [1, 1]} : vector<2x96xf32> to vector<2x64xf32>
    %388 = vector.extract_strided_slice %384 {offsets = [0, 0], sizes = [2, 64], strides = [1, 1]} : vector<2x96xf32> to vector<2x64xf32>
    %389 = arith.addf %387, %388 : vector<2x64xf32>
    %390 = arith.negf %389 : vector<2x64xf32>
    %391 = math.exp %390 : vector<2x64xf32>
    %cst_99 = arith.constant 1.000000e+00 : f32
    %392 = vector.broadcast %cst_99 : f32 to vector<2x64xf32>
    %393 = arith.addf %392, %391 : vector<2x64xf32>
    %394 = arith.divf %392, %393 : vector<2x64xf32>
    %395 = vector.extract_strided_slice %394 {offsets = [0, 0], sizes = [2, 32], strides = [1, 1]} : vector<2x64xf32> to vector<2x32xf32>
    %396 = vector.extract_strided_slice %394 {offsets = [0, 32], sizes = [2, 32], strides = [1, 1]} : vector<2x64xf32> to vector<2x32xf32>
    %397 = vector.extract_strided_slice %386 {offsets = [0, 64], sizes = [2, 32], strides = [1, 1]} : vector<2x96xf32> to vector<2x32xf32>
    %398 = vector.extract_strided_slice %384 {offsets = [0, 64], sizes = [2, 32], strides = [1, 1]} : vector<2x96xf32> to vector<2x32xf32>
    %399 = arith.mulf %395, %398 : vector<2x32xf32>
    %400 = arith.addf %397, %399 : vector<2x32xf32>
    %401 = math.tanh %400 : vector<2x32xf32>
    %cst_100 = arith.constant 1.000000e+00 : f32
    %402 = vector.broadcast %cst_100 : f32 to vector<2x32xf32>
    %403 = arith.subf %402, %396 : vector<2x32xf32>
    %404 = arith.mulf %403, %401 : vector<2x32xf32>
    %405 = arith.mulf %396, %382 : vector<2x32xf32>
    %406 = arith.addf %404, %405 : vector<2x32xf32>
    %cst_101 = arith.constant dense<0.000000e+00> : vector<2x96xf32>
    %407 = tpu.matmul %406, %298, %cst_101 {dimension_numbers = #tpu.dot_dimension_numbers<[1], [0], [0], [1], [0, 0, 1, 1], [], []>} : vector<2x32xf32>, vector<32x96xf32>, vector<2x96xf32> -> vector<2x96xf32>
    %408 = arith.addf %407, %309 : vector<2x96xf32>
    %409 = vector.extract_strided_slice %307 {offsets = [0, 4, 0], sizes = [2, 1, 96], strides = [1, 1, 1]} : vector<2x8x96xf32> to vector<2x1x96xf32>
    %410 = vector.shape_cast %409 : vector<2x1x96xf32> to vector<2x96xf32>
    %411 = vector.extract_strided_slice %410 {offsets = [0, 0], sizes = [2, 64], strides = [1, 1]} : vector<2x96xf32> to vector<2x64xf32>
    %412 = vector.extract_strided_slice %408 {offsets = [0, 0], sizes = [2, 64], strides = [1, 1]} : vector<2x96xf32> to vector<2x64xf32>
    %413 = arith.addf %411, %412 : vector<2x64xf32>
    %414 = arith.negf %413 : vector<2x64xf32>
    %415 = math.exp %414 : vector<2x64xf32>
    %cst_102 = arith.constant 1.000000e+00 : f32
    %416 = vector.broadcast %cst_102 : f32 to vector<2x64xf32>
    %417 = arith.addf %416, %415 : vector<2x64xf32>
    %418 = arith.divf %416, %417 : vector<2x64xf32>
    %419 = vector.extract_strided_slice %418 {offsets = [0, 0], sizes = [2, 32], strides = [1, 1]} : vector<2x64xf32> to vector<2x32xf32>
    %420 = vector.extract_strided_slice %418 {offsets = [0, 32], sizes = [2, 32], strides = [1, 1]} : vector<2x64xf32> to vector<2x32xf32>
    %421 = vector.extract_strided_slice %410 {offsets = [0, 64], sizes = [2, 32], strides = [1, 1]} : vector<2x96xf32> to vector<2x32xf32>
    %422 = vector.extract_strided_slice %408 {offsets = [0, 64], sizes = [2, 32], strides = [1, 1]} : vector<2x96xf32> to vector<2x32xf32>
    %423 = arith.mulf %419, %422 : vector<2x32xf32>
    %424 = arith.addf %421, %423 : vector<2x32xf32>
    %425 = math.tanh %424 : vector<2x32xf32>
    %cst_103 = arith.constant 1.000000e+00 : f32
    %426 = vector.broadcast %cst_103 : f32 to vector<2x32xf32>
    %427 = arith.subf %426, %420 : vector<2x32xf32>
    %428 = arith.mulf %427, %425 : vector<2x32xf32>
    %429 = arith.mulf %420, %406 : vector<2x32xf32>
    %430 = arith.addf %428, %429 : vector<2x32xf32>
    %cst_104 = arith.constant dense<0.000000e+00> : vector<2x96xf32>
    %431 = tpu.matmul %430, %298, %cst_104 {dimension_numbers = #tpu.dot_dimension_numbers<[1], [0], [0], [1], [0, 0, 1, 1], [], []>} : vector<2x32xf32>, vector<32x96xf32>, vector<2x96xf32> -> vector<2x96xf32>
    %432 = arith.addf %431, %309 : vector<2x96xf32>
    %433 = vector.extract_strided_slice %307 {offsets = [0, 5, 0], sizes = [2, 1, 96], strides = [1, 1, 1]} : vector<2x8x96xf32> to vector<2x1x96xf32>
    %434 = vector.shape_cast %433 : vector<2x1x96xf32> to vector<2x96xf32>
    %435 = vector.extract_strided_slice %434 {offsets = [0, 0], sizes = [2, 64], strides = [1, 1]} : vector<2x96xf32> to vector<2x64xf32>
    %436 = vector.extract_strided_slice %432 {offsets = [0, 0], sizes = [2, 64], strides = [1, 1]} : vector<2x96xf32> to vector<2x64xf32>
    %437 = arith.addf %435, %436 : vector<2x64xf32>
    %438 = arith.negf %437 : vector<2x64xf32>
    %439 = math.exp %438 : vector<2x64xf32>
    %cst_105 = arith.constant 1.000000e+00 : f32
    %440 = vector.broadcast %cst_105 : f32 to vector<2x64xf32>
    %441 = arith.addf %440, %439 : vector<2x64xf32>
    %442 = arith.divf %440, %441 : vector<2x64xf32>
    %443 = vector.extract_strided_slice %442 {offsets = [0, 0], sizes = [2, 32], strides = [1, 1]} : vector<2x64xf32> to vector<2x32xf32>
    %444 = vector.extract_strided_slice %442 {offsets = [0, 32], sizes = [2, 32], strides = [1, 1]} : vector<2x64xf32> to vector<2x32xf32>
    %445 = vector.extract_strided_slice %434 {offsets = [0, 64], sizes = [2, 32], strides = [1, 1]} : vector<2x96xf32> to vector<2x32xf32>
    %446 = vector.extract_strided_slice %432 {offsets = [0, 64], sizes = [2, 32], strides = [1, 1]} : vector<2x96xf32> to vector<2x32xf32>
    %447 = arith.mulf %443, %446 : vector<2x32xf32>
    %448 = arith.addf %445, %447 : vector<2x32xf32>
    %449 = math.tanh %448 : vector<2x32xf32>
    %cst_106 = arith.constant 1.000000e+00 : f32
    %450 = vector.broadcast %cst_106 : f32 to vector<2x32xf32>
    %451 = arith.subf %450, %444 : vector<2x32xf32>
    %452 = arith.mulf %451, %449 : vector<2x32xf32>
    %453 = arith.mulf %444, %430 : vector<2x32xf32>
    %454 = arith.addf %452, %453 : vector<2x32xf32>
    %cst_107 = arith.constant dense<0.000000e+00> : vector<2x96xf32>
    %455 = tpu.matmul %454, %298, %cst_107 {dimension_numbers = #tpu.dot_dimension_numbers<[1], [0], [0], [1], [0, 0, 1, 1], [], []>} : vector<2x32xf32>, vector<32x96xf32>, vector<2x96xf32> -> vector<2x96xf32>
    %456 = arith.addf %455, %309 : vector<2x96xf32>
    %457 = vector.extract_strided_slice %307 {offsets = [0, 6, 0], sizes = [2, 1, 96], strides = [1, 1, 1]} : vector<2x8x96xf32> to vector<2x1x96xf32>
    %458 = vector.shape_cast %457 : vector<2x1x96xf32> to vector<2x96xf32>
    %459 = vector.extract_strided_slice %458 {offsets = [0, 0], sizes = [2, 64], strides = [1, 1]} : vector<2x96xf32> to vector<2x64xf32>
    %460 = vector.extract_strided_slice %456 {offsets = [0, 0], sizes = [2, 64], strides = [1, 1]} : vector<2x96xf32> to vector<2x64xf32>
    %461 = arith.addf %459, %460 : vector<2x64xf32>
    %462 = arith.negf %461 : vector<2x64xf32>
    %463 = math.exp %462 : vector<2x64xf32>
    %cst_108 = arith.constant 1.000000e+00 : f32
    %464 = vector.broadcast %cst_108 : f32 to vector<2x64xf32>
    %465 = arith.addf %464, %463 : vector<2x64xf32>
    %466 = arith.divf %464, %465 : vector<2x64xf32>
    %467 = vector.extract_strided_slice %466 {offsets = [0, 0], sizes = [2, 32], strides = [1, 1]} : vector<2x64xf32> to vector<2x32xf32>
    %468 = vector.extract_strided_slice %466 {offsets = [0, 32], sizes = [2, 32], strides = [1, 1]} : vector<2x64xf32> to vector<2x32xf32>
    %469 = vector.extract_strided_slice %458 {offsets = [0, 64], sizes = [2, 32], strides = [1, 1]} : vector<2x96xf32> to vector<2x32xf32>
    %470 = vector.extract_strided_slice %456 {offsets = [0, 64], sizes = [2, 32], strides = [1, 1]} : vector<2x96xf32> to vector<2x32xf32>
    %471 = arith.mulf %467, %470 : vector<2x32xf32>
    %472 = arith.addf %469, %471 : vector<2x32xf32>
    %473 = math.tanh %472 : vector<2x32xf32>
    %cst_109 = arith.constant 1.000000e+00 : f32
    %474 = vector.broadcast %cst_109 : f32 to vector<2x32xf32>
    %475 = arith.subf %474, %468 : vector<2x32xf32>
    %476 = arith.mulf %475, %473 : vector<2x32xf32>
    %477 = arith.mulf %468, %454 : vector<2x32xf32>
    %478 = arith.addf %476, %477 : vector<2x32xf32>
    %cst_110 = arith.constant dense<0.000000e+00> : vector<2x96xf32>
    %479 = tpu.matmul %478, %298, %cst_110 {dimension_numbers = #tpu.dot_dimension_numbers<[1], [0], [0], [1], [0, 0, 1, 1], [], []>} : vector<2x32xf32>, vector<32x96xf32>, vector<2x96xf32> -> vector<2x96xf32>
    %480 = arith.addf %479, %309 : vector<2x96xf32>
    %481 = vector.extract_strided_slice %307 {offsets = [0, 7, 0], sizes = [2, 1, 96], strides = [1, 1, 1]} : vector<2x8x96xf32> to vector<2x1x96xf32>
    %482 = vector.shape_cast %481 : vector<2x1x96xf32> to vector<2x96xf32>
    %483 = vector.extract_strided_slice %482 {offsets = [0, 0], sizes = [2, 64], strides = [1, 1]} : vector<2x96xf32> to vector<2x64xf32>
    %484 = vector.extract_strided_slice %480 {offsets = [0, 0], sizes = [2, 64], strides = [1, 1]} : vector<2x96xf32> to vector<2x64xf32>
    %485 = arith.addf %483, %484 : vector<2x64xf32>
    %486 = arith.negf %485 : vector<2x64xf32>
    %487 = math.exp %486 : vector<2x64xf32>
    %cst_111 = arith.constant 1.000000e+00 : f32
    %488 = vector.broadcast %cst_111 : f32 to vector<2x64xf32>
    %489 = arith.addf %488, %487 : vector<2x64xf32>
    %490 = arith.divf %488, %489 : vector<2x64xf32>
    %491 = vector.extract_strided_slice %490 {offsets = [0, 0], sizes = [2, 32], strides = [1, 1]} : vector<2x64xf32> to vector<2x32xf32>
    %492 = vector.extract_strided_slice %490 {offsets = [0, 32], sizes = [2, 32], strides = [1, 1]} : vector<2x64xf32> to vector<2x32xf32>
    %493 = vector.extract_strided_slice %482 {offsets = [0, 64], sizes = [2, 32], strides = [1, 1]} : vector<2x96xf32> to vector<2x32xf32>
    %494 = vector.extract_strided_slice %480 {offsets = [0, 64], sizes = [2, 32], strides = [1, 1]} : vector<2x96xf32> to vector<2x32xf32>
    %495 = arith.mulf %491, %494 : vector<2x32xf32>
    %496 = arith.addf %493, %495 : vector<2x32xf32>
    %497 = math.tanh %496 : vector<2x32xf32>
    %cst_112 = arith.constant 1.000000e+00 : f32
    %498 = vector.broadcast %cst_112 : f32 to vector<2x32xf32>
    %499 = arith.subf %498, %492 : vector<2x32xf32>
    %500 = arith.mulf %499, %497 : vector<2x32xf32>
    %501 = arith.mulf %492, %478 : vector<2x32xf32>
    %502 = arith.addf %500, %501 : vector<2x32xf32>
    %503 = vector.shape_cast %334 : vector<2x32xf32> to vector<2x1x32xf32>
    %504 = vector.shape_cast %358 : vector<2x32xf32> to vector<2x1x32xf32>
    %505 = vector.shape_cast %382 : vector<2x32xf32> to vector<2x1x32xf32>
    %506 = vector.shape_cast %406 : vector<2x32xf32> to vector<2x1x32xf32>
    %507 = vector.shape_cast %430 : vector<2x32xf32> to vector<2x1x32xf32>
    %508 = vector.shape_cast %454 : vector<2x32xf32> to vector<2x1x32xf32>
    %509 = vector.shape_cast %478 : vector<2x32xf32> to vector<2x1x32xf32>
    %510 = vector.shape_cast %502 : vector<2x32xf32> to vector<2x1x32xf32>
    %511 = tpu.concatenate %503, %504, %505, %506, %507, %508, %509, %510 in 1 : vector<2x1x32xf32>, vector<2x1x32xf32>, vector<2x1x32xf32>, vector<2x1x32xf32>, vector<2x1x32xf32>, vector<2x1x32xf32>, vector<2x1x32xf32>, vector<2x1x32xf32> -> vector<2x8x32xf32>
    %cst_113 = arith.constant dense<0xFF800000> : vector<2x8xf32>
    %512 = vector.multi_reduction <maximumf>, %511, %cst_113 [2] : vector<2x8x32xf32> to vector<2x8xf32>
    %513 = vector.shape_cast %512 : vector<2x8xf32> to vector<2x8x1xf32>
    %514 = vector.broadcast %513 : vector<2x8x1xf32> to vector<2x8x32xf32>
    %515 = arith.subf %511, %514 : vector<2x8x32xf32>
    %516 = math.exp %515 : vector<2x8x32xf32>
    %cst_114 = arith.constant dense<0.000000e+00> : vector<2x8xf32>
    %517 = vector.multi_reduction <add>, %516, %cst_114 [2] : vector<2x8x32xf32> to vector<2x8xf32>
    %518 = vector.shape_cast %517 : vector<2x8xf32> to vector<2x8x1xf32>
    %519 = tpu.reciprocal %518 {approx = true} : vector<2x8x1xf32> -> vector<2x8x1xf32>
    %520 = vector.broadcast %519 : vector<2x8x1xf32> to vector<2x8x32xf32>
    %521 = arith.mulf %516, %520 : vector<2x8x32xf32>
    %522 = arith.mulf %293, %521 : vector<2x8x32xf32>
    %523 = arith.addf %293, %522 : vector<2x8x32xf32>
    "tpu.trace_start"() <{level = 10 : i32, message = "bqd,bkd->bqk"}> : () -> ()
    %cst_115 = arith.constant dense<0.000000e+00> : vector<2x8x8xf32>
    %524 = tpu.matmul %293, %2, %cst_115 {dimension_numbers = #tpu.dot_dimension_numbers<[2], [2], [1], [1], [0, 0, 0, 1, 1, 1], [0], [0]>} : vector<2x8x32xf32>, vector<2x8x32xf32>, vector<2x8x8xf32> -> vector<2x8x8xf32>
    "tpu.trace_stop"() : () -> ()
    %cst_116 = arith.constant 0.176776692 : f32
    %525 = vector.broadcast %cst_116 : f32 to vector<2x8x8xf32>
    %526 = arith.mulf %524, %525 : vector<2x8x8xf32>
    %cst_117 = arith.constant dense<0xFF800000> : vector<2x8xf32>
    %527 = vector.multi_reduction <maximumf>, %526, %cst_117 [2] : vector<2x8x8xf32> to vector<2x8xf32>
    %528 = vector.shape_cast %527 : vector<2x8xf32> to vector<2x8x1xf32>
    %529 = vector.broadcast %528 : vector<2x8x1xf32> to vector<2x8x8xf32>
    %530 = arith.subf %526, %529 : vector<2x8x8xf32>
    %531 = math.exp %530 : vector<2x8x8xf32>
    %cst_118 = arith.constant dense<0.000000e+00> : vector<2x8xf32>
    %532 = vector.multi_reduction <add>, %531, %cst_118 [2] : vector<2x8x8xf32> to vector<2x8xf32>
    %533 = vector.shape_cast %532 : vector<2x8xf32> to vector<2x8x1xf32>
    %534 = tpu.reciprocal %533 {approx = true} : vector<2x8x1xf32> -> vector<2x8x1xf32>
    %535 = vector.broadcast %534 : vector<2x8x1xf32> to vector<2x8x8xf32>
    %536 = arith.mulf %531, %535 : vector<2x8x8xf32>
    "tpu.trace_start"() <{level = 10 : i32, message = "bqk,bkd->bqd"}> : () -> ()
    %cst_119 = arith.constant dense<0.000000e+00> : vector<2x8x32xf32>
    %537 = tpu.matmul %536, %2, %cst_119 {dimension_numbers = #tpu.dot_dimension_numbers<[2], [1], [1], [2], [0, 0, 0, 1, 1, 2], [0], [0]>} : vector<2x8x8xf32>, vector<2x8x32xf32>, vector<2x8x32xf32> -> vector<2x8x32xf32>
    "tpu.trace_stop"() : () -> ()
    %538 = arith.addf %523, %537 : vector<2x8x32xf32>
    %539 = vector.shape_cast %538 : vector<2x8x32xf32> to vector<16x32xf32>
    %cst_120 = arith.constant dense<0.000000e+00> : vector<16x32xf32>
    %540 = tpu.matmul %0, %539, %cst_120 {dimension_numbers = #tpu.dot_dimension_numbers<[1], [0], [0], [1], [0, 0, 1, 1], [], []>} : vector<16x16xf32>, vector<16x32xf32>, vector<16x32xf32> -> vector<16x32xf32>
    %541 = arith.subf %539, %540 : vector<16x32xf32>
    %542 = vector.shape_cast %541 : vector<16x32xf32> to vector<2x8x32xf32>
    %543 = vector.shape_cast %540 : vector<16x32xf32> to vector<2x8x32xf32>
    %c0_121 = arith.constant 0 : index
    %c0_122 = arith.constant 0 : index
    %544 = vector.load %arg19[%c0_121, %c0_122] : memref<32x64xf32, #tpu.memory_space<vmem>>, vector<32x64xf32>
    %c0_123 = arith.constant 0 : index
    %c0_124 = arith.constant 0 : index
    %545 = vector.load %arg20[%c0_123, %c0_124] : memref<1x64xf32, #tpu.memory_space<vmem>>, vector<1x64xf32>
    %c0_125 = arith.constant 0 : index
    %c0_126 = arith.constant 0 : index
    %546 = vector.load %arg21[%c0_125, %c0_126] : memref<64x32xf32, #tpu.memory_space<vmem>>, vector<64x32xf32>
    %c0_127 = arith.constant 0 : index
    %c0_128 = arith.constant 0 : index
    %547 = vector.load %arg22[%c0_127, %c0_128] : memref<1x32xf32, #tpu.memory_space<vmem>>, vector<1x32xf32>
    %548 = vector.shape_cast %542 : vector<2x8x32xf32> to vector<16x32xf32>
    %cst_129 = arith.constant dense<0.000000e+00> : vector<16x64xf32>
    %549 = tpu.matmul %548, %544, %cst_129 {dimension_numbers = #tpu.dot_dimension_numbers<[1], [0], [0], [1], [0, 0, 1, 1], [], []>} : vector<16x32xf32>, vector<32x64xf32>, vector<16x64xf32> -> vector<16x64xf32>
    %550 = vector.broadcast %545 : vector<1x64xf32> to vector<16x64xf32>
    %551 = arith.addf %549, %550 : vector<16x64xf32>
    %cst_130 = arith.constant 0.000000e+00 : f32
    %552 = vector.broadcast %cst_130 : f32 to vector<16x64xf32>
    %553 = arith.maximumf %551, %552 : vector<16x64xf32>
    %cst_131 = arith.constant dense<0.000000e+00> : vector<16x32xf32>
    %554 = tpu.matmul %553, %546, %cst_131 {dimension_numbers = #tpu.dot_dimension_numbers<[1], [0], [0], [1], [0, 0, 1, 1], [], []>} : vector<16x64xf32>, vector<64x32xf32>, vector<16x32xf32> -> vector<16x32xf32>
    %555 = vector.broadcast %547 : vector<1x32xf32> to vector<16x32xf32>
    %556 = arith.addf %554, %555 : vector<16x32xf32>
    %557 = vector.shape_cast %556 : vector<16x32xf32> to vector<2x8x32xf32>
    %558 = arith.addf %542, %557 : vector<2x8x32xf32>
    %559 = vector.shape_cast %558 : vector<2x8x32xf32> to vector<16x32xf32>
    %cst_132 = arith.constant dense<0.000000e+00> : vector<16x32xf32>
    %560 = tpu.matmul %0, %559, %cst_132 {dimension_numbers = #tpu.dot_dimension_numbers<[1], [0], [0], [1], [0, 0, 1, 1], [], []>} : vector<16x16xf32>, vector<16x32xf32>, vector<16x32xf32> -> vector<16x32xf32>
    %561 = arith.subf %559, %560 : vector<16x32xf32>
    %562 = vector.shape_cast %561 : vector<16x32xf32> to vector<2x8x32xf32>
    %563 = vector.shape_cast %560 : vector<16x32xf32> to vector<2x8x32xf32>
    %564 = arith.addf %562, %289 : vector<2x8x32xf32>
    %cst_133 = arith.constant 5.000000e-01 : f32
    %565 = vector.broadcast %cst_133 : f32 to vector<2x8x32xf32>
    %566 = arith.mulf %564, %565 : vector<2x8x32xf32>
    %567 = arith.addf %294, %543 : vector<2x8x32xf32>
    %568 = arith.addf %567, %563 : vector<2x8x32xf32>
    %c0_134 = arith.constant 0 : index
    %c0_135 = arith.constant 0 : index
    %c0_136 = arith.constant 0 : index
    %569 = vector.load %arg11[%c0_134, %c0_135, %c0_136] : memref<1x32x96xf32, #tpu.memory_space<vmem>>, vector<1x32x96xf32>
    %570 = vector.shape_cast %569 : vector<1x32x96xf32> to vector<32x96xf32>
    %c0_137 = arith.constant 0 : index
    %c0_138 = arith.constant 0 : index
    %c0_139 = arith.constant 0 : index
    %571 = vector.load %arg12[%c0_137, %c0_138, %c0_139] : memref<1x32x96xf32, #tpu.memory_space<vmem>>, vector<1x32x96xf32>
    %572 = vector.shape_cast %571 : vector<1x32x96xf32> to vector<32x96xf32>
    %c0_140 = arith.constant 0 : index
    %c0_141 = arith.constant 0 : index
    %c0_142 = arith.constant 0 : index
    %573 = vector.load %arg13[%c0_140, %c0_141, %c0_142] : memref<1x1x96xf32, #tpu.memory_space<vmem>>, vector<1x1x96xf32>
    %574 = vector.shape_cast %573 : vector<1x1x96xf32> to vector<1x96xf32>
    %c0_143 = arith.constant 0 : index
    %c0_144 = arith.constant 0 : index
    %c0_145 = arith.constant 0 : index
    %575 = vector.load %arg14[%c0_143, %c0_144, %c0_145] : memref<1x1x96xf32, #tpu.memory_space<vmem>>, vector<1x1x96xf32>
    %576 = vector.shape_cast %575 : vector<1x1x96xf32> to vector<1x96xf32>
    %577 = vector.shape_cast %568 : vector<2x8x32xf32> to vector<16x32xf32>
    %cst_146 = arith.constant dense<0.000000e+00> : vector<16x96xf32>
    %578 = tpu.matmul %577, %570, %cst_146 {dimension_numbers = #tpu.dot_dimension_numbers<[1], [0], [0], [1], [0, 0, 1, 1], [], []>} : vector<16x32xf32>, vector<32x96xf32>, vector<16x96xf32> -> vector<16x96xf32>
    %579 = vector.broadcast %574 : vector<1x96xf32> to vector<16x96xf32>
    %580 = arith.addf %578, %579 : vector<16x96xf32>
    %581 = vector.shape_cast %580 : vector<16x96xf32> to vector<2x8x96xf32>
    %582 = vector.shape_cast %576 : vector<1x96xf32> to vector<1x96xf32>
    %583 = vector.broadcast %582 : vector<1x96xf32> to vector<2x96xf32>
    %cst_147 = arith.constant 0.000000e+00 : f32
    %584 = vector.broadcast %cst_147 : f32 to vector<2x32xf32>
    %cst_148 = arith.constant dense<0.000000e+00> : vector<2x96xf32>
    %585 = tpu.matmul %584, %572, %cst_148 {dimension_numbers = #tpu.dot_dimension_numbers<[1], [0], [0], [1], [0, 0, 1, 1], [], []>} : vector<2x32xf32>, vector<32x96xf32>, vector<2x96xf32> -> vector<2x96xf32>
    %586 = arith.addf %585, %583 : vector<2x96xf32>
    %587 = vector.extract_strided_slice %581 {offsets = [0, 0, 0], sizes = [2, 1, 96], strides = [1, 1, 1]} : vector<2x8x96xf32> to vector<2x1x96xf32>
    %588 = vector.shape_cast %587 : vector<2x1x96xf32> to vector<2x96xf32>
    %589 = vector.extract_strided_slice %588 {offsets = [0, 0], sizes = [2, 64], strides = [1, 1]} : vector<2x96xf32> to vector<2x64xf32>
    %590 = vector.extract_strided_slice %586 {offsets = [0, 0], sizes = [2, 64], strides = [1, 1]} : vector<2x96xf32> to vector<2x64xf32>
    %591 = arith.addf %589, %590 : vector<2x64xf32>
    %592 = arith.negf %591 : vector<2x64xf32>
    %593 = math.exp %592 : vector<2x64xf32>
    %cst_149 = arith.constant 1.000000e+00 : f32
    %594 = vector.broadcast %cst_149 : f32 to vector<2x64xf32>
    %595 = arith.addf %594, %593 : vector<2x64xf32>
    %596 = arith.divf %594, %595 : vector<2x64xf32>
    %597 = vector.extract_strided_slice %596 {offsets = [0, 0], sizes = [2, 32], strides = [1, 1]} : vector<2x64xf32> to vector<2x32xf32>
    %598 = vector.extract_strided_slice %596 {offsets = [0, 32], sizes = [2, 32], strides = [1, 1]} : vector<2x64xf32> to vector<2x32xf32>
    %599 = vector.extract_strided_slice %588 {offsets = [0, 64], sizes = [2, 32], strides = [1, 1]} : vector<2x96xf32> to vector<2x32xf32>
    %600 = vector.extract_strided_slice %586 {offsets = [0, 64], sizes = [2, 32], strides = [1, 1]} : vector<2x96xf32> to vector<2x32xf32>
    %601 = arith.mulf %597, %600 : vector<2x32xf32>
    %602 = arith.addf %599, %601 : vector<2x32xf32>
    %603 = math.tanh %602 : vector<2x32xf32>
    %cst_150 = arith.constant 1.000000e+00 : f32
    %604 = vector.broadcast %cst_150 : f32 to vector<2x32xf32>
    %605 = arith.subf %604, %598 : vector<2x32xf32>
    %606 = arith.mulf %605, %603 : vector<2x32xf32>
    %607 = arith.mulf %598, %584 : vector<2x32xf32>
    %608 = arith.addf %606, %607 : vector<2x32xf32>
    %cst_151 = arith.constant dense<0.000000e+00> : vector<2x96xf32>
    %609 = tpu.matmul %608, %572, %cst_151 {dimension_numbers = #tpu.dot_dimension_numbers<[1], [0], [0], [1], [0, 0, 1, 1], [], []>} : vector<2x32xf32>, vector<32x96xf32>, vector<2x96xf32> -> vector<2x96xf32>
    %610 = arith.addf %609, %583 : vector<2x96xf32>
    %611 = vector.extract_strided_slice %581 {offsets = [0, 1, 0], sizes = [2, 1, 96], strides = [1, 1, 1]} : vector<2x8x96xf32> to vector<2x1x96xf32>
    %612 = vector.shape_cast %611 : vector<2x1x96xf32> to vector<2x96xf32>
    %613 = vector.extract_strided_slice %612 {offsets = [0, 0], sizes = [2, 64], strides = [1, 1]} : vector<2x96xf32> to vector<2x64xf32>
    %614 = vector.extract_strided_slice %610 {offsets = [0, 0], sizes = [2, 64], strides = [1, 1]} : vector<2x96xf32> to vector<2x64xf32>
    %615 = arith.addf %613, %614 : vector<2x64xf32>
    %616 = arith.negf %615 : vector<2x64xf32>
    %617 = math.exp %616 : vector<2x64xf32>
    %cst_152 = arith.constant 1.000000e+00 : f32
    %618 = vector.broadcast %cst_152 : f32 to vector<2x64xf32>
    %619 = arith.addf %618, %617 : vector<2x64xf32>
    %620 = arith.divf %618, %619 : vector<2x64xf32>
    %621 = vector.extract_strided_slice %620 {offsets = [0, 0], sizes = [2, 32], strides = [1, 1]} : vector<2x64xf32> to vector<2x32xf32>
    %622 = vector.extract_strided_slice %620 {offsets = [0, 32], sizes = [2, 32], strides = [1, 1]} : vector<2x64xf32> to vector<2x32xf32>
    %623 = vector.extract_strided_slice %612 {offsets = [0, 64], sizes = [2, 32], strides = [1, 1]} : vector<2x96xf32> to vector<2x32xf32>
    %624 = vector.extract_strided_slice %610 {offsets = [0, 64], sizes = [2, 32], strides = [1, 1]} : vector<2x96xf32> to vector<2x32xf32>
    %625 = arith.mulf %621, %624 : vector<2x32xf32>
    %626 = arith.addf %623, %625 : vector<2x32xf32>
    %627 = math.tanh %626 : vector<2x32xf32>
    %cst_153 = arith.constant 1.000000e+00 : f32
    %628 = vector.broadcast %cst_153 : f32 to vector<2x32xf32>
    %629 = arith.subf %628, %622 : vector<2x32xf32>
    %630 = arith.mulf %629, %627 : vector<2x32xf32>
    %631 = arith.mulf %622, %608 : vector<2x32xf32>
    %632 = arith.addf %630, %631 : vector<2x32xf32>
    %cst_154 = arith.constant dense<0.000000e+00> : vector<2x96xf32>
    %633 = tpu.matmul %632, %572, %cst_154 {dimension_numbers = #tpu.dot_dimension_numbers<[1], [0], [0], [1], [0, 0, 1, 1], [], []>} : vector<2x32xf32>, vector<32x96xf32>, vector<2x96xf32> -> vector<2x96xf32>
    %634 = arith.addf %633, %583 : vector<2x96xf32>
    %635 = vector.extract_strided_slice %581 {offsets = [0, 2, 0], sizes = [2, 1, 96], strides = [1, 1, 1]} : vector<2x8x96xf32> to vector<2x1x96xf32>
    %636 = vector.shape_cast %635 : vector<2x1x96xf32> to vector<2x96xf32>
    %637 = vector.extract_strided_slice %636 {offsets = [0, 0], sizes = [2, 64], strides = [1, 1]} : vector<2x96xf32> to vector<2x64xf32>
    %638 = vector.extract_strided_slice %634 {offsets = [0, 0], sizes = [2, 64], strides = [1, 1]} : vector<2x96xf32> to vector<2x64xf32>
    %639 = arith.addf %637, %638 : vector<2x64xf32>
    %640 = arith.negf %639 : vector<2x64xf32>
    %641 = math.exp %640 : vector<2x64xf32>
    %cst_155 = arith.constant 1.000000e+00 : f32
    %642 = vector.broadcast %cst_155 : f32 to vector<2x64xf32>
    %643 = arith.addf %642, %641 : vector<2x64xf32>
    %644 = arith.divf %642, %643 : vector<2x64xf32>
    %645 = vector.extract_strided_slice %644 {offsets = [0, 0], sizes = [2, 32], strides = [1, 1]} : vector<2x64xf32> to vector<2x32xf32>
    %646 = vector.extract_strided_slice %644 {offsets = [0, 32], sizes = [2, 32], strides = [1, 1]} : vector<2x64xf32> to vector<2x32xf32>
    %647 = vector.extract_strided_slice %636 {offsets = [0, 64], sizes = [2, 32], strides = [1, 1]} : vector<2x96xf32> to vector<2x32xf32>
    %648 = vector.extract_strided_slice %634 {offsets = [0, 64], sizes = [2, 32], strides = [1, 1]} : vector<2x96xf32> to vector<2x32xf32>
    %649 = arith.mulf %645, %648 : vector<2x32xf32>
    %650 = arith.addf %647, %649 : vector<2x32xf32>
    %651 = math.tanh %650 : vector<2x32xf32>
    %cst_156 = arith.constant 1.000000e+00 : f32
    %652 = vector.broadcast %cst_156 : f32 to vector<2x32xf32>
    %653 = arith.subf %652, %646 : vector<2x32xf32>
    %654 = arith.mulf %653, %651 : vector<2x32xf32>
    %655 = arith.mulf %646, %632 : vector<2x32xf32>
    %656 = arith.addf %654, %655 : vector<2x32xf32>
    %cst_157 = arith.constant dense<0.000000e+00> : vector<2x96xf32>
    %657 = tpu.matmul %656, %572, %cst_157 {dimension_numbers = #tpu.dot_dimension_numbers<[1], [0], [0], [1], [0, 0, 1, 1], [], []>} : vector<2x32xf32>, vector<32x96xf32>, vector<2x96xf32> -> vector<2x96xf32>
    %658 = arith.addf %657, %583 : vector<2x96xf32>
    %659 = vector.extract_strided_slice %581 {offsets = [0, 3, 0], sizes = [2, 1, 96], strides = [1, 1, 1]} : vector<2x8x96xf32> to vector<2x1x96xf32>
    %660 = vector.shape_cast %659 : vector<2x1x96xf32> to vector<2x96xf32>
    %661 = vector.extract_strided_slice %660 {offsets = [0, 0], sizes = [2, 64], strides = [1, 1]} : vector<2x96xf32> to vector<2x64xf32>
    %662 = vector.extract_strided_slice %658 {offsets = [0, 0], sizes = [2, 64], strides = [1, 1]} : vector<2x96xf32> to vector<2x64xf32>
    %663 = arith.addf %661, %662 : vector<2x64xf32>
    %664 = arith.negf %663 : vector<2x64xf32>
    %665 = math.exp %664 : vector<2x64xf32>
    %cst_158 = arith.constant 1.000000e+00 : f32
    %666 = vector.broadcast %cst_158 : f32 to vector<2x64xf32>
    %667 = arith.addf %666, %665 : vector<2x64xf32>
    %668 = arith.divf %666, %667 : vector<2x64xf32>
    %669 = vector.extract_strided_slice %668 {offsets = [0, 0], sizes = [2, 32], strides = [1, 1]} : vector<2x64xf32> to vector<2x32xf32>
    %670 = vector.extract_strided_slice %668 {offsets = [0, 32], sizes = [2, 32], strides = [1, 1]} : vector<2x64xf32> to vector<2x32xf32>
    %671 = vector.extract_strided_slice %660 {offsets = [0, 64], sizes = [2, 32], strides = [1, 1]} : vector<2x96xf32> to vector<2x32xf32>
    %672 = vector.extract_strided_slice %658 {offsets = [0, 64], sizes = [2, 32], strides = [1, 1]} : vector<2x96xf32> to vector<2x32xf32>
    %673 = arith.mulf %669, %672 : vector<2x32xf32>
    %674 = arith.addf %671, %673 : vector<2x32xf32>
    %675 = math.tanh %674 : vector<2x32xf32>
    %cst_159 = arith.constant 1.000000e+00 : f32
    %676 = vector.broadcast %cst_159 : f32 to vector<2x32xf32>
    %677 = arith.subf %676, %670 : vector<2x32xf32>
    %678 = arith.mulf %677, %675 : vector<2x32xf32>
    %679 = arith.mulf %670, %656 : vector<2x32xf32>
    %680 = arith.addf %678, %679 : vector<2x32xf32>
    %cst_160 = arith.constant dense<0.000000e+00> : vector<2x96xf32>
    %681 = tpu.matmul %680, %572, %cst_160 {dimension_numbers = #tpu.dot_dimension_numbers<[1], [0], [0], [1], [0, 0, 1, 1], [], []>} : vector<2x32xf32>, vector<32x96xf32>, vector<2x96xf32> -> vector<2x96xf32>
    %682 = arith.addf %681, %583 : vector<2x96xf32>
    %683 = vector.extract_strided_slice %581 {offsets = [0, 4, 0], sizes = [2, 1, 96], strides = [1, 1, 1]} : vector<2x8x96xf32> to vector<2x1x96xf32>
    %684 = vector.shape_cast %683 : vector<2x1x96xf32> to vector<2x96xf32>
    %685 = vector.extract_strided_slice %684 {offsets = [0, 0], sizes = [2, 64], strides = [1, 1]} : vector<2x96xf32> to vector<2x64xf32>
    %686 = vector.extract_strided_slice %682 {offsets = [0, 0], sizes = [2, 64], strides = [1, 1]} : vector<2x96xf32> to vector<2x64xf32>
    %687 = arith.addf %685, %686 : vector<2x64xf32>
    %688 = arith.negf %687 : vector<2x64xf32>
    %689 = math.exp %688 : vector<2x64xf32>
    %cst_161 = arith.constant 1.000000e+00 : f32
    %690 = vector.broadcast %cst_161 : f32 to vector<2x64xf32>
    %691 = arith.addf %690, %689 : vector<2x64xf32>
    %692 = arith.divf %690, %691 : vector<2x64xf32>
    %693 = vector.extract_strided_slice %692 {offsets = [0, 0], sizes = [2, 32], strides = [1, 1]} : vector<2x64xf32> to vector<2x32xf32>
    %694 = vector.extract_strided_slice %692 {offsets = [0, 32], sizes = [2, 32], strides = [1, 1]} : vector<2x64xf32> to vector<2x32xf32>
    %695 = vector.extract_strided_slice %684 {offsets = [0, 64], sizes = [2, 32], strides = [1, 1]} : vector<2x96xf32> to vector<2x32xf32>
    %696 = vector.extract_strided_slice %682 {offsets = [0, 64], sizes = [2, 32], strides = [1, 1]} : vector<2x96xf32> to vector<2x32xf32>
    %697 = arith.mulf %693, %696 : vector<2x32xf32>
    %698 = arith.addf %695, %697 : vector<2x32xf32>
    %699 = math.tanh %698 : vector<2x32xf32>
    %cst_162 = arith.constant 1.000000e+00 : f32
    %700 = vector.broadcast %cst_162 : f32 to vector<2x32xf32>
    %701 = arith.subf %700, %694 : vector<2x32xf32>
    %702 = arith.mulf %701, %699 : vector<2x32xf32>
    %703 = arith.mulf %694, %680 : vector<2x32xf32>
    %704 = arith.addf %702, %703 : vector<2x32xf32>
    %cst_163 = arith.constant dense<0.000000e+00> : vector<2x96xf32>
    %705 = tpu.matmul %704, %572, %cst_163 {dimension_numbers = #tpu.dot_dimension_numbers<[1], [0], [0], [1], [0, 0, 1, 1], [], []>} : vector<2x32xf32>, vector<32x96xf32>, vector<2x96xf32> -> vector<2x96xf32>
    %706 = arith.addf %705, %583 : vector<2x96xf32>
    %707 = vector.extract_strided_slice %581 {offsets = [0, 5, 0], sizes = [2, 1, 96], strides = [1, 1, 1]} : vector<2x8x96xf32> to vector<2x1x96xf32>
    %708 = vector.shape_cast %707 : vector<2x1x96xf32> to vector<2x96xf32>
    %709 = vector.extract_strided_slice %708 {offsets = [0, 0], sizes = [2, 64], strides = [1, 1]} : vector<2x96xf32> to vector<2x64xf32>
    %710 = vector.extract_strided_slice %706 {offsets = [0, 0], sizes = [2, 64], strides = [1, 1]} : vector<2x96xf32> to vector<2x64xf32>
    %711 = arith.addf %709, %710 : vector<2x64xf32>
    %712 = arith.negf %711 : vector<2x64xf32>
    %713 = math.exp %712 : vector<2x64xf32>
    %cst_164 = arith.constant 1.000000e+00 : f32
    %714 = vector.broadcast %cst_164 : f32 to vector<2x64xf32>
    %715 = arith.addf %714, %713 : vector<2x64xf32>
    %716 = arith.divf %714, %715 : vector<2x64xf32>
    %717 = vector.extract_strided_slice %716 {offsets = [0, 0], sizes = [2, 32], strides = [1, 1]} : vector<2x64xf32> to vector<2x32xf32>
    %718 = vector.extract_strided_slice %716 {offsets = [0, 32], sizes = [2, 32], strides = [1, 1]} : vector<2x64xf32> to vector<2x32xf32>
    %719 = vector.extract_strided_slice %708 {offsets = [0, 64], sizes = [2, 32], strides = [1, 1]} : vector<2x96xf32> to vector<2x32xf32>
    %720 = vector.extract_strided_slice %706 {offsets = [0, 64], sizes = [2, 32], strides = [1, 1]} : vector<2x96xf32> to vector<2x32xf32>
    %721 = arith.mulf %717, %720 : vector<2x32xf32>
    %722 = arith.addf %719, %721 : vector<2x32xf32>
    %723 = math.tanh %722 : vector<2x32xf32>
    %cst_165 = arith.constant 1.000000e+00 : f32
    %724 = vector.broadcast %cst_165 : f32 to vector<2x32xf32>
    %725 = arith.subf %724, %718 : vector<2x32xf32>
    %726 = arith.mulf %725, %723 : vector<2x32xf32>
    %727 = arith.mulf %718, %704 : vector<2x32xf32>
    %728 = arith.addf %726, %727 : vector<2x32xf32>
    %cst_166 = arith.constant dense<0.000000e+00> : vector<2x96xf32>
    %729 = tpu.matmul %728, %572, %cst_166 {dimension_numbers = #tpu.dot_dimension_numbers<[1], [0], [0], [1], [0, 0, 1, 1], [], []>} : vector<2x32xf32>, vector<32x96xf32>, vector<2x96xf32> -> vector<2x96xf32>
    %730 = arith.addf %729, %583 : vector<2x96xf32>
    %731 = vector.extract_strided_slice %581 {offsets = [0, 6, 0], sizes = [2, 1, 96], strides = [1, 1, 1]} : vector<2x8x96xf32> to vector<2x1x96xf32>
    %732 = vector.shape_cast %731 : vector<2x1x96xf32> to vector<2x96xf32>
    %733 = vector.extract_strided_slice %732 {offsets = [0, 0], sizes = [2, 64], strides = [1, 1]} : vector<2x96xf32> to vector<2x64xf32>
    %734 = vector.extract_strided_slice %730 {offsets = [0, 0], sizes = [2, 64], strides = [1, 1]} : vector<2x96xf32> to vector<2x64xf32>
    %735 = arith.addf %733, %734 : vector<2x64xf32>
    %736 = arith.negf %735 : vector<2x64xf32>
    %737 = math.exp %736 : vector<2x64xf32>
    %cst_167 = arith.constant 1.000000e+00 : f32
    %738 = vector.broadcast %cst_167 : f32 to vector<2x64xf32>
    %739 = arith.addf %738, %737 : vector<2x64xf32>
    %740 = arith.divf %738, %739 : vector<2x64xf32>
    %741 = vector.extract_strided_slice %740 {offsets = [0, 0], sizes = [2, 32], strides = [1, 1]} : vector<2x64xf32> to vector<2x32xf32>
    %742 = vector.extract_strided_slice %740 {offsets = [0, 32], sizes = [2, 32], strides = [1, 1]} : vector<2x64xf32> to vector<2x32xf32>
    %743 = vector.extract_strided_slice %732 {offsets = [0, 64], sizes = [2, 32], strides = [1, 1]} : vector<2x96xf32> to vector<2x32xf32>
    %744 = vector.extract_strided_slice %730 {offsets = [0, 64], sizes = [2, 32], strides = [1, 1]} : vector<2x96xf32> to vector<2x32xf32>
    %745 = arith.mulf %741, %744 : vector<2x32xf32>
    %746 = arith.addf %743, %745 : vector<2x32xf32>
    %747 = math.tanh %746 : vector<2x32xf32>
    %cst_168 = arith.constant 1.000000e+00 : f32
    %748 = vector.broadcast %cst_168 : f32 to vector<2x32xf32>
    %749 = arith.subf %748, %742 : vector<2x32xf32>
    %750 = arith.mulf %749, %747 : vector<2x32xf32>
    %751 = arith.mulf %742, %728 : vector<2x32xf32>
    %752 = arith.addf %750, %751 : vector<2x32xf32>
    %cst_169 = arith.constant dense<0.000000e+00> : vector<2x96xf32>
    %753 = tpu.matmul %752, %572, %cst_169 {dimension_numbers = #tpu.dot_dimension_numbers<[1], [0], [0], [1], [0, 0, 1, 1], [], []>} : vector<2x32xf32>, vector<32x96xf32>, vector<2x96xf32> -> vector<2x96xf32>
    %754 = arith.addf %753, %583 : vector<2x96xf32>
    %755 = vector.extract_strided_slice %581 {offsets = [0, 7, 0], sizes = [2, 1, 96], strides = [1, 1, 1]} : vector<2x8x96xf32> to vector<2x1x96xf32>
    %756 = vector.shape_cast %755 : vector<2x1x96xf32> to vector<2x96xf32>
    %757 = vector.extract_strided_slice %756 {offsets = [0, 0], sizes = [2, 64], strides = [1, 1]} : vector<2x96xf32> to vector<2x64xf32>
    %758 = vector.extract_strided_slice %754 {offsets = [0, 0], sizes = [2, 64], strides = [1, 1]} : vector<2x96xf32> to vector<2x64xf32>
    %759 = arith.addf %757, %758 : vector<2x64xf32>
    %760 = arith.negf %759 : vector<2x64xf32>
    %761 = math.exp %760 : vector<2x64xf32>
    %cst_170 = arith.constant 1.000000e+00 : f32
    %762 = vector.broadcast %cst_170 : f32 to vector<2x64xf32>
    %763 = arith.addf %762, %761 : vector<2x64xf32>
    %764 = arith.divf %762, %763 : vector<2x64xf32>
    %765 = vector.extract_strided_slice %764 {offsets = [0, 0], sizes = [2, 32], strides = [1, 1]} : vector<2x64xf32> to vector<2x32xf32>
    %766 = vector.extract_strided_slice %764 {offsets = [0, 32], sizes = [2, 32], strides = [1, 1]} : vector<2x64xf32> to vector<2x32xf32>
    %767 = vector.extract_strided_slice %756 {offsets = [0, 64], sizes = [2, 32], strides = [1, 1]} : vector<2x96xf32> to vector<2x32xf32>
    %768 = vector.extract_strided_slice %754 {offsets = [0, 64], sizes = [2, 32], strides = [1, 1]} : vector<2x96xf32> to vector<2x32xf32>
    %769 = arith.mulf %765, %768 : vector<2x32xf32>
    %770 = arith.addf %767, %769 : vector<2x32xf32>
    %771 = math.tanh %770 : vector<2x32xf32>
    %cst_171 = arith.constant 1.000000e+00 : f32
    %772 = vector.broadcast %cst_171 : f32 to vector<2x32xf32>
    %773 = arith.subf %772, %766 : vector<2x32xf32>
    %774 = arith.mulf %773, %771 : vector<2x32xf32>
    %775 = arith.mulf %766, %752 : vector<2x32xf32>
    %776 = arith.addf %774, %775 : vector<2x32xf32>
    %777 = vector.shape_cast %608 : vector<2x32xf32> to vector<2x1x32xf32>
    %778 = vector.shape_cast %632 : vector<2x32xf32> to vector<2x1x32xf32>
    %779 = vector.shape_cast %656 : vector<2x32xf32> to vector<2x1x32xf32>
    %780 = vector.shape_cast %680 : vector<2x32xf32> to vector<2x1x32xf32>
    %781 = vector.shape_cast %704 : vector<2x32xf32> to vector<2x1x32xf32>
    %782 = vector.shape_cast %728 : vector<2x32xf32> to vector<2x1x32xf32>
    %783 = vector.shape_cast %752 : vector<2x32xf32> to vector<2x1x32xf32>
    %784 = vector.shape_cast %776 : vector<2x32xf32> to vector<2x1x32xf32>
    %785 = tpu.concatenate %777, %778, %779, %780, %781, %782, %783, %784 in 1 : vector<2x1x32xf32>, vector<2x1x32xf32>, vector<2x1x32xf32>, vector<2x1x32xf32>, vector<2x1x32xf32>, vector<2x1x32xf32>, vector<2x1x32xf32>, vector<2x1x32xf32> -> vector<2x8x32xf32>
    %c1_i32 = arith.constant 1 : i32
    %786 = tpu.dynamic_rotate %785 by %c1_i32 dim 1 : vector<2x8x32xf32>, i32 -> vector<2x8x32xf32>
    %c7_i32 = arith.constant 7 : i32
    %787 = tpu.dynamic_rotate %785 by %c7_i32 dim 1 : vector<2x8x32xf32>, i32 -> vector<2x8x32xf32>
    %c0_172 = arith.constant 0 : index
    %c0_173 = arith.constant 0 : index
    %c0_174 = arith.constant 0 : index
    %788 = vector.load %arg27[%c0_172, %c0_173, %c0_174] : memref<3x32x8xf32, #tpu.memory_space<vmem>>, vector<3x32x8xf32>
    %789 = vector.shape_cast %786 : vector<2x8x32xf32> to vector<16x32xf32>
    %790 = vector.extract_strided_slice %788 {offsets = [0, 0, 0], sizes = [1, 32, 8], strides = [1, 1, 1]} : vector<3x32x8xf32> to vector<1x32x8xf32>
    %791 = vector.shape_cast %790 : vector<1x32x8xf32> to vector<32x8xf32>
    %cst_175 = arith.constant dense<0.000000e+00> : vector<16x8xf32>
    %792 = tpu.matmul %789, %791, %cst_175 {dimension_numbers = #tpu.dot_dimension_numbers<[1], [0], [0], [1], [0, 0, 1, 1], [], []>} : vector<16x32xf32>, vector<32x8xf32>, vector<16x8xf32> -> vector<16x8xf32>
    %793 = vector.shape_cast %785 : vector<2x8x32xf32> to vector<16x32xf32>
    %794 = vector.extract_strided_slice %788 {offsets = [1, 0, 0], sizes = [1, 32, 8], strides = [1, 1, 1]} : vector<3x32x8xf32> to vector<1x32x8xf32>
    %795 = vector.shape_cast %794 : vector<1x32x8xf32> to vector<32x8xf32>
    %cst_176 = arith.constant dense<0.000000e+00> : vector<16x8xf32>
    %796 = tpu.matmul %793, %795, %cst_176 {dimension_numbers = #tpu.dot_dimension_numbers<[1], [0], [0], [1], [0, 0, 1, 1], [], []>} : vector<16x32xf32>, vector<32x8xf32>, vector<16x8xf32> -> vector<16x8xf32>
    %797 = arith.addf %792, %796 : vector<16x8xf32>
    %798 = vector.shape_cast %787 : vector<2x8x32xf32> to vector<16x32xf32>
    %799 = vector.extract_strided_slice %788 {offsets = [2, 0, 0], sizes = [1, 32, 8], strides = [1, 1, 1]} : vector<3x32x8xf32> to vector<1x32x8xf32>
    %800 = vector.shape_cast %799 : vector<1x32x8xf32> to vector<32x8xf32>
    %cst_177 = arith.constant dense<0.000000e+00> : vector<16x8xf32>
    %801 = tpu.matmul %798, %800, %cst_177 {dimension_numbers = #tpu.dot_dimension_numbers<[1], [0], [0], [1], [0, 0, 1, 1], [], []>} : vector<16x32xf32>, vector<32x8xf32>, vector<16x8xf32> -> vector<16x8xf32>
    %802 = arith.addf %797, %801 : vector<16x8xf32>
    %803 = vector.shape_cast %802 : vector<16x8xf32> to vector<2x8x8xf32>
    %c0_178 = arith.constant 0 : index
    %c0_179 = arith.constant 0 : index
    %c0_180 = arith.constant 0 : index
    %804 = vector.load %arg29[%c0_178, %c0_179, %c0_180] : memref<2x8x8xf32, #tpu.memory_space<vmem>>, vector<2x8x8xf32>
    tpu.vector_store %arg29[%c0_178, %c0_179, %c0_180], %803 {strides = array<i32>} : memref<2x8x8xf32, #tpu.memory_space<vmem>>, vector<2x8x8xf32>,
    %c0_181 = arith.constant 0 : index
    %c0_182 = arith.constant 0 : index
    %805 = vector.load %arg25[%c0_181, %c0_182] : memref<1x32xf32, #tpu.memory_space<vmem>>, vector<1x32xf32>
    %c0_183 = arith.constant 0 : index
    %c0_184 = arith.constant 0 : index
    %806 = vector.load %arg26[%c0_183, %c0_184] : memref<1x32xf32, #tpu.memory_space<vmem>>, vector<1x32xf32>
    %cst_185 = arith.constant dense<0.000000e+00> : vector<2x8xf32>
    %807 = vector.multi_reduction <add>, %566, %cst_185 [2] : vector<2x8x32xf32> to vector<2x8xf32>
    %808 = vector.shape_cast %807 : vector<2x8xf32> to vector<2x8x1xf32>
    %cst_186 = arith.constant 3.200000e+01 : f32
    %809 = vector.broadcast %cst_186 : f32 to vector<2x8x1xf32>
    %810 = arith.divf %808, %809 : vector<2x8x1xf32>
    %811 = vector.broadcast %810 : vector<2x8x1xf32> to vector<2x8x32xf32>
    %812 = arith.subf %566, %811 : vector<2x8x32xf32>
    %813 = arith.mulf %812, %812 : vector<2x8x32xf32>
    %cst_187 = arith.constant dense<0.000000e+00> : vector<2x8xf32>
    %814 = vector.multi_reduction <add>, %813, %cst_187 [2] : vector<2x8x32xf32> to vector<2x8xf32>
    %815 = vector.shape_cast %814 : vector<2x8xf32> to vector<2x8x1xf32>
    %cst_188 = arith.constant 3.200000e+01 : f32
    %816 = vector.broadcast %cst_188 : f32 to vector<2x8x1xf32>
    %817 = arith.divf %815, %816 : vector<2x8x1xf32>
    %818 = vector.broadcast %810 : vector<2x8x1xf32> to vector<2x8x32xf32>
    %819 = arith.subf %566, %818 : vector<2x8x32xf32>
    %cst_189 = arith.constant 9.99999974E-6 : f32
    %820 = vector.broadcast %cst_189 : f32 to vector<2x8x1xf32>
    %821 = arith.addf %817, %820 : vector<2x8x1xf32>
    %822 = math.rsqrt %821 : vector<2x8x1xf32>
    %823 = vector.broadcast %822 : vector<2x8x1xf32> to vector<2x8x32xf32>
    %824 = arith.mulf %819, %823 : vector<2x8x32xf32>
    %825 = vector.shape_cast %805 : vector<1x32xf32> to vector<1x1x32xf32>
    %826 = vector.broadcast %825 : vector<1x1x32xf32> to vector<2x8x32xf32>
    %827 = arith.mulf %824, %826 : vector<2x8x32xf32>
    %828 = vector.shape_cast %806 : vector<1x32xf32> to vector<1x1x32xf32>
    %829 = vector.broadcast %828 : vector<1x1x32xf32> to vector<2x8x32xf32>
    %830 = arith.addf %827, %829 : vector<2x8x32xf32>
    %c0_190 = arith.constant 0 : index
    %c0_191 = arith.constant 0 : index
    %c0_192 = arith.constant 0 : index
    %831 = vector.load %arg28[%c0_190, %c0_191, %c0_192] : memref<2x8x32xf32, #tpu.memory_space<vmem>>, vector<2x8x32xf32>
    tpu.vector_store %arg28[%c0_190, %c0_191, %c0_192], %830 {strides = array<i32>} : memref<2x8x32xf32, #tpu.memory_space<vmem>>, vector<2x8x32xf32>,
    return
  }
}

</mosaic_0001>

<bundles_post_ra>
// kernel: tpu_custom_call.1
= control target key start
LH: loop header
LB: loop body
LE: loop exit
PB: predicated region body
PF: predicated region fallthrough
CT: control target
= control target key end

     0   :  { %s7152_s6 = smov 1   ;;  %s7153_s10 = smov 2   ;;  %s8366_s0 = inlined_call_operand.smem [shape: u32[31], index: -1, kind: input, shape index: {}] }
   0x1   :  { %s7204_s5 = sld [smem:[%s8366_s0]]   ;;  %s7154_s14 = smov 3  }
   0x2   :  { %s7209_s9 = sld [smem:[%s8366_s0 + %s7152_s6]]   ;;  %s7155_s18 = smov 4  }
   0x3   :  { %s7214_s13 = sld [smem:[%s8366_s0 + %s7153_s10]]   ;;  %s7156_s22 = smov 5  }
   0x4   :  { %s7219_s17 = sld [smem:[%s8366_s0 + %s7154_s14]]   ;;  %s7157_s26 = smov 6  }
   0x5   :  { %s7224_s21 = sld [smem:[%s8366_s0 + %s7155_s18]]   ;;  %s7158_s30 = smov 7  }
   0x6   :  { %s7229_s25 = sld [smem:[%s8366_s0 + %s7156_s22]]   ;;  %s7159_s4 = smov 8  }
   0x7   :  { %s7234_s29 = sld [smem:[%s8366_s0 + %s7157_s26]]   ;;  %s7160_s10 = smov 9  }
   0x8   :  { %s7239_s3 = sld [smem:[%s8366_s0 + %s7158_s30]]   ;;  %s7161_s15 = smov 10  }
   0x9   :  { %s7244_s8 = sld [smem:[%s8366_s0 + %s7159_s4]]   ;;  %s7162_s20 = smov 11  }
   0xa   :  { %s7249_s14 = sld [smem:[%s8366_s0 + %s7160_s10]]   ;;  %s7163_s26 = smov 12  }
   0xb   :  { %s7254_s19 = sld [smem:[%s8366_s0 + %s7161_s15]]   ;;  %s7164_s1 = smov 13  }
   0xc   :  { %s7259_s24 = sld [smem:[%s8366_s0 + %s7162_s20]]   ;;  %s7165_s7 = smov 14  }
   0xd   :  { %s7264_s30 = sld [smem:[%s8366_s0 + %s7163_s26]]   ;;  %s7166_s15 = smov 15  }
   0xe   :  { %s7269_s6 = sld [smem:[%s8366_s0 + %s7164_s1]]   ;;  %s7167_s22 = smov 16  }
   0xf   :  { %s7274_s12 = sld [smem:[%s8366_s0 + %s7165_s7]]   ;;  %s7168_s28 = smov 17  }
  0x10   :  { %8371 = sst [smem:[#allocation16_spill]] %s7249_s14  ;;  %s7169_s7 = smov 18  }
  0x11   :  { %8372 = sst [smem:[#allocation17_spill]] %s7254_s19 }
  0x12   :  { %8373 = sst [smem:[#allocation18_spill]] %s7259_s24 }
  0x13   :  { %8374 = sst [smem:[#allocation19_spill]] %s7264_s30 }
  0x14   :  { %8375 = sst [smem:[#allocation20_spill]] %s7269_s6 }
  0x15   :  { %8376 = sst [smem:[#allocation21_spill]] %s7274_s12 }
  0x16   :  { %s7279_s20 = sld [smem:[%s8366_s0 + %s7166_s15]]   ;;  %s7170_s15 = smov 19  }
  0x17   :  { %s7284_s27 = sld [smem:[%s8366_s0 + %s7167_s22]]   ;;  %s7171_s22 = smov 20  }
  0x18   :  { %s7289_s4 = sld [smem:[%s8366_s0 + %s7168_s28]]   ;;  %s7172_s28 = smov 21  }
  0x19   :  { %s7294_s6 = sld [smem:[%s8366_s0 + %s7169_s7]]   ;;  %s7173_s7 = smov 22  }
  0x1a   :  { %s7299_s12 = sld [smem:[%s8366_s0 + %s7170_s15]]   ;;  %s7174_s15 = smov 23  }
  0x1b   :  { %s7304_s24 = sld [smem:[%s8366_s0 + %s7171_s22]]   ;;  %s7175_s22 = smov 24  }
  0x1c   :  { %s7309_s30 = sld [smem:[%s8366_s0 + %s7172_s28]]   ;;  %s7176_s28 = smov 25  }
  0x1f   :  { %8377 = sst [smem:[#allocation22_spill]] %s7294_s6 }
  0x20   :  { %8378 = sst [smem:[#allocation23_spill]] %s7299_s12 }
  0x21   :  { %8379 = sst [smem:[#allocation24_spill]] %s7304_s24 }
  0x22   :  { %8380 = sst [smem:[#allocation25_spill]] %s7309_s30 }
  0x23   :  { %s7314_s6 = sld [smem:[%s8366_s0 + %s7173_s7]]   ;;  %s7177_s7 = smov 26  }
  0x24   :  { %s7319_s12 = sld [smem:[%s8366_s0 + %s7174_s15]]   ;;  %s7178_s15 = smov 27  }
  0x25   :  { %s7324_s24 = sld [smem:[%s8366_s0 + %s7175_s22]]   ;;  %s7179_s22 = smov 28  }
  0x26   :  { %s7329_s30 = sld [smem:[%s8366_s0 + %s7176_s28]]   ;;  %s7180_s28 = smov 29  }
  0x27   :  { %s7339_s14 = sld [smem:[%s8366_s0 + %s7178_s15]]  }
  0x28   :  { %s7344_s19 = sld [smem:[%s8366_s0 + %s7179_s22]]  }
  0x29   :  { %8381 = sst [smem:[#allocation26_spill]] %s7314_s6 }
  0x2a   :  { %s7334_s6 = sld [smem:[%s8366_s0 + %s7177_s7]]   ;;  %s7181_s7 = smov 30  }
  0x2c   :  { %8382 = sst [smem:[#allocation27_spill]] %s7329_s30 }
  0x2d   :  { %s7349_s30 = sld [smem:[%s8366_s0 + %s7180_s28]]  }
  0x30   :  { %8383 = sst [smem:[#allocation28_spill]] %s7334_s6 }
  0x31   :  { %s7354_s6 = sld [smem:[%s8366_s0 + %s7181_s7]]  }
  0x32   :  { %67 = vsyncpa [#allocation3], 0 }
  0x33   :  { %68 = vsyncpa [#allocation6], 0 }
  0x34   :  { %69 = vsyncpa [#allocation4], 0 }
  0x35   :  { %70 = vsyncpa [#allocation10], 0  ;;  %s7182_s15 = smov [#allocation5]   ;;  %s7183_s18 = smov [#allocation2]  }
  0x36   :  { %s88_s16 = sshll.u32 %s7182_s15, 4  ;;  %s76_s22 = sshll.u32 %s7183_s18, 4  ;;  %s89_s16 = int_to_ptr.vmem [resolvable:$true] %s88_s16  ;;  %s7356_s22 = int_to_ptr.vmem [resolvable:$true] %s76_s22 }
  0x37   :  { %s7012_s23 = scalar_lea.hbm %s7209_s9, 256 }
  0x38   :  { %p7013_p0 = scmp.ne.s32.totalorder %s7209_s9, %s7012_s23  ;;  %p7016_p1 = scmp.lt.u32.totalorder %s7012_s23, %s7209_s9 }
  0x3a   :  { %p7018_p2 = pnand %p7016_p1, %p7013_p0 }
  0x3c   :  { %7021 = shalt.err (!%p7018_p2)
}
  0x3d   :  { %s7022_s0 = scalar_lea.vmem %s89_s16, 256  ;;  %p7027_p4 = scmp.lt.s32.totalorder %s89_s16, %s89_s16 }
  0x3e   :  { %p7023_p3 = scmp.ne.s32.totalorder %s89_s16, %s7022_s0  ;;  %p7028_p5 = scmp.lt.s32.totalorder %s7022_s0, %s7022_s0 }
  0x40   :  { %p7029_p6 = por %p7028_p5, %p7027_p4 }
  0x42   :  { %p7030_p7 = pnand %p7029_p6, %p7023_p3 }
  0x44   :  { %7033 = shalt.err (!%p7030_p7)
}
  0x45   :  { %s7184_s26 = smov 128   ;;  %s7185_s28 = smov 8  }
  0x46   :  { %94 = dma.hbm_to_vmem [thread:$0]  %s7209_s9, 256, %s89_s16, [#allocation6], %s7184_s26, %s7184_s26, %s7185_s28  }
  0x47   :  { %s7034_s1 = scalar_lea.hbm %s7204_s5, 256 }
  0x48   :  { %p7035_p8 = scmp.ne.s32.totalorder %s7204_s5, %s7034_s1  ;;  %p7038_p9 = scmp.lt.u32.totalorder %s7034_s1, %s7204_s5 }
  0x4a   :  { %p7040_p10 = pnand %p7038_p9, %p7035_p8 }
  0x4c   :  { %7043 = shalt.err (!%p7040_p10)
}
  0x4d   :  { %s7044_s2 = scalar_lea.vmem %s7356_s22, 256  ;;  %p7049_p12 = scmp.lt.s32.totalorder %s7356_s22, %s7356_s22 }
  0x4e   :  { %p7045_p11 = scmp.ne.s32.totalorder %s7356_s22, %s7044_s2  ;;  %p7050_p13 = scmp.lt.s32.totalorder %s7044_s2, %s7044_s2 }
  0x50   :  { %p7051_p0 = por %p7050_p13, %p7049_p12 }
  0x52   :  { %p7052_p1 = pnand %p7051_p0, %p7045_p11 }
  0x54   :  { %7055 = shalt.err (!%p7052_p1)
}
  0x55   :  { %82 = dma.hbm_to_vmem [thread:$0]  %s7204_s5, 256, %s7356_s22, [#allocation3], %s7184_s26, %s7184_s26, %s7185_s28  }
  0x56   :  { %s7186_s9 = smov [#allocation7]   ;;  %s7056_s10 = scalar_lea.hbm %s7214_s13, 256 }
  0x57   :  { %s100_s7 = sshll.u32 %s7186_s9, 4  ;;  %p7057_p2 = scmp.ne.s32.totalorder %s7214_s13, %s7056_s10  ;;  %s101_s7 = int_to_ptr.vmem [resolvable:$true] %s100_s7 }
  0x58   :  { %p7060_p3 = scmp.lt.u32.totalorder %s7056_s10, %s7214_s13 }
  0x5a   :  { %p7062_p4 = pnand %p7060_p3, %p7057_p2 }
  0x5c   :  { %7065 = shalt.err (!%p7062_p4)
}
  0x5d   :  { %s7066_s11 = scalar_lea.vmem %s101_s7, 256  ;;  %p7071_p6 = scmp.lt.s32.totalorder %s101_s7, %s101_s7 }
  0x5e   :  { %p7067_p5 = scmp.ne.s32.totalorder %s101_s7, %s7066_s11  ;;  %p7072_p7 = scmp.lt.s32.totalorder %s7066_s11, %s7066_s11 }
  0x60   :  { %p7073_p8 = por %p7072_p7, %p7071_p6 }
  0x62   :  { %p7074_p9 = pnand %p7073_p8, %p7067_p5 }
  0x64   :  { %7077 = shalt.err (!%p7074_p9)
}
  0x65   :  { %106 = dma.hbm_to_vmem [thread:$0]  %s7214_s13, 256, %s101_s7, [#allocation6], %s7184_s26, %s7184_s26, %s7185_s28  }
  0x66   :  { %7144 = dma.done.wait [#allocation3], 256  }
  0x67   :  { %7145 = vsyncadd [#allocation3], 4294967040 }
  0x68   :  { %7146 = dma.done.wait [#allocation6], 512  }
  0x69   :  { %7147 = vsyncadd [#allocation6], 4294966784  ;;  %v7187_v0 = vmov 0.0|0.0   ;;  %vm7188_vm0 = vmmov 0   ;;  %v7189_v1 = vmov 0.0   ;;  %vm188_vm1 = vcmask 261120  }
  0x6a   :  { %6400 = vmatprep.subr.bf16.mxu1 %v7187_v0  ;;  %5970 = vmatprep.mubr.msk.f32.mxu1 %vm7188_vm0, %v7189_v1  ;;  %v172_v2 = vld [vmem:[%s7219_s17] sm:$0xff]  ;;  %v173_v3 = vld [vmem:[%s7219_s17 + $0x8] sm:$0xff]  ;;  %v174_v4 = vld [vmem:[%s7219_s17 + $0x10] sm:$0xff]  ;;  %s7190_s5 = smov 64   ;;  %s7191_s13 = smov 96   ;;  %vm406_vm2 = vcmask 1041409  }
  0x6b   :  { %v6380_v5 = vpack.c.bf16 %v173_v3, %v172_v2  ;;  %v175_v6 = vld [vmem:[%s7219_s17 + $0x18] sm:$0xff]  ;;  %v7391_v7 = vld [vmem:[#allocation2] sm:$0xff]  ;;  %v177_v10 = vld [vmem:[%s7224_s21 + $0x8] sm:$0xff]  ;;  %vm1366_vm3 = vcmask 1040384   ;;  %vm1369_vm4 = vcmask 1041408   ;;  %vm1372_vm5 = vcmask 1042432  }
  0x6c   :  { %v6384_v8 = vpack.c.bf16 %v175_v6, %v174_v4  ;;  %5937 = vmatprep.mubr.msk.f32.mxu0 %vm188_vm1, %v7391_v7  ;;  %v176_v9 = vld [vmem:[%s7224_s21] sm:$0xff]  ;;  %v178_v12 = vld [vmem:[%s7224_s21 + $0x10] sm:$0xff]  ;;  %v179_v13 = vld [vmem:[%s7224_s21 + $0x18] sm:$0xff]  ;;  %vm1375_vm6 = vcmask 1043456   ;;  %vm1378_vm7 = vcmask 1044480   ;;  %vm1381_vm8 = vcmask 1045504  }
  0x6d   :  { %6381 = vmatprep.subr.bf16.mxu0 %v6380_v5  ;;  %v7397_v11 = vpack.c.bf16 %v177_v10, %v176_v9  ;;  %v7403_v14 = vpack.c.bf16 %v179_v13, %v178_v12  ;;  %v7405_v15 = vld [vmem:[#allocation2 + $0x8] sm:$0xff]  ;;  %v7426_v18 = vld [vmem:[%s7234_s29] ss:$0 sm:$0xff]  ;;  %vm1583_vm9 = vcmask 64512   ;;  %vm1384_vm10 = vcmask 1046528   ;;  %s7192_s17 = smov 32  }
  0x6e   :  { %6383 = vmatpush3.bf16.msra.mxu0 %v6380_v5  ;;  %v5592_v23 = vld [vmem:[%s7229_s25] ss:$0 sm:$0xff]  ;;  %vm1400_vm11 = vcmask 523520   ;;  %vm1996_vm12 = vcmask 130048   ;;  %vm1914_vm13 = vcmask 523264   ;;  %s8384_s21 = sld [smem:[#allocation17_spill]] }
  0x6f   :  { %6385 = vmatprep.subr.bf16.mxu0 %v6384_v8  ;;  %6402 = vmatpush3.bf16.msra.mxu1 %v7397_v11  ;;  %s8385_s25 = sld [smem:[#allocation16_spill]]  ;;  %s8386_s29 = sld [smem:[#allocation23_spill]]  ;;  %vm1398_vm14 = vcmask 253952   ;;  %vm1396_vm15 = vcmask 261127  }
  0x70   :  { %6403 = vmatprep.subr.bf16.mxu1 %v7187_v0  ;;  %s8394_s15 = sld [smem:[#allocation20_spill]]  ;;  %s7193_s18 = smov [#allocation9]  }
  0x71   :  { %s8396_s16 = sld [smem:[#allocation28_spill]]  ;;  %s5532_s22 = sshll.u32 %s7193_s18, 4  ;;  %s5533_s22 = int_to_ptr.vmem [resolvable:$true] %s5532_s22 }
  0x72   :  { %6387 = vmatpush3.bf16.msra.mxu0 %v6384_v8  ;;  %s7194_s23 = smov [#allocation11]   ;;  %s7195_s1 = smov [#allocation8]  }
  0x73   :  { %6388 = vmatprep.subr.bf16.mxu0 %v7187_v0  ;;  %6405 = vmatpush3.bf16.msra.mxu1 %v7403_v14  ;;  %s5545_s0 = sshll.u32 %s7194_s23, 4  ;;  %s5520_s2 = sshll.u32 %s7195_s1, 4  ;;  %s8332_s0 = int_to_ptr.vmem [resolvable:$true] %s5545_s0  ;;  %s8335_s2 = int_to_ptr.vmem [resolvable:$true] %s5520_s2 }
  0x74   :  { %6412 = vmatprep.subr.bf16.mxu1 %v7187_v0  ;;  %s7078_s9 = scalar_lea.vmem %s5533_s22, 256  ;;  %p7083_p11 = scmp.lt.s32.totalorder %s5533_s22, %s5533_s22 }
  0x75   :  { %5938 = vmatmul.mubr.msk.f32.vlgmr.msra.gmra.mrb[0].mxu0 %vm188_vm1, %v7405_v15  ;;  %p7079_p10 = scmp.ne.s32.totalorder %s5533_s22, %s7078_s9  ;;  %p7084_p12 = scmp.lt.s32.totalorder %s7078_s9, %s7078_s9 }
  0x76   :  { %6390 = vmatpush3.bf16.msra.mxu0 %v7397_v11  ;;  %5948 = vmatprep.mubr.msk.f32.mxu0 %vm7188_vm0, %v7189_v1 }
  0x77   :  { %6391 = vmatprep.subr.bf16.mxu0 %v7187_v0  ;;  %p7085_p13 = por %p7084_p12, %p7083_p11 }
  0x79   :  { %p7086_p0 = pnand %p7085_p13, %p7079_p10 }
  0x7a   :  { %6393 = vmatpush3.bf16.msra.mxu0 %v7403_v14 }
  0x7b   :  { %6394 = vmatprep.subr.bf16.mxu0 %v7187_v0 }
  0x7d   :  { %5949 = vmatmul.mubr.f32.vlgmr.msra.gmra.mrb[2].mxu0 %v7189_v1 }
  0x7e   :  { %6396 = vmatpush3.bf16.msra.mxu0 %v7397_v11  ;;  %5959 = vmatprep.mubr.msk.f32.mxu0 %vm7188_vm0, %v7189_v1 }
  0x7f   :  { %6397 = vmatprep.subr.bf16.mxu0 %v7187_v0 }
  0x82   :  { %6399 = vmatpush3.bf16.msra.mxu0 %v7403_v14 }
  0x83   :  { %6406 = vmatprep.subr.bf16.mxu0 %v7187_v0 }
 0x148   :  { %v5939_v16 = vpop.f32.mrb[0].mxu0 }
 0x149   :  { %v261_v17 = vpop.f32.mrb[1].mxu0  ;;  %v7432_v24 = vadd.f32 %v5939_v16, %v5592_v23 }
 0x14a   :  { %v7435_v26 = vadd.f32 %v5592_v23, %v261_v17 }
 0x150   :  { %v345_v19 = vpop.f32.mrb[2].mxu0 }
 0x151   :  { %v346_v20 = vadd.f32 %v7426_v18, %v345_v19  ;;  %v5950_v21 = vpop.f32.mrb[3].mxu0 }
 0x153   :  { %v350_v22 = vrot.slane %v346_v20, 1  ;;  %v353_v27 = vadd.f32 %v346_v20, %v7435_v26 }
 0x155   :  { %369 = vrot.lane.b32.xlu0 %v350_v22, %s7190_s5  ;;  %v354_v25 = vadd.f32 %v350_v22, %v7432_v24  ;;  %v5596_v29 = vmul.f32 -1.442695, %v353_v27 }
 0x157   :  { %v5597_v28 = vmul.f32 -1.442695, %v354_v25 }
 0x159   :  { %367 = vrot.lane.b32.xlu0 %v346_v20, %s7190_s5  ;;  %6680 = vpow2.f32 %v5597_v28 }
 0x15a   :  { %6682 = vpow2.f32 %v5596_v29 }
 0x163   :  { %v6681_v30 = vpop.eup %6680 }
 0x164   :  { %v362_v31 = vadd.f32 1.0, %v6681_v30  ;;  %v6683_v32 = vpop.eup %6682 }
 0x165   :  { %v361_v33 = vadd.f32 1.0, %v6683_v32 }
 0x166   :  { %6684 = vrcp.f32 %v362_v31 }
 0x167   :  { %6686 = vrcp.f32 %v361_v33 }
 0x170   :  { %v6685_v34 = vpop.eup %6684 }
 0x171   :  { %v6687_v37 = vpop.eup %6686  ;;  %v388_v46 = vsub.f32 1.0, %v6685_v34  ;;  %v400_v48 = vmul.f32 0.0, %v6685_v34 }
 0x172   :  { %v387_v51 = vsub.f32 1.0, %v6687_v37  ;;  %v399_v53 = vmul.f32 0.0, %v6687_v37 }
 0x1c7   :  { %v370_v35 = vpop.permute.xlu0 %369 }
 0x1c8   :  { %v374_v36 = vmul.f32 %v6685_v34, %v370_v35 }
 0x1ca   :  { %379 = vrot.lane.b32.xlu1 %v374_v36, %s7190_s5 }
 0x1cb   :  { %v368_v38 = vpop.permute.xlu0 %367 }
 0x1cc   :  { %v373_v39 = vmul.f32 %v6687_v37, %v368_v38 }
 0x1ce   :  { %377 = vrot.lane.b32.xlu1 %v373_v39, %s7190_s5 }
 0x23c   :  { %v380_v40 = vpop.permute.xlu1 %379 }
 0x23d   :  { %v384_v41 = vadd.f32 %v380_v40, %v7432_v24 }
 0x23f   :  { %6688 = vtanh.f32 %v384_v41 }
 0x240   :  { %v378_v42 = vpop.permute.xlu1 %377 }
 0x241   :  { %v383_v43 = vadd.f32 %v378_v42, %v7435_v26 }
 0x243   :  { %6690 = vtanh.f32 %v383_v43 }
 0x249   :  { %v6689_v44 = vpop.eup %6688 }
 0x24a   :  { %393 = vrot.lane.b32.xlu0 %v6689_v44, %s7191_s13 }
 0x24d   :  { %v6691_v45 = vpop.eup %6690 }
 0x24e   :  { %391 = vrot.lane.b32.xlu1 %v6691_v45, %s7191_s13 }
 0x2bc   :  { %v394_v47 = vpop.permute.xlu0 %393 }
 0x2bd   :  { %v398_v49 = vmul.f32 %v394_v47, %v388_v46 }
 0x2bf   :  { %v7444_v50 = vadd.f32 %v400_v48, %v398_v49 }
 0x2c0   :  { %v392_v52 = vpop.permute.xlu1 %391 }
 0x2c1   :  { %v397_v54 = vmul.f32 %v392_v52, %v387_v51  ;;  %v405_v55 = vrot.slane %v7444_v50, 7 }
 0x2c3   :  { %v7447_v56 = vadd.f32 %v399_v53, %v397_v54 }
 0x2c5   :  { %v407_v57 = vsel %vm406_vm2, %v405_v55, %v7447_v56  ;;  %v532_v31 = vrot.slane %v7447_v56, 7 }
 0x2c6   :  { %408 = vrot.lane.b32.xlu0 %v407_v57, %s7191_s13 }
 0x338   :  { %v409_v58 = vpop.permute.xlu0 %408 }
 0x339   :  { %5960 = vmatmul.mubr.msk.f32.vlgmr.msra.gmra.mrb[4].mxu0 %vm188_vm1, %v409_v58 }
 0x33a   :  { %6408 = vmatpush3.bf16.msra.mxu0 %v7397_v11  ;;  %5981 = vmatprep.mubr.msk.f32.mxu0 %vm7188_vm0, %v7189_v1 }
 0x33b   :  { %6409 = vmatprep.subr.bf16.mxu0 %v7187_v0 }
 0x33e   :  { %6411 = vmatpush3.bf16.msra.mxu0 %v7403_v14 }
 0x33f   :  { %6418 = vmatprep.subr.bf16.mxu0 %v7187_v0 }
 0x40c   :  { %v478_v59 = vpop.f32.mrb[4].mxu0 }
 0x40d   :  { %v479_v60 = vadd.f32 %v7426_v18, %v478_v59  ;;  %v5961_v61 = vpop.f32.mrb[5].mxu0 }
 0x40f   :  { %502 = vrot.lane.b32.xlu0 %v479_v60, %s7190_s5  ;;  %v483_v62 = vrot.slane %v479_v60, 7  ;;  %v487_v63 = vadd.f32 %v479_v60, %v7432_v24 }
 0x411   :  { %500 = vrot.lane.b32.xlu1 %v483_v62, %s7190_s5  ;;  %v486_v2 = vadd.f32 %v483_v62, %v7435_v26  ;;  %v5600_v3 = vmul.f32 -1.442695, %v487_v63 }
 0x413   :  { %v5599_v4 = vmul.f32 -1.442695, %v486_v2  ;;  %6692 = vpow2.f32 %v5600_v3 }
 0x415   :  { %6694 = vpow2.f32 %v5599_v4 }
 0x41d   :  { %v6693_v5 = vpop.eup %6692 }
 0x41e   :  { %v495_v8 = vadd.f32 1.0, %v6693_v5 }
 0x41f   :  { %v6695_v6 = vpop.eup %6694 }
 0x420   :  { %v494_v9 = vadd.f32 1.0, %v6695_v6  ;;  %6696 = vrcp.f32 %v495_v8 }
 0x422   :  { %6698 = vrcp.f32 %v494_v9 }
 0x42a   :  { %v6697_v10 = vpop.eup %6696 }
 0x42b   :  { %v521_v29 = vsub.f32 1.0, %v6697_v10  ;;  %v536_v36 = vmul.f32 %v6697_v10, %v405_v55 }
 0x42c   :  { %v6699_v16 = vpop.eup %6698 }
 0x42d   :  { %v520_v30 = vsub.f32 1.0, %v6699_v16  ;;  %v535_v34 = vmul.f32 %v6699_v16, %v532_v31 }
 0x481   :  { %v503_v12 = vpop.permute.xlu0 %502 }
 0x482   :  { %v507_v13 = vmul.f32 %v6697_v10, %v503_v12 }
 0x483   :  { %v501_v17 = vpop.permute.xlu1 %500 }
 0x484   :  { %v506_v19 = vmul.f32 %v6699_v16, %v501_v17  ;;  %512 = vrot.lane.b32.xlu0 %v507_v13, %s7190_s5 }
 0x486   :  { %510 = vrot.lane.b32.xlu1 %v506_v19, %s7190_s5 }
 0x4f6   :  { %v513_v20 = vpop.permute.xlu0 %512 }
 0x4f7   :  { %v517_v21 = vadd.f32 %v513_v20, %v7432_v24 }
 0x4f8   :  { %v511_v22 = vpop.permute.xlu1 %510 }
 0x4f9   :  { %6700 = vtanh.f32 %v517_v21  ;;  %v516_v23 = vadd.f32 %v511_v22, %v7435_v26 }
 0x4fb   :  { %6702 = vtanh.f32 %v516_v23 }
 0x503   :  { %v6701_v25 = vpop.eup %6700 }
 0x504   :  { %526 = vrot.lane.b32.xlu0 %v6701_v25, %s7191_s13 }
 0x505   :  { %v6703_v27 = vpop.eup %6702 }
 0x506   :  { %524 = vrot.lane.b32.xlu1 %v6703_v27, %s7191_s13 }
 0x576   :  { %v527_v28 = vpop.permute.xlu0 %526 }
 0x577   :  { %v531_v33 = vmul.f32 %v527_v28, %v521_v29 }
 0x578   :  { %v525_v32 = vpop.permute.xlu1 %524 }
 0x579   :  { %v530_v35 = vmul.f32 %v525_v32, %v520_v30  ;;  %v538_v38 = vadd.f32 %v536_v36, %v531_v33 }
 0x57b   :  { %v7471_v37 = vadd.f32 %v535_v34, %v530_v35  ;;  %v669_v9 = vrot.slane %v538_v38, 7  ;;  %v1368_v23 = vsel %vm1366_vm3, %v7444_v50, %v538_v38 }
 0x57d   :  { %v541_v39 = vrot.slane %v7471_v37, 1  ;;  %v668_v13 = vrot.slane %v7471_v37, 7  ;;  %v1367_v27 = vsel %vm1366_vm3, %v7447_v56, %v7471_v37 }
 0x57f   :  { %v542_v40 = vsel %vm406_vm2, %v538_v38, %v541_v39 }
 0x580   :  { %543 = vrot.lane.b32.xlu1 %v542_v40, %s7191_s13 }
 0x5f2   :  { %v544_v41 = vpop.permute.xlu1 %543 }
 0x5f3   :  { %5971 = vmatmul.mubr.msk.f32.vlgmr.msra.gmra.mrb[0].mxu1 %vm188_vm1, %v544_v41 }
 0x5f4   :  { %6414 = vmatpush3.bf16.msra.mxu1 %v7397_v11  ;;  %5992 = vmatprep.mubr.msk.f32.mxu1 %vm7188_vm0, %v7189_v1 }
 0x5f5   :  { %6415 = vmatprep.subr.bf16.mxu1 %v7187_v0 }
 0x5f8   :  { %6417 = vmatpush3.bf16.msra.mxu1 %v7403_v14 }
 0x5f9   :  { %6424 = vmatprep.subr.bf16.mxu1 %v7187_v0 }
 0x6c6   :  { %v613_v42 = vpop.f32.mrb[0].mxu1 }
 0x6c7   :  { %v614_v43 = vadd.f32 %v7426_v18, %v613_v42  ;;  %v5972_v44 = vpop.f32.mrb[1].mxu1 }
 0x6c9   :  { %v618_v45 = vrot.slane %v614_v43, 6  ;;  %v619_v46 = vrot.slane %v614_v43, 7 }
 0x6cb   :  { %638 = vrot.lane.b32.xlu1 %v619_v46, %s7190_s5  ;;  %636 = vrot.lane.b32.xlu0 %v618_v45, %s7190_s5  ;;  %v622_v47 = vadd.f32 %v618_v45, %v7435_v26  ;;  %v623_v48 = vadd.f32 %v619_v46, %v7432_v24 }
 0x6cd   :  { %v5602_v49 = vmul.f32 -1.442695, %v622_v47  ;;  %v5603_v51 = vmul.f32 -1.442695, %v623_v48 }
 0x6cf   :  { %6704 = vpow2.f32 %v5602_v49 }
 0x6d0   :  { %6706 = vpow2.f32 %v5603_v51 }
 0x6d9   :  { %v6705_v52 = vpop.eup %6704 }
 0x6da   :  { %v6707_v53 = vpop.eup %6706  ;;  %v630_v54 = vadd.f32 1.0, %v6705_v52 }
 0x6db   :  { %v631_v55 = vadd.f32 1.0, %v6707_v53 }
 0x6dc   :  { %6708 = vrcp.f32 %v630_v54 }
 0x6dd   :  { %6710 = vrcp.f32 %v631_v55 }
 0x6e6   :  { %v6709_v57 = vpop.eup %6708 }
 0x6e7   :  { %v6711_v58 = vpop.eup %6710  ;;  %v656_v12 = vsub.f32 1.0, %v6709_v57  ;;  %v672_v20 = vmul.f32 %v6709_v57, %v668_v13 }
 0x6e8   :  { %v657_v8 = vsub.f32 1.0, %v6711_v58  ;;  %v673_v16 = vmul.f32 %v6711_v58, %v669_v9 }
 0x73d   :  { %v639_v59 = vpop.permute.xlu1 %638  ;;  %v637_v60 = vpop.permute.xlu0 %636 }
 0x73e   :  { %v643_v61 = vmul.f32 %v6711_v58, %v639_v59  ;;  %v642_v62 = vmul.f32 %v6709_v57, %v637_v60 }
 0x740   :  { %648 = vrot.lane.b32.xlu1 %v643_v61, %s7190_s5  ;;  %646 = vrot.lane.b32.xlu0 %v642_v62, %s7190_s5 }
 0x7b2   :  { %v649_v63 = vpop.permute.xlu1 %648  ;;  %v647_v2 = vpop.permute.xlu0 %646 }
 0x7b3   :  { %v653_v3 = vadd.f32 %v649_v63, %v7432_v24  ;;  %v652_v4 = vadd.f32 %v647_v2, %v7435_v26 }
 0x7b5   :  { %6712 = vtanh.f32 %v653_v3 }
 0x7b6   :  { %6714 = vtanh.f32 %v652_v4 }
 0x7bf   :  { %v6713_v5 = vpop.eup %6712 }
 0x7c0   :  { %v6715_v6 = vpop.eup %6714  ;;  %662 = vrot.lane.b32.xlu1 %v6713_v5, %s7191_s13 }
 0x7c1   :  { %660 = vrot.lane.b32.xlu0 %v6715_v6, %s7191_s13 }
 0x832   :  { %v663_v10 = vpop.permute.xlu1 %662 }
 0x833   :  { %v667_v17 = vmul.f32 %v663_v10, %v657_v8  ;;  %v661_v19 = vpop.permute.xlu0 %660 }
 0x834   :  { %v666_v21 = vmul.f32 %v661_v19, %v656_v12 }
 0x835   :  { %v675_v22 = vadd.f32 %v673_v16, %v667_v17 }
 0x836   :  { %v674_v25 = vadd.f32 %v672_v20, %v666_v21 }
 0x837   :  { %v7501_v28 = vsel %vm1369_vm4, %v1368_v23, %v675_v22  ;;  %v679_v29 = vrot.slane %v675_v22, 1  ;;  %v807_v60 = vrot.slane %v675_v22, 7 }
 0x838   :  { %v7504_v30 = vsel %vm1369_vm4, %v1367_v27, %v674_v25  ;;  %v678_v31 = vrot.slane %v674_v25, 2  ;;  %v806_v63 = vrot.slane %v674_v25, 7 }
 0x83a   :  { %v680_v32 = vsel %vm406_vm2, %v679_v29, %v678_v31 }
 0x83b   :  { %681 = vrot.lane.b32.xlu0 %v680_v32, %s7191_s13 }
 0x8ad   :  { %v682_v33 = vpop.permute.xlu0 %681 }
 0x8ae   :  { %5982 = vmatmul.mubr.msk.f32.vlgmr.msra.gmra.mrb[6].mxu0 %vm188_vm1, %v682_v33 }
 0x8af   :  { %6420 = vmatpush3.bf16.msra.mxu0 %v7397_v11  ;;  %6003 = vmatprep.mubr.msk.f32.mxu0 %vm7188_vm0, %v7189_v1 }
 0x8b0   :  { %6421 = vmatprep.subr.bf16.mxu0 %v7187_v0 }
 0x8b3   :  { %6423 = vmatpush3.bf16.msra.mxu0 %v7403_v14 }
 0x8b4   :  { %6430 = vmatprep.subr.bf16.mxu0 %v7187_v0 }
 0x981   :  { %v751_v50 = vpop.f32.mrb[6].mxu0 }
 0x982   :  { %v752_v56 = vadd.f32 %v7426_v18, %v751_v50  ;;  %v5983_v34 = vpop.f32.mrb[7].mxu0 }
 0x984   :  { %v756_v35 = vrot.slane %v752_v56, 5  ;;  %v757_v36 = vrot.slane %v752_v56, 6 }
 0x986   :  { %776 = vrot.lane.b32.xlu0 %v757_v36, %s7190_s5  ;;  %774 = vrot.lane.b32.xlu1 %v756_v35, %s7190_s5  ;;  %v760_v37 = vadd.f32 %v756_v35, %v7435_v26  ;;  %v761_v38 = vadd.f32 %v757_v36, %v7432_v24 }
 0x988   :  { %v5605_v39 = vmul.f32 -1.442695, %v760_v37  ;;  %v5606_v40 = vmul.f32 -1.442695, %v761_v38 }
 0x98a   :  { %6716 = vpow2.f32 %v5605_v39 }
 0x98b   :  { %6718 = vpow2.f32 %v5606_v40 }
 0x994   :  { %v6717_v41 = vpop.eup %6716 }
 0x995   :  { %v6719_v42 = vpop.eup %6718  ;;  %v768_v43 = vadd.f32 1.0, %v6717_v41 }
 0x996   :  { %v769_v44 = vadd.f32 1.0, %v6719_v42 }
 0x997   :  { %6720 = vrcp.f32 %v768_v43 }
 0x998   :  { %6722 = vrcp.f32 %v769_v44 }
 0x9a1   :  { %v6721_v45 = vpop.eup %6720 }
 0x9a2   :  { %v6723_v46 = vpop.eup %6722  ;;  %v794_v62 = vsub.f32 1.0, %v6721_v45  ;;  %v810_v5 = vmul.f32 %v6721_v45, %v806_v63 }
 0x9a3   :  { %v795_v59 = vsub.f32 1.0, %v6723_v46  ;;  %v811_v2 = vmul.f32 %v6723_v46, %v807_v60 }
 0x9f8   :  { %v777_v47 = vpop.permute.xlu0 %776  ;;  %v775_v48 = vpop.permute.xlu1 %774 }
 0x9f9   :  { %v781_v49 = vmul.f32 %v6723_v46, %v777_v47  ;;  %v780_v51 = vmul.f32 %v6721_v45, %v775_v48 }
 0x9fb   :  { %786 = vrot.lane.b32.xlu0 %v781_v49, %s7190_s5  ;;  %784 = vrot.lane.b32.xlu1 %v780_v51, %s7190_s5 }
 0xa6d   :  { %v787_v52 = vpop.permute.xlu0 %786  ;;  %v785_v53 = vpop.permute.xlu1 %784 }
 0xa6e   :  { %v791_v54 = vadd.f32 %v787_v52, %v7432_v24  ;;  %v790_v55 = vadd.f32 %v785_v53, %v7435_v26 }
 0xa70   :  { %6724 = vtanh.f32 %v791_v54 }
 0xa71   :  { %6726 = vtanh.f32 %v790_v55 }
 0xa7a   :  { %v6725_v57 = vpop.eup %6724 }
 0xa7b   :  { %v6727_v58 = vpop.eup %6726  ;;  %800 = vrot.lane.b32.xlu0 %v6725_v57, %s7191_s13 }
 0xa7c   :  { %798 = vrot.lane.b32.xlu1 %v6727_v58, %s7191_s13 }
 0xaed   :  { %v801_v61 = vpop.permute.xlu0 %800 }
 0xaee   :  { %v805_v3 = vmul.f32 %v801_v61, %v795_v59  ;;  %v799_v4 = vpop.permute.xlu1 %798 }
 0xaef   :  { %v804_v6 = vmul.f32 %v799_v4, %v794_v62 }
 0xaf0   :  { %v813_v8 = vadd.f32 %v811_v2, %v805_v3 }
 0xaf1   :  { %v812_v9 = vadd.f32 %v810_v5, %v804_v6 }
 0xaf2   :  { %v7528_v10 = vsel %vm1372_vm5, %v7501_v28, %v813_v8  ;;  %v817_v12 = vrot.slane %v813_v8, 2  ;;  %v945_v46 = vrot.slane %v813_v8, 7 }
 0xaf3   :  { %v7532_v13 = vsel %vm1372_vm5, %v7504_v30, %v812_v9  ;;  %v816_v16 = vrot.slane %v812_v9, 3  ;;  %v944_v49 = vrot.slane %v812_v9, 7 }
 0xaf5   :  { %v818_v17 = vsel %vm406_vm2, %v817_v12, %v816_v16 }
 0xaf6   :  { %819 = vrot.lane.b32.xlu1 %v818_v17, %s7191_s13 }
 0xb68   :  { %v820_v19 = vpop.permute.xlu1 %819 }
 0xb69   :  { %5993 = vmatmul.mubr.msk.f32.vlgmr.msra.gmra.mrb[2].mxu1 %vm188_vm1, %v820_v19 }
 0xb6a   :  { %6426 = vmatpush3.bf16.msra.mxu1 %v7397_v11  ;;  %6014 = vmatprep.mubr.msk.f32.mxu1 %vm7188_vm0, %v7189_v1 }
 0xb6b   :  { %6427 = vmatprep.subr.bf16.mxu1 %v7187_v0 }
 0xb6e   :  { %6429 = vmatpush3.bf16.msra.mxu1 %v7403_v14 }
 0xb6f   :  { %6028 = vmatprep.subr.mxu1 %v7189_v1 }
 0xc3c   :  { %v889_v20 = vpop.f32.mrb[2].mxu1 }
 0xc3d   :  { %v890_v21 = vadd.f32 %v7426_v18, %v889_v20  ;;  %v5994_v22 = vpop.f32.mrb[3].mxu1 }
 0xc3f   :  { %v894_v23 = vrot.slane %v890_v21, 4  ;;  %v895_v25 = vrot.slane %v890_v21, 5 }
 0xc41   :  { %914 = vrot.lane.b32.xlu1 %v895_v25, %s7190_s5  ;;  %912 = vrot.lane.b32.xlu0 %v894_v23, %s7190_s5  ;;  %v898_v27 = vadd.f32 %v894_v23, %v7435_v26  ;;  %v899_v28 = vadd.f32 %v895_v25, %v7432_v24 }
 0xc43   :  { %v5608_v29 = vmul.f32 -1.442695, %v898_v27  ;;  %v5609_v30 = vmul.f32 -1.442695, %v899_v28 }
 0xc45   :  { %6728 = vpow2.f32 %v5608_v29 }
 0xc46   :  { %6730 = vpow2.f32 %v5609_v30 }
 0xc4f   :  { %v6729_v31 = vpop.eup %6728 }
 0xc50   :  { %v6731_v32 = vpop.eup %6730  ;;  %v906_v33 = vadd.f32 1.0, %v6729_v31 }
 0xc51   :  { %v907_v50 = vadd.f32 1.0, %v6731_v32 }
 0xc52   :  { %6732 = vrcp.f32 %v906_v33 }
 0xc53   :  { %6734 = vrcp.f32 %v907_v50 }
 0xc5c   :  { %v6733_v56 = vpop.eup %6732 }
 0xc5d   :  { %v6735_v34 = vpop.eup %6734  ;;  %v932_v48 = vsub.f32 1.0, %v6733_v56  ;;  %v948_v54 = vmul.f32 %v6733_v56, %v944_v49 }
 0xc5e   :  { %v933_v45 = vsub.f32 1.0, %v6735_v34  ;;  %v949_v51 = vmul.f32 %v6735_v34, %v945_v46 }
 0xcb3   :  { %v915_v35 = vpop.permute.xlu1 %914  ;;  %v913_v36 = vpop.permute.xlu0 %912 }
 0xcb4   :  { %v919_v37 = vmul.f32 %v6735_v34, %v915_v35  ;;  %v918_v38 = vmul.f32 %v6733_v56, %v913_v36 }
 0xcb6   :  { %924 = vrot.lane.b32.xlu1 %v919_v37, %s7190_s5  ;;  %922 = vrot.lane.b32.xlu0 %v918_v38, %s7190_s5 }
 0xd28   :  { %v925_v39 = vpop.permute.xlu1 %924  ;;  %v923_v40 = vpop.permute.xlu0 %922 }
 0xd29   :  { %v929_v41 = vadd.f32 %v925_v39, %v7432_v24  ;;  %v928_v42 = vadd.f32 %v923_v40, %v7435_v26 }
 0xd2b   :  { %6736 = vtanh.f32 %v929_v41 }
 0xd2c   :  { %6738 = vtanh.f32 %v928_v42 }
 0xd35   :  { %v6737_v43 = vpop.eup %6736 }
 0xd36   :  { %v6739_v44 = vpop.eup %6738  ;;  %938 = vrot.lane.b32.xlu1 %v6737_v43, %s7191_s13 }
 0xd37   :  { %936 = vrot.lane.b32.xlu0 %v6739_v44, %s7191_s13 }
 0xda8   :  { %v939_v47 = vpop.permute.xlu1 %938 }
 0xda9   :  { %v943_v52 = vmul.f32 %v939_v47, %v933_v45  ;;  %v937_v53 = vpop.permute.xlu0 %936 }
 0xdaa   :  { %v942_v55 = vmul.f32 %v937_v53, %v932_v48 }
 0xdab   :  { %v951_v57 = vadd.f32 %v949_v51, %v943_v52 }
 0xdac   :  { %v950_v58 = vadd.f32 %v948_v54, %v942_v55 }
 0xdad   :  { %v955_v59 = vrot.slane %v951_v57, 3  ;;  %v7556_v60 = vsel %vm1375_vm6, %v7528_v10, %v951_v57  ;;  %v1083_v50 = vrot.slane %v951_v57, 7 }
 0xdae   :  { %v954_v61 = vrot.slane %v950_v58, 4  ;;  %v7560_v62 = vsel %vm1375_vm6, %v7532_v13, %v950_v58  ;;  %v1082_v35 = vrot.slane %v950_v58, 7 }
 0xdb0   :  { %v956_v63 = vsel %vm406_vm2, %v955_v59, %v954_v61 }
 0xdb1   :  { %957 = vrot.lane.b32.xlu0 %v956_v63, %s7191_s13 }
 0xe23   :  { %v958_v2 = vpop.permute.xlu0 %957 }
 0xe24   :  { %6004 = vmatmul.mubr.msk.f32.vlgmr.msra.gmra.mrb[8].mxu0 %vm188_vm1, %v958_v2 }
 0xe25   :  { %6432 = vmatpush3.bf16.msra.mxu0 %v7397_v11  ;;  %6025 = vmatprep.mubr.msk.f32.mxu0 %vm7188_vm0, %v7189_v1 }
 0xe26   :  { %6433 = vmatprep.subr.bf16.mxu0 %v7187_v0 }
 0xe29   :  { %6435 = vmatpush3.bf16.msra.mxu0 %v7403_v14 }
 0xe2a   :  { %6038 = vmatprep.subr.mxu0 %v7189_v1 }
 0xef7   :  { %v1027_v3 = vpop.f32.mrb[8].mxu0 }
 0xef8   :  { %v1028_v4 = vadd.f32 %v7426_v18, %v1027_v3  ;;  %v6005_v5 = vpop.f32.mrb[9].mxu0 }
 0xefa   :  { %v1032_v6 = vrot.slane %v1028_v4, 3  ;;  %v1033_v8 = vrot.slane %v1028_v4, 4 }
 0xefc   :  { %1052 = vrot.lane.b32.xlu0 %v1033_v8, %s7190_s5  ;;  %1050 = vrot.lane.b32.xlu1 %v1032_v6, %s7190_s5  ;;  %v1036_v11 = vadd.f32 %v1032_v6, %v7435_v26  ;;  %v1037_v9 = vadd.f32 %v1033_v8, %v7432_v24 }
 0xefe   :  { %v5611_v10 = vmul.f32 -1.442695, %v1036_v11  ;;  %v5612_v12 = vmul.f32 -1.442695, %v1037_v9 }
 0xf00   :  { %6740 = vpow2.f32 %v5611_v10 }
 0xf01   :  { %6742 = vpow2.f32 %v5612_v12 }
 0xf0a   :  { %v6741_v14 = vpop.eup %6740 }
 0xf0b   :  { %v6743_v13 = vpop.eup %6742  ;;  %v1044_v16 = vadd.f32 1.0, %v6741_v14 }
 0xf0c   :  { %v1045_v17 = vadd.f32 1.0, %v6743_v13 }
 0xf0d   :  { %6744 = vrcp.f32 %v1044_v16 }
 0xf0e   :  { %6746 = vrcp.f32 %v1045_v17 }
 0xf17   :  { %v6745_v19 = vpop.eup %6744 }
 0xf18   :  { %v6747_v20 = vpop.eup %6746  ;;  %v1070_v34 = vsub.f32 1.0, %v6745_v19  ;;  %v1086_v39 = vmul.f32 %v6745_v19, %v1082_v35 }
 0xf19   :  { %v1071_v33 = vsub.f32 1.0, %v6747_v20  ;;  %v1087_v36 = vmul.f32 %v6747_v20, %v1083_v50 }
 0xf6e   :  { %v1053_v21 = vpop.permute.xlu0 %1052  ;;  %v1051_v22 = vpop.permute.xlu1 %1050 }
 0xf6f   :  { %v1057_v23 = vmul.f32 %v6747_v20, %v1053_v21  ;;  %v1056_v25 = vmul.f32 %v6745_v19, %v1051_v22 }
 0xf71   :  { %1062 = vrot.lane.b32.xlu0 %v1057_v23, %s7190_s5  ;;  %1060 = vrot.lane.b32.xlu1 %v1056_v25, %s7190_s5 }
 0xfe3   :  { %v1063_v27 = vpop.permute.xlu0 %1062  ;;  %v1061_v28 = vpop.permute.xlu1 %1060 }
 0xfe4   :  { %v1067_v29 = vadd.f32 %v1063_v27, %v7432_v24  ;;  %v1066_v30 = vadd.f32 %v1061_v28, %v7435_v26 }
 0xfe6   :  { %6748 = vtanh.f32 %v1067_v29 }
 0xfe7   :  { %6750 = vtanh.f32 %v1066_v30 }
 0xff0   :  { %v6749_v31 = vpop.eup %6748 }
 0xff1   :  { %v6751_v32 = vpop.eup %6750  ;;  %1076 = vrot.lane.b32.xlu0 %v6749_v31, %s7191_s13 }
 0xff2   :  { %1074 = vrot.lane.b32.xlu1 %v6751_v32, %s7191_s13 }
0x1063   :  { %v1077_v56 = vpop.permute.xlu0 %1076 }
0x1064   :  { %v1081_v37 = vmul.f32 %v1077_v56, %v1071_v33  ;;  %v1075_v38 = vpop.permute.xlu1 %1074 }
0x1065   :  { %v1080_v40 = vmul.f32 %v1075_v38, %v1070_v34 }
0x1066   :  { %v7582_v41 = vadd.f32 %v1087_v36, %v1081_v37 }
0x1067   :  { %v7584_v42 = vadd.f32 %v1086_v39, %v1080_v40 }
0x1068   :  { %v1093_v43 = vrot.slane %v7582_v41, 4  ;;  %v7590_v44 = vsel %vm1378_vm7, %v7556_v60, %v7582_v41  ;;  %v1221_v16 = vrot.slane %v7582_v41, 7 }
0x1069   :  { %v1092_v45 = vrot.slane %v7584_v42, 5  ;;  %v7596_v46 = vsel %vm1378_vm7, %v7560_v62, %v7584_v42  ;;  %v1220_v20 = vrot.slane %v7584_v42, 7 }
0x106b   :  { %v1094_v47 = vsel %vm406_vm2, %v1093_v43, %v1092_v45 }
0x106c   :  { %1095 = vrot.lane.b32.xlu1 %v1094_v47, %s7191_s13 }
0x10de   :  { %v1096_v48 = vpop.permute.xlu1 %1095 }
0x10df   :  { %6015 = vmatmul.mubr.msk.f32.vlgmr.msra.gmra.mrb[4].mxu1 %vm188_vm1, %v1096_v48 }
0x10e0   :  { %6029 = vmatpush3.xpose.msk.msra.mxu1 %vm188_vm1, %v7391_v7  ;;  %6030 = vmatprep.mubr.msk.f32.mxu1 %vm7188_vm0, %v7189_v1 }
0x10e1   :  { %6033 = vmatprep.subr.mxu1 %v7189_v1 }
0x10e3   :  { %6031 = vmatmul.mubr.msk.f32.vlgmr.msra.gmra.mrb[6].mxu1 %vm188_vm1, %v7391_v7 }
0x10e4   :  { %6034 = vmatpush3.xpose.msk.msra.mxu1 %vm188_vm1, %v7405_v15  ;;  %6035 = vmatprep.mubr.msk.f32.mxu1 %vm7188_vm0, %v7189_v1 }
0x10e5   :  { %6043 = vmatprep.subr.mxu1 %v7189_v1 }
0x10e7   :  { %6036 = vmatmul.mubr.msk.f32.vlgmr.msra.gmra.mrb[8].mxu1 %vm188_vm1, %v7405_v15 }
0x10e8   :  { %6044 = vmatpush3.msra.mxu1 %v7405_v15  ;;  %6045 = vmatprep.mubr.msk.f32.mxu1 %vm7188_vm0, %v7189_v1 }
0x11b2   :  { %v1165_v49 = vpop.f32.mrb[4].mxu1 }
0x11b3   :  { %v1166_v51 = vadd.f32 %v7426_v18, %v1165_v49  ;;  %v6016_v52 = vpop.f32.mrb[5].mxu1 }
0x11b5   :  { %v1170_v53 = vrot.slane %v1166_v51, 2  ;;  %v1171_v54 = vrot.slane %v1166_v51, 3 }
0x11b6   :  { %v1507_v34 = vpop.f32.mrb[6].mxu1 }
0x11b7   :  { %1190 = vrot.lane.b32.xlu1 %v1171_v54, %s7190_s5  ;;  %1188 = vrot.lane.b32.xlu0 %v1170_v53, %s7190_s5  ;;  %v1174_v55 = vadd.f32 %v1170_v53, %v7435_v26  ;;  %v1175_v57 = vadd.f32 %v1171_v54, %v7432_v24  ;;  %v6032_v35 = vpop.f32.mrb[7].mxu1 }
0x11b9   :  { %v5614_v58 = vmul.f32 -1.442695, %v1174_v55  ;;  %v5615_v59 = vmul.f32 -1.442695, %v1175_v57 }
0x11ba   :  { %v1577_v36 = vpop.f32.mrb[8].mxu1 }
0x11bb   :  { %6752 = vpow2.f32 %v5614_v58  ;;  %v6037_v37 = vpop.f32.mrb[9].mxu1  ;;  %v1582_v57 = vmul.f32 0.17677669, %v1577_v36 }
0x11bc   :  { %6754 = vpow2.f32 %v5615_v59  ;;  %v1581_v59 = vmul.f32 0.17677669, %v1507_v34 }
0x11bd   :  { %v1587_v58 = vsel %vm1583_vm9, %v1582_v57, -inf }
0x11c5   :  { %v6753_v15 = vpop.eup %6752 }
0x11c6   :  { %v6755_v60 = vpop.eup %6754  ;;  %v1182_v61 = vadd.f32 1.0, %v6753_v15  ;;  %v1584_v15 = vsel %vm1583_vm9, %v1581_v59, -inf }
0x11c7   :  { %v1183_v62 = vadd.f32 1.0, %v6755_v60 }
0x11c8   :  { %6756 = vrcp.f32 %v1182_v61 }
0x11c9   :  { %6758 = vrcp.f32 %v1183_v62 }
0x11d2   :  { %v6757_v63 = vpop.eup %6756 }
0x11d3   :  { %v6759_v2 = vpop.eup %6758  ;;  %v1208_v19 = vsub.f32 1.0, %v6757_v63  ;;  %v1224_v25 = vmul.f32 %v6757_v63, %v1220_v20 }
0x11d4   :  { %v1209_v13 = vsub.f32 1.0, %v6759_v2  ;;  %v1225_v21 = vmul.f32 %v6759_v2, %v1221_v16 }
0x1229   :  { %v1191_v3 = vpop.permute.xlu1 %1190  ;;  %v1189_v4 = vpop.permute.xlu0 %1188 }
0x122a   :  { %v1195_v5 = vmul.f32 %v6759_v2, %v1191_v3  ;;  %v1194_v6 = vmul.f32 %v6757_v63, %v1189_v4 }
0x122c   :  { %1200 = vrot.lane.b32.xlu1 %v1195_v5, %s7190_s5  ;;  %1198 = vrot.lane.b32.xlu0 %v1194_v6, %s7190_s5 }
0x129e   :  { %v1201_v8 = vpop.permute.xlu1 %1200  ;;  %v1199_v11 = vpop.permute.xlu0 %1198 }
0x129f   :  { %v1205_v9 = vadd.f32 %v1201_v8, %v7432_v24  ;;  %v1204_v10 = vadd.f32 %v1199_v11, %v7435_v26 }
0x12a1   :  { %6760 = vtanh.f32 %v1205_v9 }
0x12a2   :  { %6762 = vtanh.f32 %v1204_v10 }
0x12ab   :  { %v6761_v12 = vpop.eup %6760 }
0x12ac   :  { %v6763_v14 = vpop.eup %6762  ;;  %1214 = vrot.lane.b32.xlu1 %v6761_v12, %s7191_s13 }
0x12ad   :  { %1212 = vrot.lane.b32.xlu0 %v6763_v14, %s7191_s13 }
0x131e   :  { %v1215_v17 = vpop.permute.xlu1 %1214 }
0x131f   :  { %v1219_v22 = vmul.f32 %v1215_v17, %v1209_v13  ;;  %v1213_v23 = vpop.permute.xlu0 %1212 }
0x1320   :  { %v1218_v27 = vmul.f32 %v1213_v23, %v1208_v19 }
0x1321   :  { %v7631_v28 = vadd.f32 %v1225_v21, %v1219_v22 }
0x1322   :  { %v7633_v29 = vadd.f32 %v1224_v25, %v1218_v27 }
0x1323   :  { %v1231_v30 = vrot.slane %v7631_v28, 5  ;;  %v7639_v31 = vsel %vm1381_vm8, %v7590_v44, %v7631_v28  ;;  %v1359_v13 = vrot.slane %v7631_v28, 7 }
0x1324   :  { %v1230_v32 = vrot.slane %v7633_v29, 6  ;;  %v7645_v33 = vsel %vm1381_vm8, %v7596_v46, %v7633_v29  ;;  %v1358_v17 = vrot.slane %v7633_v29, 7 }
0x1326   :  { %v1232_v50 = vsel %vm406_vm2, %v1231_v30, %v1230_v32 }
0x1327   :  { %1233 = vrot.lane.b32.xlu0 %v1232_v50, %s7191_s13 }
0x1399   :  { %v1234_v56 = vpop.permute.xlu0 %1233 }
0x139a   :  { %6026 = vmatmul.mubr.msk.f32.vlgmr.msra.gmra.mrb[10].mxu0 %vm188_vm1, %v1234_v56 }
0x139b   :  { %6039 = vmatpush3.msra.mxu0 %v7391_v7  ;;  %6040 = vmatprep.mubr.msk.f32.mxu0 %vm7188_vm0, %v7189_v1 }
0x146d   :  { %v1303_v38 = vpop.f32.mrb[10].mxu0 }
0x146e   :  { %v1304_v39 = vadd.f32 %v7426_v18, %v1303_v38  ;;  %v6027_v40 = vpop.f32.mrb[11].mxu0 }
0x1470   :  { %v1308_v41 = vrot.slane %v1304_v39, 1  ;;  %v1309_v42 = vrot.slane %v1304_v39, 2 }
0x1472   :  { %1328 = vrot.lane.b32.xlu0 %v1309_v42, %s7190_s5  ;;  %1326 = vrot.lane.b32.xlu1 %v1308_v41, %s7190_s5  ;;  %v1312_v43 = vadd.f32 %v1308_v41, %v7435_v26  ;;  %v1313_v7 = vadd.f32 %v1309_v42, %v7432_v24 }
0x1474   :  { %v5617_v44 = vmul.f32 -1.442695, %v1312_v43  ;;  %v5618_v45 = vmul.f32 -1.442695, %v1313_v7 }
0x1476   :  { %6764 = vpow2.f32 %v5617_v44 }
0x1477   :  { %6766 = vpow2.f32 %v5618_v45 }
0x1480   :  { %v6765_v46 = vpop.eup %6764 }
0x1481   :  { %v6767_v47 = vpop.eup %6766  ;;  %v1320_v48 = vadd.f32 1.0, %v6765_v46 }
0x1482   :  { %v1321_v49 = vadd.f32 1.0, %v6767_v47 }
0x1483   :  { %6768 = vrcp.f32 %v1320_v48  ;;  %v7008_v48 = vld [vmem:[#allocation2 + $0x8] sm:$0xff] }
0x1484   :  { %6770 = vrcp.f32 %v1321_v49  ;;  %v7009_v49 = vld [vmem:[#allocation2] sm:$0xff] }
0x148d   :  { %v6769_v18 = vpop.eup %6768 }
0x148e   :  { %v6771_v51 = vpop.eup %6770  ;;  %v1346_v16 = vsub.f32 1.0, %v6769_v18  ;;  %v1362_v23 = vmul.f32 %v6769_v18, %v1358_v17 }
0x148f   :  { %v1347_v14 = vsub.f32 1.0, %v6771_v51  ;;  %v1363_v21 = vmul.f32 %v6771_v51, %v1359_v13 }
0x14e4   :  { %v1329_v52 = vpop.permute.xlu0 %1328  ;;  %v1327_v53 = vpop.permute.xlu1 %1326 }
0x14e5   :  { %v1333_v54 = vmul.f32 %v6771_v51, %v1329_v52  ;;  %v1332_v55 = vmul.f32 %v6769_v18, %v1327_v53 }
0x14e7   :  { %1338 = vrot.lane.b32.xlu0 %v1333_v54, %s7190_s5  ;;  %1336 = vrot.lane.b32.xlu1 %v1332_v55, %s7190_s5 }
0x1506   :  { %1588 = vmax.xlane.f32.xlu0 %v1587_v58 }
0x150b   :  { %1585 = vmax.xlane.f32.xlu1 %v1584_v15 }
0x1559   :  { %v1339_v60 = vpop.permute.xlu0 %1338  ;;  %v1337_v61 = vpop.permute.xlu1 %1336 }
0x155a   :  { %v1343_v62 = vadd.f32 %v1339_v60, %v7432_v24  ;;  %v1342_v63 = vadd.f32 %v1337_v61, %v7435_v26 }
0x155c   :  { %6772 = vtanh.f32 %v1343_v62 }
0x155d   :  { %6774 = vtanh.f32 %v1342_v63 }
0x1566   :  { %v6773_v2 = vpop.eup %6772 }
0x1567   :  { %v6775_v3 = vpop.eup %6774  ;;  %1352 = vrot.lane.b32.xlu1 %v6773_v2, %s7191_s13 }
0x1568   :  { %1350 = vrot.lane.b32.xlu0 %v6775_v3, %s7191_s13 }
0x1593   :  { %v1589_v4 = vpop.xlane.xlu0 %1588 }
0x1594   :  { %v1591_v5 = vsub.f32 %v1582_v57, %v1589_v4 }
0x1596   :  { %v1594_v6 = vmul.f32 1.442695, %v1591_v5 }
0x1598   :  { %6776 = vpow2.f32 %v1594_v6  ;;  %v1586_v8 = vpop.xlane.xlu1 %1585 }
0x1599   :  { %v1590_v11 = vsub.f32 %v1581_v59, %v1586_v8 }
0x159b   :  { %v1592_v9 = vmul.f32 1.442695, %v1590_v11 }
0x159d   :  { %6778 = vpow2.f32 %v1592_v9 }
0x15a2   :  { %v6777_v10 = vpop.eup %6776 }
0x15a3   :  { %v1599_v24 = vsel %vm1583_vm9, %v6777_v10, 0.0 }
0x15a4   :  { %1600 = vadd.xlane.f32.xlu0 %v1599_v24 }
0x15a7   :  { %v6779_v26 = vpop.eup %6778 }
0x15a8   :  { %v1596_v12 = vsel %vm1583_vm9, %v6779_v26, 0.0 }
0x15a9   :  { %1597 = vadd.xlane.f32.xlu1 %v1596_v12 }
0x15d9   :  { %v1353_v19 = vpop.permute.xlu1 %1352 }
0x15da   :  { %v1351_v20 = vpop.permute.xlu0 %1350  ;;  %v1357_v22 = vmul.f32 %v1353_v19, %v1347_v14 }
0x15db   :  { %v1356_v25 = vmul.f32 %v1351_v20, %v1346_v16 }
0x15dc   :  { %v7670_v27 = vadd.f32 %v1363_v21, %v1357_v22  ;;  %v1805_v21 = vld [vmem:[%s7279_s20] sm:$0xff]  ;;  %v1806_v22 = vld [vmem:[%s7279_s20 + $0x8] sm:$0xff] }
0x15dd   :  { %v7672_v30 = vadd.f32 %v1362_v23, %v1356_v25  ;;  %v1807_v23 = vld [vmem:[%s7279_s20 + $0x10] sm:$0xff]  ;;  %v6436_v25 = vpack.c.bf16 %v1806_v22, %v1805_v21 }
0x15de   :  { %v1386_v32 = vsel %vm1384_vm10, %v7639_v31, %v7670_v27 }
0x15df   :  { %v1385_v28 = vsel %vm1384_vm10, %v7645_v33, %v7672_v30  ;;  %v1404_v29 = vsel %vm1400_vm11, %v1386_v32, -inf  ;;  %6437 = vmatprep.subr.bf16.mxu0 %v6436_v25 }
0x15e0   :  { %v1401_v50 = vsel %vm1400_vm11, %v1385_v28, -inf  ;;  %1405 = vmax.xlane.f32.xlu1 %v1404_v29  ;;  %v1810_v29 = vld [vmem:[%s7289_s4] sm:$0xff] }
0x15e1   :  { %1402 = vmax.xlane.f32.xlu0 %v1401_v50  ;;  %v1811_v50 = vld [vmem:[%s7289_s4 + $0x8] sm:$0xff] }
0x1631   :  { %v1601_v56 = vpop.xlane.xlu0 %1600 }
0x1632   :  { %6780 = vrcp.f32 %v1601_v56  ;;  %v1812_v56 = vld [vmem:[%s7289_s4 + $0x10] sm:$0xff] }
0x1636   :  { %v1598_v34 = vpop.xlane.xlu1 %1597 }
0x1637   :  { %6782 = vrcp.f32 %v1598_v34  ;;  %v6444_v34 = vpack.c.bf16 %v1811_v50, %v1810_v29 }
0x1639   :  { %6445 = vmatprep.subr.bf16.mxu1 %v6444_v34 }
0x163c   :  { %v6781_v35 = vpop.eup %6780 }
0x163d   :  { %v1605_v36 = vmul.f32 %v6781_v35, %v6777_v10  ;;  %v1813_v35 = vld [vmem:[%s7289_s4 + $0x18] sm:$0xff] }
0x163f   :  { %6046 = vmatmul.mubr.msk.f32.vlgmr.msra.gmra.mrb[10].mxu1 %vm1583_vm9, %v1605_v36  ;;  %v6448_v36 = vpack.c.bf16 %v1813_v35, %v1812_v56 }
0x1640   :  { %6447 = vmatpush3.bf16.msra.mxu1 %v6444_v34  ;;  %v5635_v34 = vld [vmem:[%s8385_s25] ss:$0 sm:$0xff] }
0x1641   :  { %v6783_v37 = vpop.eup %6782  ;;  %6449 = vmatprep.subr.bf16.mxu1 %v6448_v36 }
0x1642   :  { %v1604_v31 = vmul.f32 %v6783_v37, %v6779_v26  ;;  %v1814_v37 = vld [vmem:[%s7289_s4 + $0x20] sm:$0xff] }
0x1644   :  { %6041 = vmatmul.mubr.msk.f32.vlgmr.msra.gmra.mrb[12].mxu0 %vm1583_vm9, %v1604_v31  ;;  %v1815_v31 = vld [vmem:[%s7289_s4 + $0x28] sm:$0xff]  ;;  %6451 = vmatpush3.bf16.msra.mxu1 %v6448_v36 }
0x1645   :  { %6439 = vmatpush3.bf16.msra.mxu0 %v6436_v25 }
0x166d   :  { %v1406_v38 = vpop.xlane.xlu1 %1405 }
0x166e   :  { %v1403_v33 = vpop.xlane.xlu0 %1402  ;;  %v1408_v39 = vsub.f32 %v1386_v32, %v1406_v38  ;;  %v1808_v32 = vld [vmem:[%s7279_s20 + $0x18] sm:$0xff]  ;;  %v6452_v38 = vpack.c.bf16 %v1815_v31, %v1814_v37  ;;  %s8391_s20 = sld [smem:[#allocation18_spill]] }
0x166f   :  { %v1407_v40 = vsub.f32 %v1385_v28, %v1403_v33  ;;  %v6440_v28 = vpack.c.bf16 %v1808_v32, %v1807_v23  ;;  %v7767_v32 = vld [vmem:[%s8384_s21] ss:$0 sm:$0xff] }
0x1670   :  { %v1411_v41 = vmul.f32 1.442695, %v1408_v39  ;;  %6453 = vmatprep.subr.bf16.mxu1 %v6452_v38 }
0x1671   :  { %v1409_v42 = vmul.f32 1.442695, %v1407_v40  ;;  %6441 = vmatprep.subr.bf16.mxu0 %v6440_v28  ;;  %6455 = vmatpush3.bf16.msra.mxu1 %v6452_v38 }
0x1672   :  { %6784 = vpow2.f32 %v1411_v41  ;;  %6443 = vmatpush3.bf16.msra.mxu0 %v6440_v28 }
0x1673   :  { %6786 = vpow2.f32 %v1409_v42 }
0x167c   :  { %v6785_v43 = vpop.eup %6784 }
0x167d   :  { %v6787_v7 = vpop.eup %6786  ;;  %1417 = vrot.lane.b32.xlu1 %v6785_v43, %s7191_s13 }
0x167e   :  { %1415 = vrot.lane.b32.xlu0 %v6787_v7, %s7191_s13 }
0x16ef   :  { %v1418_v44 = vpop.permute.xlu1 %1417 }
0x16f0   :  { %v1416_v45 = vpop.permute.xlu0 %1415  ;;  %v1424_v46 = vsel %vm188_vm1, %v1418_v44, 0.0  ;;  %v5625_v44 = vld [vmem:[%s7319_s12] ss:$0 sm:$0xff]  ;;  %s8390_s12 = sld [smem:[#allocation26_spill]] }
0x16f1   :  { %v1421_v47 = vsel %vm188_vm1, %v1416_v45, 0.0  ;;  %1425 = vadd.xlane.f32.xlu0 %v1424_v46 }
0x16f2   :  { %1422 = vadd.xlane.f32.xlu1 %v1421_v47  ;;  %v5626_v47 = vld [vmem:[%s7324_s24] ss:$0 sm:$0xff]  ;;  %s8389_s24 = sld [smem:[#allocation19_spill]] }
0x1703   :  { %1433 = vrot.lane.b32.xlu1 %v7008_v48, %s7192_s17 }
0x1707   :  { %1431 = vrot.lane.b32.xlu0 %v7009_v49, %s7192_s17 }
0x1712   :  { %v1756_v18 = vpop.f32.mrb[10].mxu1 }
0x1713   :  { %v6047_v51 = vpop.f32.mrb[11].mxu1 }
0x1717   :  { %v1679_v52 = vpop.f32.mrb[12].mxu0 }
0x1718   :  { %v6042_v53 = vpop.f32.mrb[13].mxu0 }
0x1719   :  { %v166_v53 = vld [vmem:[#allocation7] sm:$0xff] }
0x177e   :  { %v1426_v54 = vpop.xlane.xlu0 %1425 }
0x177f   :  { %6788 = vrcp.f32 %v1426_v54  ;;  %v1423_v55 = vpop.xlane.xlu1 %1422 }
0x1780   :  { %6790 = vrcp.f32 %v1423_v55  ;;  %v167_v55 = vld [vmem:[#allocation7 + $0x8] sm:$0xff] }
0x1782   :  { %v1432_v15 = vpop.permute.xlu0 %1431 }
0x1783   :  { %v1434_v58 = vpop.permute.xlu1 %1433 }
0x1789   :  { %v6789_v57 = vpop.eup %6788 }
0x178a   :  { %v6791_v59 = vpop.eup %6790  ;;  %v1430_v60 = vmul.f32 %v6789_v57, %v6785_v43  ;;  %v1816_v57 = vld [vmem:[%s7289_s4 + $0x30] sm:$0xff] }
0x178b   :  { %v1429_v61 = vmul.f32 %v6791_v59, %v6787_v7  ;;  %v2080_v59 = vld [vmem:[%s7239_s3] sm:$0xff] }
0x178c   :  { %v1438_v62 = vmul.f32 %v1434_v58, %v1430_v60  ;;  %v2081_v60 = vld [vmem:[%s7239_s3 + $0x8] sm:$0xff] }
0x178d   :  { %v1437_v63 = vmul.f32 %v1432_v15, %v1429_v61  ;;  %v6464_v61 = vpack.c.bf16 %v2081_v60, %v2080_v59 }
0x178e   :  { %v1440_v2 = vadd.f32 %v1438_v62, %v1434_v58  ;;  %v1817_v58 = vld [vmem:[%s7289_s4 + $0x38] sm:$0xff]  ;;  %v2082_v62 = vld [vmem:[%s7239_s3 + $0x10] sm:$0xff]  ;;  %s8393_s4 = sld [smem:[#allocation22_spill]] }
0x178f   :  { %v1439_v3 = vadd.f32 %v1437_v63, %v1432_v15  ;;  %v6456_v15 = vpack.c.bf16 %v1817_v58, %v1816_v57  ;;  %v2083_v63 = vld [vmem:[%s7239_s3 + $0x18] sm:$0xff]  ;;  %s8387_s3 = sld [smem:[#allocation25_spill]] }
0x1790   :  { %1684 = vrot.lane.b32.xlu0 %v1440_v2, %s7191_s13  ;;  %v6468_v2 = vpack.c.bf16 %v2083_v63, %v2082_v62 }
0x1791   :  { %1607 = vrot.lane.b32.xlu1 %v1439_v3, %s7191_s13  ;;  %6457 = vmatprep.subr.bf16.mxu1 %v6456_v15  ;;  %v5627_v3 = vld [vmem:[%s7284_s27] ss:$0 sm:$0xff]  ;;  %s8392_s27 = sld [smem:[#allocation21_spill]] }
0x1792   :  { %6459 = vmatpush3.bf16.msra.mxu1 %v6456_v15 }
0x1793   :  { %6472 = vmatprep.subr.bf16.mxu1 %v7187_v0 }
0x1802   :  { %v1685_v4 = vpop.permute.xlu0 %1684 }
0x1803   :  { %v1757_v5 = vadd.f32 %v1756_v18, %v1685_v4  ;;  %v1608_v6 = vpop.permute.xlu1 %1607 }
0x1804   :  { %v1680_v8 = vadd.f32 %v1679_v52, %v1608_v6 }
0x1805   :  { %v1765_v11 = vsel %vm188_vm1, %v1757_v5, 0.0 }
0x1806   :  { %1766 = vadd.xlane.f32.xlu0 %v1765_v11  ;;  %v1762_v9 = vsel %vm188_vm1, %v1680_v8, 0.0  ;;  %v2085_v11 = vld [vmem:[%s7244_s8 + $0x8] sm:$0xff] }
0x1807   :  { %1763 = vadd.xlane.f32.xlu1 %v1762_v9 }
0x1893   :  { %v1767_v10 = vpop.xlane.xlu0 %1766 }
0x1894   :  { %v1770_v24 = vmul.f32 0.03125, %v1767_v10  ;;  %v1764_v26 = vpop.xlane.xlu1 %1763 }
0x1895   :  { %v1769_v12 = vmul.f32 0.03125, %v1764_v26 }
0x1896   :  { %v1772_v14 = vsub.f32 %v1757_v5, %v1770_v24 }
0x1897   :  { %v1771_v13 = vsub.f32 %v1680_v8, %v1769_v12  ;;  %v2084_v8 = vld [vmem:[%s7244_s8] sm:$0xff] }
0x1898   :  { %v1774_v16 = vmul.f32 %v1772_v14, %v1772_v14  ;;  %v7721_v24 = vpack.c.bf16 %v2085_v11, %v2084_v8 }
0x1899   :  { %v1773_v17 = vmul.f32 %v1771_v13, %v1771_v13 }
0x189a   :  { %v1778_v19 = vsel %vm188_vm1, %v1774_v16, 0.0 }
0x189b   :  { %1779 = vadd.xlane.f32.xlu1 %v1778_v19  ;;  %v1775_v20 = vsel %vm188_vm1, %v1773_v17, 0.0 }
0x189c   :  { %1776 = vadd.xlane.f32.xlu0 %v1775_v20 }
0x1928   :  { %v1780_v33 = vpop.xlane.xlu1 %1779 }
0x1929   :  { %v1777_v39 = vpop.xlane.xlu0 %1776  ;;  %v1782_v40 = vmul.f32 0.03125, %v1780_v33 }
0x192a   :  { %v1781_v41 = vmul.f32 0.03125, %v1777_v39 }
0x192b   :  { %v1784_v42 = vadd.f32 1e-05, %v1782_v40 }
0x192c   :  { %v1783_v43 = vadd.f32 1e-05, %v1781_v41 }
0x192d   :  { %6792 = vrsqrt.f32 %v1784_v42 }
0x192e   :  { %6794 = vrsqrt.f32 %v1783_v43 }
0x1937   :  { %v6793_v7 = vpop.eup %6792 }
0x1938   :  { %v6795_v45 = vpop.eup %6794  ;;  %v1788_v46 = vmul.f32 %v6793_v7, %v1772_v14  ;;  %v2086_v14 = vld [vmem:[%s7244_s8 + $0x10] sm:$0xff] }
0x1939   :  { %v1787_v48 = vmul.f32 %v6795_v45, %v1771_v13  ;;  %v2087_v13 = vld [vmem:[%s7244_s8 + $0x18] sm:$0xff]  ;;  %s8388_s8 = sld [smem:[#allocation24_spill]] }
0x193a   :  { %v1796_v49 = vmul.f32 %v5625_v44, %v1788_v46  ;;  %v7738_v20 = vpack.c.bf16 %v2087_v13, %v2086_v14 }
0x193b   :  { %v1795_v18 = vmul.f32 %v5625_v44, %v1787_v48 }
0x193c   :  { %v1804_v51 = vadd.f32 %v5626_v47, %v1796_v49 }
0x193d   :  { %v1803_v52 = vadd.f32 %v5626_v47, %v1795_v18 }
0x193f   :  { %6056 = vmatprep.mubr.msk.f32.mxu0 %vm188_vm1, %v1803_v52  ;;  %v6460_v54 = vpack.c.bf16 %v1804_v51, %v1803_v52 }
0x1940   :  { %6057 = vmatmul.mubr.msk.f32.vlgmr.msra.gmra.mrb[14].mxu0 %vm188_vm1, %v1804_v51 }
0x1941   :  { %6461 = vmatprep.subr.bf16.mxu0 %v6460_v54  ;;  %6082 = vmatprep.mubr.msk.f32.mxu0 %vm1996_vm12, %v166_v53 }
0x1942   :  { %6463 = vmatpush3.bf16.msra.mxu0 %v6460_v54 }
0x1943   :  { %6465 = vmatprep.subr.bf16.mxu0 %v6464_v61 }
0x1945   :  { %6083 = vmatmul.mubr.msk.f32.vlgmr.msra.gmra.mrb[16].mxu0 %vm1996_vm12, %v167_v55 }
0x1946   :  { %6467 = vmatpush3.bf16.msra.mxu0 %v6464_v61 }
0x1947   :  { %6469 = vmatprep.subr.bf16.mxu0 %v6468_v2 }
0x194a   :  { %6471 = vmatpush3.bf16.msra.mxu0 %v6468_v2 }
0x194b   :  { %6478 = vmatprep.subr.bf16.mxu0 %v7187_v0 }
0x1a13   :  { %v6058_v4 = vpop.f32.mrb[14].mxu0 }
0x1a14   :  { %v1903_v5 = vadd.f32 %v6058_v4, %v5627_v3  ;;  %v1897_v6 = vpop.f32.mrb[15].mxu0 }
0x1a15   :  { %v1898_v9 = vadd.f32 %v5627_v3, %v1897_v6 }
0x1a16   :  { %v1907_v26 = vmax.f32 %v1903_v5, 0.0 }
0x1a17   :  { %v1906_v10 = vmax.f32 %v1898_v9, 0.0 }
0x1a18   :  { %v7723_v12 = vpop.f32.mrb[16].mxu0 }
0x1a19   :  { %6075 = vmatprep.mubr.msk.f32.mxu1 %vm1914_vm13, %v1906_v10  ;;  %v7728_v16 = vpop.f32.mrb[17].mxu0  ;;  %v7735_v19 = vsub.f32 %v1804_v51, %v7723_v12 }
0x1a1a   :  { %v7731_v17 = vsub.f32 %v1803_v52, %v7728_v16  ;;  %6076 = vmatmul.mubr.msk.f32.vlgmr.msra.gmra.mrb[12].mxu1 %vm1914_vm13, %v1907_v26 }
0x1a1b   :  { %6474 = vmatpush3.bf16.msra.mxu1 %v7721_v24  ;;  %6104 = vmatprep.mubr.msk.f32.mxu1 %vm7188_vm0, %v7189_v1 }
0x1a1c   :  { %6093 = vmatprep.mubr.msk.f32.mxu0 %vm188_vm1, %v7731_v17  ;;  %6475 = vmatprep.subr.bf16.mxu1 %v7187_v0 }
0x1a1d   :  { %6094 = vmatmul.mubr.msk.f32.vlgmr.msra.gmra.mrb[18].mxu0 %vm188_vm1, %v7735_v19 }
0x1a1e   :  { %6480 = vmatpush3.bf16.msra.mxu0 %v7721_v24  ;;  %6115 = vmatprep.mubr.msk.f32.mxu0 %vm7188_vm0, %v7189_v1 }
0x1a1f   :  { %6477 = vmatpush3.bf16.msra.mxu1 %v7738_v20  ;;  %6481 = vmatprep.subr.bf16.mxu0 %v7187_v0 }
0x1a20   :  { %6484 = vmatprep.subr.bf16.mxu1 %v7187_v0 }
0x1a22   :  { %6105 = vmatmul.mubr.f32.vlgmr.msra.gmra.mrb[14].mxu1 %v7189_v1  ;;  %6483 = vmatpush3.bf16.msra.mxu0 %v7738_v20 }
0x1a23   :  { %6486 = vmatpush3.bf16.msra.mxu1 %v7721_v24  ;;  %6126 = vmatprep.mubr.msk.f32.mxu1 %vm7188_vm0, %v7189_v1 }
0x1a24   :  { %6487 = vmatprep.subr.bf16.mxu1 %v7187_v0  ;;  %6490 = vmatprep.subr.bf16.mxu0 %v7187_v0 }
0x1a27   :  { %6489 = vmatpush3.bf16.msra.mxu1 %v7738_v20 }
0x1a28   :  { %6496 = vmatprep.subr.bf16.mxu1 %v7187_v0 }
0x1aed   :  { %v7762_v21 = vpop.f32.mrb[12].mxu1 }
0x1aee   :  { %v7764_v22 = vpop.f32.mrb[13].mxu1 }
0x1af0   :  { %v6095_v23 = vpop.f32.mrb[18].mxu0 }
0x1af1   :  { %v2168_v25 = vpop.f32.mrb[19].mxu0  ;;  %v7775_v36 = vadd.f32 %v6095_v23, %v5635_v34 }
0x1af2   :  { %v7773_v35 = vadd.f32 %v5635_v34, %v2168_v25 }
0x1af5   :  { %v2249_v28 = vpop.f32.mrb[14].mxu1 }
0x1af6   :  { %v2250_v29 = vadd.f32 %v7767_v32, %v2249_v28  ;;  %v6106_v50 = vpop.f32.mrb[15].mxu1 }
0x1af8   :  { %2271 = vrot.lane.b32.xlu1 %v2250_v29, %s7190_s5  ;;  %v2254_v56 = vrot.slane %v2250_v29, 1  ;;  %v2257_v37 = vadd.f32 %v2250_v29, %v7773_v35 }
0x1afa   :  { %2273 = vrot.lane.b32.xlu0 %v2254_v56, %s7190_s5  ;;  %v2258_v31 = vadd.f32 %v2254_v56, %v7775_v36  ;;  %v5639_v38 = vmul.f32 -1.442695, %v2257_v37 }
0x1afc   :  { %v5640_v33 = vmul.f32 -1.442695, %v2258_v31  ;;  %6796 = vpow2.f32 %v5639_v38 }
0x1afe   :  { %6798 = vpow2.f32 %v5640_v33 }
0x1b06   :  { %v6797_v39 = vpop.eup %6796 }
0x1b07   :  { %v2265_v41 = vadd.f32 1.0, %v6797_v39 }
0x1b08   :  { %v6799_v40 = vpop.eup %6798 }
0x1b09   :  { %v2266_v42 = vadd.f32 1.0, %v6799_v40  ;;  %6800 = vrcp.f32 %v2265_v41 }
0x1b0b   :  { %6802 = vrcp.f32 %v2266_v42 }
0x1b13   :  { %v6801_v43 = vpop.eup %6800 }
0x1b14   :  { %v2291_v55 = vsub.f32 1.0, %v6801_v43  ;;  %v2303_v61 = vmul.f32 0.0, %v6801_v43 }
0x1b15   :  { %v6803_v45 = vpop.eup %6802 }
0x1b16   :  { %v2292_v57 = vsub.f32 1.0, %v6803_v45  ;;  %v2304_v15 = vmul.f32 0.0, %v6803_v45 }
0x1b6a   :  { %v2272_v7 = vpop.permute.xlu1 %2271 }
0x1b6b   :  { %v2277_v44 = vmul.f32 %v6801_v43, %v2272_v7 }
0x1b6c   :  { %v2274_v46 = vpop.permute.xlu0 %2273 }
0x1b6d   :  { %v2278_v47 = vmul.f32 %v6803_v45, %v2274_v46  ;;  %2281 = vrot.lane.b32.xlu0 %v2277_v44, %s7190_s5 }
0x1b6f   :  { %2283 = vrot.lane.b32.xlu1 %v2278_v47, %s7190_s5 }
0x1bdf   :  { %v2282_v48 = vpop.permute.xlu0 %2281 }
0x1be0   :  { %v2287_v49 = vadd.f32 %v2282_v48, %v7773_v35 }
0x1be1   :  { %v2284_v18 = vpop.permute.xlu1 %2283 }
0x1be2   :  { %6804 = vtanh.f32 %v2287_v49  ;;  %v2288_v51 = vadd.f32 %v2284_v18, %v7775_v36 }
0x1be4   :  { %6806 = vtanh.f32 %v2288_v51 }
0x1bec   :  { %v6805_v52 = vpop.eup %6804 }
0x1bed   :  { %2295 = vrot.lane.b32.xlu0 %v6805_v52, %s7191_s13 }
0x1bee   :  { %v6807_v53 = vpop.eup %6806 }
0x1bef   :  { %2297 = vrot.lane.b32.xlu1 %v6807_v53, %s7191_s13 }
0x1c5f   :  { %v2296_v54 = vpop.permute.xlu0 %2295 }
0x1c60   :  { %v2301_v59 = vmul.f32 %v2296_v54, %v2291_v55 }
0x1c61   :  { %v2298_v58 = vpop.permute.xlu1 %2297 }
0x1c62   :  { %v2302_v60 = vmul.f32 %v2298_v58, %v2292_v57  ;;  %v7787_v63 = vadd.f32 %v2303_v61, %v2301_v59 }
0x1c64   :  { %v7785_v62 = vadd.f32 %v2304_v15, %v2302_v60  ;;  %v2435_v45 = vrot.slane %v7787_v63, 7 }
0x1c66   :  { %v2309_v2 = vrot.slane %v7785_v62, 7 }
0x1c68   :  { %v2310_v3 = vsel %vm406_vm2, %v2309_v2, %v7787_v63 }
0x1c69   :  { %2311 = vrot.lane.b32.xlu1 %v2310_v3, %s7191_s13 }
0x1cdb   :  { %v2312_v4 = vpop.permute.xlu1 %2311 }
0x1cdc   :  { %6116 = vmatmul.mubr.msk.f32.vlgmr.msra.gmra.mrb[20].mxu0 %vm188_vm1, %v2312_v4 }
0x1cdd   :  { %6492 = vmatpush3.bf16.msra.mxu0 %v7721_v24  ;;  %6137 = vmatprep.mubr.msk.f32.mxu0 %vm7188_vm0, %v7189_v1 }
0x1cde   :  { %6493 = vmatprep.subr.bf16.mxu0 %v7187_v0 }
0x1ce1   :  { %6495 = vmatpush3.bf16.msra.mxu0 %v7738_v20 }
0x1ce2   :  { %6502 = vmatprep.subr.bf16.mxu0 %v7187_v0 }
0x1daf   :  { %v2381_v5 = vpop.f32.mrb[20].mxu0 }
0x1db0   :  { %v2382_v6 = vadd.f32 %v7767_v32, %v2381_v5  ;;  %v6117_v8 = vpop.f32.mrb[21].mxu0 }
0x1db2   :  { %2405 = vrot.lane.b32.xlu1 %v2382_v6, %s7190_s5  ;;  %v2386_v11 = vrot.slane %v2382_v6, 7  ;;  %v2390_v9 = vadd.f32 %v2382_v6, %v7775_v36 }
0x1db4   :  { %2403 = vrot.lane.b32.xlu0 %v2386_v11, %s7190_s5  ;;  %v2389_v10 = vadd.f32 %v2386_v11, %v7773_v35  ;;  %v5643_v26 = vmul.f32 -1.442695, %v2390_v9 }
0x1db6   :  { %v5642_v14 = vmul.f32 -1.442695, %v2389_v10  ;;  %6808 = vpow2.f32 %v5643_v26 }
0x1db8   :  { %6810 = vpow2.f32 %v5642_v14 }
0x1dc0   :  { %v6809_v13 = vpop.eup %6808 }
0x1dc1   :  { %v2398_v25 = vadd.f32 1.0, %v6809_v13 }
0x1dc2   :  { %v6811_v23 = vpop.eup %6810 }
0x1dc3   :  { %v2397_v28 = vadd.f32 1.0, %v6811_v23  ;;  %6812 = vrcp.f32 %v2398_v25 }
0x1dc5   :  { %6814 = vrcp.f32 %v2397_v28 }
0x1dcd   :  { %v6813_v29 = vpop.eup %6812 }
0x1dce   :  { %v2424_v7 = vsub.f32 1.0, %v6813_v29  ;;  %v2439_v18 = vmul.f32 %v6813_v29, %v2309_v2 }
0x1dcf   :  { %v6815_v34 = vpop.eup %6814 }
0x1dd0   :  { %v2423_v44 = vsub.f32 1.0, %v6815_v34  ;;  %v2438_v48 = vmul.f32 %v6815_v34, %v2435_v45 }
0x1e24   :  { %v2406_v50 = vpop.permute.xlu1 %2405 }
0x1e25   :  { %v2410_v56 = vmul.f32 %v6813_v29, %v2406_v50 }
0x1e26   :  { %v2404_v37 = vpop.permute.xlu0 %2403 }
0x1e27   :  { %v2409_v31 = vmul.f32 %v6815_v34, %v2404_v37  ;;  %2415 = vrot.lane.b32.xlu1 %v2410_v56, %s7190_s5 }
0x1e29   :  { %2413 = vrot.lane.b32.xlu0 %v2409_v31, %s7190_s5 }
0x1e99   :  { %v2416_v38 = vpop.permute.xlu1 %2415 }
0x1e9a   :  { %v2420_v33 = vadd.f32 %v2416_v38, %v7775_v36 }
0x1e9b   :  { %v2414_v39 = vpop.permute.xlu0 %2413 }
0x1e9c   :  { %6816 = vtanh.f32 %v2420_v33  ;;  %v2419_v40 = vadd.f32 %v2414_v39, %v7773_v35 }
0x1e9e   :  { %6818 = vtanh.f32 %v2419_v40 }
0x1ea6   :  { %v6817_v41 = vpop.eup %6816 }
0x1ea7   :  { %2429 = vrot.lane.b32.xlu1 %v6817_v41, %s7191_s13 }
0x1ea8   :  { %v6819_v42 = vpop.eup %6818 }
0x1ea9   :  { %2427 = vrot.lane.b32.xlu0 %v6819_v42, %s7191_s13 }
0x1f19   :  { %v2430_v43 = vpop.permute.xlu1 %2429 }
0x1f1a   :  { %v2434_v47 = vmul.f32 %v2430_v43, %v2424_v7 }
0x1f1b   :  { %v2428_v46 = vpop.permute.xlu0 %2427 }
0x1f1c   :  { %v2433_v49 = vmul.f32 %v2428_v46, %v2423_v44  ;;  %v2441_v52 = vadd.f32 %v2439_v18, %v2434_v47 }
0x1f1e   :  { %v7812_v51 = vadd.f32 %v2438_v48, %v2433_v49  ;;  %v2572_v31 = vrot.slane %v2441_v52, 7  ;;  %v3270_v45 = vsel %vm1366_vm3, %v7785_v62, %v2441_v52 }
0x1f20   :  { %v2444_v53 = vrot.slane %v7812_v51, 1  ;;  %v2571_v39 = vrot.slane %v7812_v51, 7  ;;  %v3269_v47 = vsel %vm1366_vm3, %v7787_v63, %v7812_v51 }
0x1f22   :  { %v2445_v54 = vsel %vm406_vm2, %v2441_v52, %v2444_v53 }
0x1f23   :  { %2446 = vrot.lane.b32.xlu0 %v2445_v54, %s7191_s13 }
0x1f95   :  { %v2447_v55 = vpop.permute.xlu0 %2446 }
0x1f96   :  { %6127 = vmatmul.mubr.msk.f32.vlgmr.msra.gmra.mrb[16].mxu1 %vm188_vm1, %v2447_v55 }
0x1f97   :  { %6498 = vmatpush3.bf16.msra.mxu1 %v7721_v24  ;;  %6148 = vmatprep.mubr.msk.f32.mxu1 %vm7188_vm0, %v7189_v1 }
0x1f98   :  { %6499 = vmatprep.subr.bf16.mxu1 %v7187_v0 }
0x1f9b   :  { %6501 = vmatpush3.bf16.msra.mxu1 %v7738_v20 }
0x1f9c   :  { %6508 = vmatprep.subr.bf16.mxu1 %v7187_v0 }
0x2069   :  { %v2516_v57 = vpop.f32.mrb[16].mxu1 }
0x206a   :  { %v2517_v58 = vadd.f32 %v7767_v32, %v2516_v57  ;;  %v6128_v59 = vpop.f32.mrb[17].mxu1 }
0x206c   :  { %v2521_v15 = vrot.slane %v2517_v58, 6  ;;  %v2522_v60 = vrot.slane %v2517_v58, 7 }
0x206e   :  { %2541 = vrot.lane.b32.xlu0 %v2522_v60, %s7190_s5  ;;  %2539 = vrot.lane.b32.xlu1 %v2521_v15, %s7190_s5  ;;  %v2525_v61 = vadd.f32 %v2521_v15, %v7773_v35  ;;  %v2526_v2 = vadd.f32 %v2522_v60, %v7775_v36 }
0x2070   :  { %v5645_v3 = vmul.f32 -1.442695, %v2525_v61  ;;  %v5646_v4 = vmul.f32 -1.442695, %v2526_v2 }
0x2072   :  { %6820 = vpow2.f32 %v5645_v3 }
0x2073   :  { %6822 = vpow2.f32 %v5646_v4 }
0x207c   :  { %v6821_v5 = vpop.eup %6820 }
0x207d   :  { %v6823_v6 = vpop.eup %6822  ;;  %v2533_v8 = vadd.f32 1.0, %v6821_v5 }
0x207e   :  { %v2534_v11 = vadd.f32 1.0, %v6823_v6 }
0x207f   :  { %6824 = vrcp.f32 %v2533_v8 }
0x2080   :  { %6826 = vrcp.f32 %v2534_v11 }
0x2089   :  { %v6825_v9 = vpop.eup %6824 }
0x208a   :  { %v6827_v10 = vpop.eup %6826  ;;  %v2559_v33 = vsub.f32 1.0, %v6825_v9  ;;  %v2575_v43 = vmul.f32 %v6825_v9, %v2571_v39 }
0x208b   :  { %v2560_v37 = vsub.f32 1.0, %v6827_v10  ;;  %v2576_v40 = vmul.f32 %v6827_v10, %v2572_v31 }
0x20e0   :  { %v2542_v26 = vpop.permute.xlu0 %2541  ;;  %v2540_v14 = vpop.permute.xlu1 %2539 }
0x20e1   :  { %v2546_v13 = vmul.f32 %v6827_v10, %v2542_v26  ;;  %v2545_v23 = vmul.f32 %v6825_v9, %v2540_v14 }
0x20e3   :  { %2551 = vrot.lane.b32.xlu0 %v2546_v13, %s7190_s5  ;;  %2549 = vrot.lane.b32.xlu1 %v2545_v23, %s7190_s5 }
0x2155   :  { %v2552_v25 = vpop.permute.xlu0 %2551  ;;  %v2550_v28 = vpop.permute.xlu1 %2549 }
0x2156   :  { %v2556_v29 = vadd.f32 %v2552_v25, %v7775_v36  ;;  %v2555_v50 = vadd.f32 %v2550_v28, %v7773_v35 }
0x2158   :  { %6828 = vtanh.f32 %v2556_v29 }
0x2159   :  { %6830 = vtanh.f32 %v2555_v50 }
0x2162   :  { %v6829_v56 = vpop.eup %6828 }
0x2163   :  { %v6831_v34 = vpop.eup %6830  ;;  %2565 = vrot.lane.b32.xlu0 %v6829_v56, %s7191_s13 }
0x2164   :  { %2563 = vrot.lane.b32.xlu1 %v6831_v34, %s7191_s13 }
0x21d5   :  { %v2566_v38 = vpop.permute.xlu0 %2565 }
0x21d6   :  { %v2570_v41 = vmul.f32 %v2566_v38, %v2560_v37  ;;  %v2564_v42 = vpop.permute.xlu1 %2563 }
0x21d7   :  { %v2569_v7 = vmul.f32 %v2564_v42, %v2559_v33 }
0x21d8   :  { %v2578_v44 = vadd.f32 %v2576_v40, %v2570_v41 }
0x21d9   :  { %v2577_v46 = vadd.f32 %v2575_v43, %v2569_v7 }
0x21da   :  { %v7842_v48 = vsel %vm1369_vm4, %v3270_v45, %v2578_v44  ;;  %v2582_v49 = vrot.slane %v2578_v44, 1  ;;  %v2710_v50 = vrot.slane %v2578_v44, 7 }
0x21db   :  { %v7845_v18 = vsel %vm1369_vm4, %v3269_v47, %v2577_v46  ;;  %v2581_v53 = vrot.slane %v2577_v46, 2  ;;  %v2709_v37 = vrot.slane %v2577_v46, 7 }
0x21dd   :  { %v2583_v54 = vsel %vm406_vm2, %v2582_v49, %v2581_v53 }
0x21de   :  { %2584 = vrot.lane.b32.xlu1 %v2583_v54, %s7191_s13 }
0x2250   :  { %v2585_v55 = vpop.permute.xlu1 %2584 }
0x2251   :  { %6138 = vmatmul.mubr.msk.f32.vlgmr.msra.gmra.mrb[22].mxu0 %vm188_vm1, %v2585_v55 }
0x2252   :  { %6504 = vmatpush3.bf16.msra.mxu0 %v7721_v24  ;;  %6159 = vmatprep.mubr.msk.f32.mxu0 %vm7188_vm0, %v7189_v1 }
0x2253   :  { %6505 = vmatprep.subr.bf16.mxu0 %v7187_v0 }
0x2256   :  { %6507 = vmatpush3.bf16.msra.mxu0 %v7738_v20 }
0x2257   :  { %6514 = vmatprep.subr.bf16.mxu0 %v7187_v0 }
0x2324   :  { %v2654_v62 = vpop.f32.mrb[22].mxu0 }
0x2325   :  { %v2655_v63 = vadd.f32 %v7767_v32, %v2654_v62  ;;  %v6139_v51 = vpop.f32.mrb[23].mxu0 }
0x2327   :  { %v2659_v52 = vrot.slane %v2655_v63, 5  ;;  %v2660_v57 = vrot.slane %v2655_v63, 6 }
0x2329   :  { %2679 = vrot.lane.b32.xlu1 %v2660_v57, %s7190_s5  ;;  %2677 = vrot.lane.b32.xlu0 %v2659_v52, %s7190_s5  ;;  %v2663_v58 = vadd.f32 %v2659_v52, %v7773_v35  ;;  %v2664_v59 = vadd.f32 %v2660_v57, %v7775_v36 }
0x232b   :  { %v5648_v15 = vmul.f32 -1.442695, %v2663_v58  ;;  %v5649_v60 = vmul.f32 -1.442695, %v2664_v59 }
0x232d   :  { %6832 = vpow2.f32 %v5648_v15 }
0x232e   :  { %6834 = vpow2.f32 %v5649_v60 }
0x2337   :  { %v6833_v61 = vpop.eup %6832 }
0x2338   :  { %v6835_v2 = vpop.eup %6834  ;;  %v2671_v3 = vadd.f32 1.0, %v6833_v61 }
0x2339   :  { %v2672_v4 = vadd.f32 1.0, %v6835_v2 }
0x233a   :  { %6836 = vrcp.f32 %v2671_v3 }
0x233b   :  { %6838 = vrcp.f32 %v2672_v4 }
0x2344   :  { %v6837_v5 = vpop.eup %6836 }
0x2345   :  { %v6839_v6 = vpop.eup %6838  ;;  %v2697_v34 = vsub.f32 1.0, %v6837_v5  ;;  %v2713_v39 = vmul.f32 %v6837_v5, %v2709_v37 }
0x2346   :  { %v2698_v29 = vsub.f32 1.0, %v6839_v6  ;;  %v2714_v31 = vmul.f32 %v6839_v6, %v2710_v50 }
0x239b   :  { %v2680_v8 = vpop.permute.xlu1 %2679  ;;  %v2678_v11 = vpop.permute.xlu0 %2677 }
0x239c   :  { %v2684_v9 = vmul.f32 %v6839_v6, %v2680_v8  ;;  %v2683_v10 = vmul.f32 %v6837_v5, %v2678_v11 }
0x239e   :  { %2689 = vrot.lane.b32.xlu1 %v2684_v9, %s7190_s5  ;;  %2687 = vrot.lane.b32.xlu0 %v2683_v10, %s7190_s5 }
0x2410   :  { %v2690_v26 = vpop.permute.xlu1 %2689  ;;  %v2688_v14 = vpop.permute.xlu0 %2687 }
0x2411   :  { %v2694_v13 = vadd.f32 %v2690_v26, %v7775_v36  ;;  %v2693_v23 = vadd.f32 %v2688_v14, %v7773_v35 }
0x2413   :  { %6840 = vtanh.f32 %v2694_v13 }
0x2414   :  { %6842 = vtanh.f32 %v2693_v23 }
0x241d   :  { %v6841_v25 = vpop.eup %6840 }
0x241e   :  { %v6843_v28 = vpop.eup %6842  ;;  %2703 = vrot.lane.b32.xlu1 %v6841_v25, %s7191_s13 }
0x241f   :  { %2701 = vrot.lane.b32.xlu0 %v6843_v28, %s7191_s13 }
0x2490   :  { %v2704_v56 = vpop.permute.xlu1 %2703 }
0x2491   :  { %v2708_v38 = vmul.f32 %v2704_v56, %v2698_v29  ;;  %v2702_v33 = vpop.permute.xlu0 %2701 }
0x2492   :  { %v2707_v40 = vmul.f32 %v2702_v33, %v2697_v34 }
0x2493   :  { %v2716_v41 = vadd.f32 %v2714_v31, %v2708_v38 }
0x2494   :  { %v2715_v42 = vadd.f32 %v2713_v39, %v2707_v40 }
0x2495   :  { %v7869_v43 = vsel %vm1372_vm5, %v7842_v48, %v2716_v41  ;;  %v2720_v7 = vrot.slane %v2716_v41, 2  ;;  %v2848_v14 = vrot.slane %v2716_v41, 7 }
0x2496   :  { %v7873_v45 = vsel %vm1372_vm5, %v7845_v18, %v2715_v42  ;;  %v2719_v44 = vrot.slane %v2715_v42, 3  ;;  %v2847_v25 = vrot.slane %v2715_v42, 7 }
0x2498   :  { %v2721_v47 = vsel %vm406_vm2, %v2720_v7, %v2719_v44 }
0x2499   :  { %2722 = vrot.lane.b32.xlu0 %v2721_v47, %s7191_s13 }
0x250b   :  { %v2723_v46 = vpop.permute.xlu0 %2722 }
0x250c   :  { %6149 = vmatmul.mubr.msk.f32.vlgmr.msra.gmra.mrb[18].mxu1 %vm188_vm1, %v2723_v46 }
0x250d   :  { %6510 = vmatpush3.bf16.msra.mxu1 %v7721_v24  ;;  %6170 = vmatprep.mubr.msk.f32.mxu1 %vm7188_vm0, %v7189_v1 }
0x250e   :  { %6511 = vmatprep.subr.bf16.mxu1 %v7187_v0 }
0x2511   :  { %6513 = vmatpush3.bf16.msra.mxu1 %v7738_v20 }
0x2512   :  { %6184 = vmatprep.subr.mxu1 %v7189_v1 }
0x25df   :  { %v2792_v48 = vpop.f32.mrb[18].mxu1 }
0x25e0   :  { %v2793_v49 = vadd.f32 %v7767_v32, %v2792_v48  ;;  %v6150_v18 = vpop.f32.mrb[19].mxu1 }
0x25e2   :  { %v2797_v53 = vrot.slane %v2793_v49, 4  ;;  %v2798_v54 = vrot.slane %v2793_v49, 5 }
0x25e4   :  { %2817 = vrot.lane.b32.xlu0 %v2798_v54, %s7190_s5  ;;  %2815 = vrot.lane.b32.xlu1 %v2797_v53, %s7190_s5  ;;  %v2801_v55 = vadd.f32 %v2797_v53, %v7773_v35  ;;  %v2802_v62 = vadd.f32 %v2798_v54, %v7775_v36 }
0x25e6   :  { %v5651_v63 = vmul.f32 -1.442695, %v2801_v55  ;;  %v5652_v51 = vmul.f32 -1.442695, %v2802_v62 }
0x25e8   :  { %6844 = vpow2.f32 %v5651_v63 }
0x25e9   :  { %6846 = vpow2.f32 %v5652_v51 }
0x25f2   :  { %v6845_v52 = vpop.eup %6844 }
0x25f3   :  { %v6847_v57 = vpop.eup %6846  ;;  %v2809_v58 = vadd.f32 1.0, %v6845_v52 }
0x25f4   :  { %v2810_v59 = vadd.f32 1.0, %v6847_v57 }
0x25f5   :  { %6848 = vrcp.f32 %v2809_v58 }
0x25f6   :  { %6850 = vrcp.f32 %v2810_v59 }
0x25ff   :  { %v6849_v15 = vpop.eup %6848 }
0x2600   :  { %v6851_v60 = vpop.eup %6850  ;;  %v2835_v23 = vsub.f32 1.0, %v6849_v15  ;;  %v2851_v56 = vmul.f32 %v6849_v15, %v2847_v25 }
0x2601   :  { %v2836_v26 = vsub.f32 1.0, %v6851_v60  ;;  %v2852_v28 = vmul.f32 %v6851_v60, %v2848_v14 }
0x2656   :  { %v2818_v61 = vpop.permute.xlu0 %2817  ;;  %v2816_v2 = vpop.permute.xlu1 %2815 }
0x2657   :  { %v2822_v3 = vmul.f32 %v6851_v60, %v2818_v61  ;;  %v2821_v4 = vmul.f32 %v6849_v15, %v2816_v2 }
0x2659   :  { %2827 = vrot.lane.b32.xlu0 %v2822_v3, %s7190_s5  ;;  %2825 = vrot.lane.b32.xlu1 %v2821_v4, %s7190_s5 }
0x26cb   :  { %v2828_v5 = vpop.permute.xlu0 %2827  ;;  %v2826_v6 = vpop.permute.xlu1 %2825 }
0x26cc   :  { %v2832_v8 = vadd.f32 %v2828_v5, %v7775_v36  ;;  %v2831_v11 = vadd.f32 %v2826_v6, %v7773_v35 }
0x26ce   :  { %6852 = vtanh.f32 %v2832_v8 }
0x26cf   :  { %6854 = vtanh.f32 %v2831_v11 }
0x26d8   :  { %v6853_v9 = vpop.eup %6852 }
0x26d9   :  { %v6855_v10 = vpop.eup %6854  ;;  %2841 = vrot.lane.b32.xlu0 %v6853_v9, %s7191_s13 }
0x26da   :  { %2839 = vrot.lane.b32.xlu1 %v6855_v10, %s7191_s13 }
0x274b   :  { %v2842_v13 = vpop.permute.xlu0 %2841 }
0x274c   :  { %v2846_v29 = vmul.f32 %v2842_v13, %v2836_v26  ;;  %v2840_v50 = vpop.permute.xlu1 %2839 }
0x274d   :  { %v2845_v34 = vmul.f32 %v2840_v50, %v2835_v23 }
0x274e   :  { %v2854_v37 = vadd.f32 %v2852_v28, %v2846_v29 }
0x274f   :  { %v2853_v31 = vadd.f32 %v2851_v56, %v2845_v34  ;;  %v170_v34 = vld [vmem:[#allocation5] sm:$0xff] }
0x2750   :  { %v2858_v38 = vrot.slane %v2854_v37, 3  ;;  %v7897_v33 = vsel %vm1375_vm6, %v7869_v43, %v2854_v37  ;;  %v2986_v4 = vrot.slane %v2854_v37, 7 }
0x2751   :  { %v2857_v39 = vrot.slane %v2853_v31, 4  ;;  %v7901_v40 = vsel %vm1375_vm6, %v7873_v45, %v2853_v31  ;;  %v2985_v8 = vrot.slane %v2853_v31, 7 }
0x2753   :  { %v2859_v41 = vsel %vm406_vm2, %v2858_v38, %v2857_v39 }
0x2754   :  { %2860 = vrot.lane.b32.xlu1 %v2859_v41, %s7191_s13 }
0x27c6   :  { %v2861_v42 = vpop.permute.xlu1 %2860 }
0x27c7   :  { %6160 = vmatmul.mubr.msk.f32.vlgmr.msra.gmra.mrb[24].mxu0 %vm188_vm1, %v2861_v42 }
0x27c8   :  { %6516 = vmatpush3.bf16.msra.mxu0 %v7721_v24  ;;  %6181 = vmatprep.mubr.msk.f32.mxu0 %vm7188_vm0, %v7189_v1 }
0x27c9   :  { %6517 = vmatprep.subr.bf16.mxu0 %v7187_v0 }
0x27cc   :  { %6519 = vmatpush3.bf16.msra.mxu0 %v7738_v20 }
0x27cd   :  { %6189 = vmatprep.subr.mxu0 %v7189_v1 }
0x289a   :  { %v2930_v43 = vpop.f32.mrb[24].mxu0 }
0x289b   :  { %v2931_v7 = vadd.f32 %v7767_v32, %v2930_v43  ;;  %v6161_v45 = vpop.f32.mrb[25].mxu0 }
0x289d   :  { %v2935_v44 = vrot.slane %v2931_v7, 3  ;;  %v2936_v47 = vrot.slane %v2931_v7, 4 }
0x289f   :  { %2955 = vrot.lane.b32.xlu1 %v2936_v47, %s7190_s5  ;;  %2953 = vrot.lane.b32.xlu0 %v2935_v44, %s7190_s5  ;;  %v2939_v24 = vadd.f32 %v2935_v44, %v7773_v35  ;;  %v2940_v46 = vadd.f32 %v2936_v47, %v7775_v36 }
0x28a1   :  { %v5654_v48 = vmul.f32 -1.442695, %v2939_v24  ;;  %v5655_v49 = vmul.f32 -1.442695, %v2940_v46 }
0x28a3   :  { %6856 = vpow2.f32 %v5654_v48 }
0x28a4   :  { %6858 = vpow2.f32 %v5655_v49 }
0x28ad   :  { %v6857_v20 = vpop.eup %6856 }
0x28ae   :  { %v6859_v18 = vpop.eup %6858  ;;  %v2947_v53 = vadd.f32 1.0, %v6857_v20 }
0x28af   :  { %v2948_v54 = vadd.f32 1.0, %v6859_v18 }
0x28b0   :  { %6860 = vrcp.f32 %v2947_v53 }
0x28b1   :  { %6862 = vrcp.f32 %v2948_v54 }
0x28ba   :  { %v6861_v55 = vpop.eup %6860 }
0x28bb   :  { %v6863_v62 = vpop.eup %6862  ;;  %v2973_v6 = vsub.f32 1.0, %v6861_v55  ;;  %v2989_v26 = vmul.f32 %v6861_v55, %v2985_v8 }
0x28bc   :  { %v2974_v3 = vsub.f32 1.0, %v6863_v62  ;;  %v2990_v11 = vmul.f32 %v6863_v62, %v2986_v4 }
0x2911   :  { %v2956_v63 = vpop.permute.xlu1 %2955  ;;  %v2954_v51 = vpop.permute.xlu0 %2953 }
0x2912   :  { %v2960_v52 = vmul.f32 %v6863_v62, %v2956_v63  ;;  %v2959_v57 = vmul.f32 %v6861_v55, %v2954_v51 }
0x2914   :  { %2965 = vrot.lane.b32.xlu1 %v2960_v52, %s7190_s5  ;;  %2963 = vrot.lane.b32.xlu0 %v2959_v57, %s7190_s5 }
0x2986   :  { %v2966_v58 = vpop.permute.xlu1 %2965  ;;  %v2964_v59 = vpop.permute.xlu0 %2963 }
0x2987   :  { %v2970_v15 = vadd.f32 %v2966_v58, %v7775_v36  ;;  %v2969_v60 = vadd.f32 %v2964_v59, %v7773_v35 }
0x2989   :  { %6864 = vtanh.f32 %v2970_v15 }
0x298a   :  { %6866 = vtanh.f32 %v2969_v60 }
0x2993   :  { %v6865_v61 = vpop.eup %6864 }
0x2994   :  { %v6867_v2 = vpop.eup %6866  ;;  %2979 = vrot.lane.b32.xlu1 %v6865_v61, %s7191_s13 }
0x2995   :  { %2977 = vrot.lane.b32.xlu0 %v6867_v2, %s7191_s13 }
0x2a06   :  { %v2980_v5 = vpop.permute.xlu1 %2979 }
0x2a07   :  { %v2984_v9 = vmul.f32 %v2980_v5, %v2974_v3  ;;  %v2978_v10 = vpop.permute.xlu0 %2977 }
0x2a08   :  { %v2983_v14 = vmul.f32 %v2978_v10, %v2973_v6 }
0x2a09   :  { %v2992_v13 = vadd.f32 %v2990_v11, %v2984_v9 }
0x2a0a   :  { %v7923_v23 = vadd.f32 %v2989_v26, %v2983_v14 }
0x2a0b   :  { %v2996_v25 = vrot.slane %v2992_v13, 4  ;;  %v7927_v28 = vsel %vm1378_vm7, %v7897_v33, %v2992_v13  ;;  %v3124_v15 = vrot.slane %v2992_v13, 7 }
0x2a0c   :  { %v2995_v29 = vrot.slane %v7923_v23, 5  ;;  %v7933_v50 = vsel %vm1378_vm7, %v7901_v40, %v7923_v23  ;;  %v3123_v2 = vrot.slane %v7923_v23, 7 }
0x2a0e   :  { %v2997_v56 = vsel %vm406_vm2, %v2996_v25, %v2995_v29  ;;  %v171_v25 = vld [vmem:[#allocation5 + $0x8] sm:$0xff] }
0x2a0f   :  { %2998 = vrot.lane.b32.xlu0 %v2997_v56, %s7191_s13 }
0x2a81   :  { %v2999_v37 = vpop.permute.xlu0 %2998 }
0x2a82   :  { %6171 = vmatmul.mubr.msk.f32.vlgmr.msra.gmra.mrb[20].mxu1 %vm188_vm1, %v2999_v37 }
0x2a83   :  { %6185 = vmatpush3.xpose.msk.msra.mxu1 %vm188_vm1, %v170_v34  ;;  %6186 = vmatprep.mubr.msk.f32.mxu1 %vm7188_vm0, %v7189_v1 }
0x2a84   :  { %6194 = vmatprep.subr.mxu1 %v7189_v1 }
0x2a86   :  { %6187 = vmatmul.mubr.msk.f32.vlgmr.msra.gmra.mrb[22].mxu1 %vm188_vm1, %v7731_v17 }
0x2a87   :  { %6195 = vmatpush3.msra.mxu1 %v170_v34  ;;  %6196 = vmatprep.mubr.msk.f32.mxu1 %vm7188_vm0, %v7189_v1 }
0x2b55   :  { %v3068_v31 = vpop.f32.mrb[20].mxu1 }
0x2b56   :  { %v3069_v38 = vadd.f32 %v7767_v32, %v3068_v31  ;;  %v6172_v33 = vpop.f32.mrb[21].mxu1 }
0x2b58   :  { %v3073_v39 = vrot.slane %v3069_v38, 2  ;;  %v3074_v40 = vrot.slane %v3069_v38, 3 }
0x2b59   :  { %v7947_v41 = vpop.f32.mrb[22].mxu1 }
0x2b5a   :  { %3093 = vrot.lane.b32.xlu0 %v3074_v40, %s7190_s5  ;;  %3091 = vrot.lane.b32.xlu1 %v3073_v39, %s7190_s5  ;;  %v6188_v42 = vpop.f32.mrb[23].mxu1  ;;  %v3077_v43 = vadd.f32 %v3073_v39, %v7773_v35  ;;  %v3078_v7 = vadd.f32 %v3074_v40, %v7775_v36 }
0x2b5c   :  { %v5657_v45 = vmul.f32 -1.442695, %v3077_v43  ;;  %v5658_v44 = vmul.f32 -1.442695, %v3078_v7 }
0x2b5e   :  { %6868 = vpow2.f32 %v5657_v45 }
0x2b5f   :  { %6870 = vpow2.f32 %v5658_v44 }
0x2b68   :  { %v6869_v47 = vpop.eup %6868 }
0x2b69   :  { %v6871_v24 = vpop.eup %6870  ;;  %v3085_v46 = vadd.f32 1.0, %v6869_v47 }
0x2b6a   :  { %v3086_v48 = vadd.f32 1.0, %v6871_v24 }
0x2b6b   :  { %6872 = vrcp.f32 %v3085_v46 }
0x2b6c   :  { %6874 = vrcp.f32 %v3086_v48 }
0x2b75   :  { %v6873_v49 = vpop.eup %6872 }
0x2b76   :  { %v6875_v20 = vpop.eup %6874  ;;  %v3111_v61 = vsub.f32 1.0, %v6873_v49  ;;  %v3127_v6 = vmul.f32 %v6873_v49, %v3123_v2 }
0x2b77   :  { %v3112_v59 = vsub.f32 1.0, %v6875_v20  ;;  %v3128_v3 = vmul.f32 %v6875_v20, %v3124_v15 }
0x2bcc   :  { %v3094_v18 = vpop.permute.xlu0 %3093  ;;  %v3092_v53 = vpop.permute.xlu1 %3091 }
0x2bcd   :  { %v3098_v54 = vmul.f32 %v6875_v20, %v3094_v18  ;;  %v3097_v55 = vmul.f32 %v6873_v49, %v3092_v53  ;;  %v3471_v20 = vmul.f32 0.17677669, %v7947_v41 }
0x2bcf   :  { %3103 = vrot.lane.b32.xlu0 %v3098_v54, %s7190_s5  ;;  %3101 = vrot.lane.b32.xlu1 %v3097_v55, %s7190_s5  ;;  %v3473_v18 = vsel %vm1583_vm9, %v3471_v20, -inf }
0x2c41   :  { %v3104_v62 = vpop.permute.xlu0 %3103  ;;  %v3102_v63 = vpop.permute.xlu1 %3101 }
0x2c42   :  { %v3108_v51 = vadd.f32 %v3104_v62, %v7775_v36  ;;  %v3107_v52 = vadd.f32 %v3102_v63, %v7773_v35 }
0x2c44   :  { %6876 = vtanh.f32 %v3108_v51 }
0x2c45   :  { %6878 = vtanh.f32 %v3107_v52 }
0x2c4e   :  { %v6877_v57 = vpop.eup %6876 }
0x2c4f   :  { %v6879_v58 = vpop.eup %6878  ;;  %3117 = vrot.lane.b32.xlu0 %v6877_v57, %s7191_s13 }
0x2c50   :  { %3115 = vrot.lane.b32.xlu1 %v6879_v58, %s7191_s13 }
0x2cc1   :  { %v3118_v60 = vpop.permute.xlu0 %3117 }
0x2cc2   :  { %v3122_v4 = vmul.f32 %v3118_v60, %v3112_v59  ;;  %v3116_v5 = vpop.permute.xlu1 %3115 }
0x2cc3   :  { %v3121_v8 = vmul.f32 %v3116_v5, %v3111_v61 }
0x2cc4   :  { %v7960_v11 = vadd.f32 %v3128_v3, %v3122_v4 }
0x2cc5   :  { %v7962_v9 = vadd.f32 %v3127_v6, %v3121_v8 }
0x2cc6   :  { %v3134_v10 = vrot.slane %v7960_v11, 5  ;;  %v7968_v26 = vsel %vm1381_vm8, %v7927_v28, %v7960_v11  ;;  %v3262_v5 = vrot.slane %v7960_v11, 7 }
0x2cc7   :  { %v3133_v14 = vrot.slane %v7962_v9, 6  ;;  %v7974_v13 = vsel %vm1381_vm8, %v7933_v50, %v7962_v9  ;;  %v3261_v8 = vrot.slane %v7962_v9, 7 }
0x2cc9   :  { %v3135_v23 = vsel %vm406_vm2, %v3134_v10, %v3133_v14 }
0x2cca   :  { %3136 = vrot.lane.b32.xlu1 %v3135_v23, %s7191_s13 }
0x2d3c   :  { %v3137_v29 = vpop.permute.xlu1 %3136 }
0x2d3d   :  { %6182 = vmatmul.mubr.msk.f32.vlgmr.msra.gmra.mrb[26].mxu0 %vm188_vm1, %v3137_v29 }
0x2d3e   :  { %6190 = vmatpush3.xpose.msk.msra.mxu0 %vm188_vm1, %v171_v25  ;;  %6191 = vmatprep.mubr.msk.f32.mxu0 %vm7188_vm0, %v7189_v1 }
0x2d3f   :  { %6199 = vmatprep.subr.mxu0 %v7189_v1 }
0x2d41   :  { %6192 = vmatmul.mubr.msk.f32.vlgmr.msra.gmra.mrb[28].mxu0 %vm188_vm1, %v7735_v19 }
0x2d42   :  { %6200 = vmatpush3.msra.mxu0 %v171_v25  ;;  %6201 = vmatprep.mubr.msk.f32.mxu0 %vm7188_vm0, %v7189_v1 }
0x2e10   :  { %v3206_v28 = vpop.f32.mrb[26].mxu0 }
0x2e11   :  { %v3207_v50 = vadd.f32 %v7767_v32, %v3206_v28  ;;  %v6183_v56 = vpop.f32.mrb[27].mxu0 }
0x2e13   :  { %v3211_v34 = vrot.slane %v3207_v50, 1  ;;  %v3212_v37 = vrot.slane %v3207_v50, 2 }
0x2e14   :  { %v3467_v31 = vpop.f32.mrb[28].mxu0 }
0x2e15   :  { %3231 = vrot.lane.b32.xlu1 %v3212_v37, %s7190_s5  ;;  %3229 = vrot.lane.b32.xlu0 %v3211_v34, %s7190_s5  ;;  %v6193_v38 = vpop.f32.mrb[29].mxu0  ;;  %v3215_v33 = vadd.f32 %v3211_v34, %v7773_v35  ;;  %v3216_v39 = vadd.f32 %v3212_v37, %v7775_v36  ;;  %v3472_v53 = vmul.f32 0.17677669, %v3467_v31 }
0x2e17   :  { %v5660_v40 = vmul.f32 -1.442695, %v3215_v33  ;;  %v5661_v42 = vmul.f32 -1.442695, %v3216_v39  ;;  %v3476_v54 = vsel %vm1583_vm9, %v3472_v53, -inf }
0x2e19   :  { %6880 = vpow2.f32 %v5660_v40  ;;  %v8012_v40 = vld [vmem:[#allocation7] sm:$0xff] }
0x2e1a   :  { %6882 = vpow2.f32 %v5661_v42 }
0x2e23   :  { %v6881_v43 = vpop.eup %6880 }
0x2e24   :  { %v6883_v7 = vpop.eup %6882  ;;  %v3223_v32 = vadd.f32 1.0, %v6881_v43 }
0x2e25   :  { %v3224_v45 = vadd.f32 1.0, %v6883_v7 }
0x2e26   :  { %6884 = vrcp.f32 %v3223_v32 }
0x2e27   :  { %6886 = vrcp.f32 %v3224_v45 }
0x2e30   :  { %v6885_v44 = vpop.eup %6884 }
0x2e31   :  { %v6887_v47 = vpop.eup %6886  ;;  %v3249_v6 = vsub.f32 1.0, %v6885_v44  ;;  %v3265_v29 = vmul.f32 %v6885_v44, %v3261_v8  ;;  %v8029_v8 = vld [vmem:[#allocation7 + $0x8] sm:$0xff] }
0x2e32   :  { %v3250_v4 = vsub.f32 1.0, %v6887_v47  ;;  %v3266_v23 = vmul.f32 %v6887_v47, %v3262_v5 }
0x2e87   :  { %v3232_v24 = vpop.permute.xlu1 %3231  ;;  %v3230_v46 = vpop.permute.xlu0 %3229 }
0x2e88   :  { %v3236_v48 = vmul.f32 %v6887_v47, %v3232_v24  ;;  %v3235_v49 = vmul.f32 %v6885_v44, %v3230_v46 }
0x2e8a   :  { %3241 = vrot.lane.b32.xlu1 %v3236_v48, %s7190_s5  ;;  %3239 = vrot.lane.b32.xlu0 %v3235_v49, %s7190_s5 }
0x2ea9   :  { %3474 = vmax.xlane.f32.xlu0 %v3473_v18 }
0x2eae   :  { %3477 = vmax.xlane.f32.xlu1 %v3476_v54 }
0x2efc   :  { %v3242_v55 = vpop.permute.xlu1 %3241  ;;  %v3240_v62 = vpop.permute.xlu0 %3239 }
0x2efd   :  { %v3246_v63 = vadd.f32 %v3242_v55, %v7775_v36  ;;  %v3245_v51 = vadd.f32 %v3240_v62, %v7773_v35 }
0x2eff   :  { %6888 = vtanh.f32 %v3246_v63 }
0x2f00   :  { %6890 = vtanh.f32 %v3245_v51 }
0x2f09   :  { %v6889_v52 = vpop.eup %6888 }
0x2f0a   :  { %v6891_v57 = vpop.eup %6890  ;;  %3255 = vrot.lane.b32.xlu1 %v6889_v52, %s7191_s13 }
0x2f0b   :  { %3253 = vrot.lane.b32.xlu0 %v6891_v57, %s7191_s13 }
0x2f36   :  { %v3475_v41 = vpop.xlane.xlu0 %3474 }
0x2f37   :  { %v3479_v58 = vsub.f32 %v3471_v20, %v3475_v41 }
0x2f39   :  { %v3481_v59 = vmul.f32 1.442695, %v3479_v58  ;;  %v3720_v58 = vld [vmem:[%s8386_s29] sm:$0xff] }
0x2f3b   :  { %6892 = vpow2.f32 %v3481_v59  ;;  %v3478_v15 = vpop.xlane.xlu1 %3477  ;;  %v3721_v59 = vld [vmem:[%s8386_s29 + $0x8] sm:$0xff] }
0x2f3c   :  { %v3480_v60 = vsub.f32 %v3472_v53, %v3478_v15  ;;  %v6524_v15 = vpack.c.bf16 %v3721_v59, %v3720_v58  ;;  %v3999_v58 = vld [vmem:[%s8391_s20 + $0x10] sm:$0xff]  ;;  %v4000_v59 = vld [vmem:[%s8391_s20 + $0x18] sm:$0xff] }
0x2f3e   :  { %v3483_v61 = vmul.f32 1.442695, %v3480_v60  ;;  %6525 = vmatprep.subr.bf16.mxu0 %v6524_v15 }
0x2f40   :  { %6894 = vpow2.f32 %v3483_v61 }
0x2f45   :  { %v6893_v2 = vpop.eup %6892 }
0x2f46   :  { %v3485_v36 = vsel %vm1583_vm9, %v6893_v2, 0.0 }
0x2f47   :  { %3486 = vadd.xlane.f32.xlu0 %v3485_v36 }
0x2f4a   :  { %v6895_v35 = vpop.eup %6894 }
0x2f4b   :  { %v3488_v3 = vsel %vm1583_vm9, %v6895_v35, 0.0 }
0x2f4c   :  { %3489 = vadd.xlane.f32.xlu1 %v3488_v3 }
0x2f7c   :  { %v3256_v10 = vpop.permute.xlu1 %3255 }
0x2f7d   :  { %v3254_v14 = vpop.permute.xlu0 %3253  ;;  %v3260_v25 = vmul.f32 %v3256_v10, %v3250_v4  ;;  %v3723_v10 = vld [vmem:[%s8386_s29 + $0x18] sm:$0xff] }
0x2f7e   :  { %v3259_v28 = vmul.f32 %v3254_v14, %v3249_v6 }
0x2f7f   :  { %v3268_v50 = vadd.f32 %v3266_v23, %v3260_v25  ;;  %v3725_v23 = vld [vmem:[%s8387_s3] sm:$0xff]  ;;  %v3727_v25 = vld [vmem:[%s8387_s3 + $0x10] sm:$0xff] }
0x2f80   :  { %v3267_v56 = vadd.f32 %v3265_v29, %v3259_v28  ;;  %v3728_v28 = vld [vmem:[%s8387_s3 + $0x18] sm:$0xff] }
0x2f81   :  { %v3282_v34 = vsel %vm1384_vm10, %v7968_v26, %v3268_v50  ;;  %v6536_v50 = vpack.c.bf16 %v3728_v28, %v3727_v25 }
0x2f82   :  { %v3281_v37 = vsel %vm1384_vm10, %v7974_v13, %v3267_v56  ;;  %v3286_v11 = vsel %vm1400_vm11, %v3282_v34, -inf  ;;  %v3729_v56 = vld [vmem:[%s8387_s3 + $0x20] sm:$0xff] }
0x2f83   :  { %v3283_v31 = vsel %vm1400_vm11, %v3281_v37, -inf }
0x2f84   :  { %3284 = vmax.xlane.f32.xlu0 %v3283_v31 }
0x2f88   :  { %3287 = vmax.xlane.f32.xlu0 %v3286_v11 }
0x2fd4   :  { %v3487_v9 = vpop.xlane.xlu0 %3486 }
0x2fd5   :  { %6896 = vrcp.f32 %v3487_v9 }
0x2fd9   :  { %v3490_v38 = vpop.xlane.xlu1 %3489 }
0x2fda   :  { %6898 = vrcp.f32 %v3490_v38 }
0x2fdf   :  { %v6897_v33 = vpop.eup %6896 }
0x2fe0   :  { %v3493_v39 = vmul.f32 %v6897_v33, %v6893_v2 }
0x2fe2   :  { %6197 = vmatmul.mubr.msk.f32.vlgmr.msra.gmra.mrb[24].mxu1 %vm1583_vm9, %v3493_v39 }
0x2fe3   :  { %6208 = vmatprep.mubr.msk.f32.mxu1 %vm1996_vm12, %v8012_v40 }
0x2fe4   :  { %v6899_v26 = vpop.eup %6898 }
0x2fe5   :  { %v3494_v13 = vmul.f32 %v6899_v26, %v6895_v35  ;;  %v3731_v26 = vld [vmem:[%s8387_s3 + $0x30] sm:$0xff] }
0x2fe7   :  { %6202 = vmatmul.mubr.msk.f32.vlgmr.msra.gmra.mrb[30].mxu0 %vm1583_vm9, %v3494_v13  ;;  %v3732_v13 = vld [vmem:[%s8387_s3 + $0x38] sm:$0xff] }
0x2fe8   :  { %6527 = vmatpush3.bf16.msra.mxu0 %v6524_v15  ;;  %v6556_v15 = vpack.c.bf16 %v4000_v59, %v3999_v58 }
0x3011   :  { %v3285_v42 = vpop.xlane.xlu0 %3284 }
0x3012   :  { %v3289_v43 = vsub.f32 %v3281_v37, %v3285_v42  ;;  %v6544_v42 = vpack.c.bf16 %v3732_v13, %v3731_v26 }
0x3014   :  { %v3291_v7 = vmul.f32 1.442695, %v3289_v43 }
0x3015   :  { %v3288_v32 = vpop.xlane.xlu0 %3287 }
0x3016   :  { %6900 = vpow2.f32 %v3291_v7  ;;  %v3290_v45 = vsub.f32 %v3282_v34, %v3288_v32  ;;  %v3730_v34 = vld [vmem:[%s8387_s3 + $0x28] sm:$0xff] }
0x3017   :  { %v6540_v37 = vpack.c.bf16 %v3730_v34, %v3729_v56 }
0x3018   :  { %v3293_v44 = vmul.f32 1.442695, %v3290_v45 }
0x301a   :  { %6902 = vpow2.f32 %v3293_v44 }
0x3020   :  { %v6901_v47 = vpop.eup %6900 }
0x3021   :  { %3297 = vrot.lane.b32.xlu1 %v6901_v47, %s7191_s13 }
0x3024   :  { %v6903_v24 = vpop.eup %6902 }
0x3025   :  { %3299 = vrot.lane.b32.xlu0 %v6903_v24, %s7191_s13 }
0x3093   :  { %v3298_v46 = vpop.permute.xlu1 %3297 }
0x3094   :  { %v3303_v48 = vsel %vm188_vm1, %v3298_v46, 0.0 }
0x3095   :  { %3304 = vadd.xlane.f32.xlu1 %v3303_v48  ;;  %v4004_v48 = vld [vmem:[%s8389_s24 + $0x18] sm:$0xff] }
0x3097   :  { %v3300_v49 = vpop.permute.xlu0 %3299 }
0x3098   :  { %v3306_v20 = vsel %vm188_vm1, %v3300_v49, 0.0 }
0x3099   :  { %3307 = vadd.xlane.f32.xlu0 %v3306_v20  ;;  %v5673_v20 = vld [vmem:[%s8390_s12] ss:$0 sm:$0xff] }
0x30b5   :  { %v3564_v18 = vpop.f32.mrb[24].mxu1 }
0x30b6   :  { %v6198_v53 = vpop.f32.mrb[25].mxu1 }
0x30ba   :  { %v3637_v54 = vpop.f32.mrb[30].mxu0 }
0x30bb   :  { %v6203_v55 = vpop.f32.mrb[31].mxu0 }
0x3122   :  { %v3305_v62 = vpop.xlane.xlu1 %3304 }
0x3123   :  { %6904 = vrcp.f32 %v3305_v62 }
0x3126   :  { %v3308_v63 = vpop.xlane.xlu0 %3307 }
0x3127   :  { %6906 = vrcp.f32 %v3308_v63  ;;  %v3997_v63 = vld [vmem:[%s8391_s20] sm:$0xff] }
0x312d   :  { %v6905_v51 = vpop.eup %6904 }
0x312e   :  { %v3311_v52 = vmul.f32 %v6905_v51, %v6901_v47  ;;  %v4002_v47 = vld [vmem:[%s8389_s24 + $0x8] sm:$0xff] }
0x312f   :  { %v3998_v51 = vld [vmem:[%s8391_s20 + $0x8] sm:$0xff] }
0x3130   :  { %3315 = vrot.lane.b32.xlu1 %v3311_v52, %s7191_s13 }
0x3131   :  { %v6907_v57 = vpop.eup %6906 }
0x3132   :  { %v3312_v41 = vmul.f32 %v6907_v57, %v6903_v24  ;;  %v4003_v24 = vld [vmem:[%s8389_s24 + $0x10] sm:$0xff] }
0x3133   :  { %v8066_v49 = vpack.c.bf16 %v4004_v48, %v4003_v24 }
0x3134   :  { %3317 = vrot.lane.b32.xlu0 %v3312_v41, %s7191_s13  ;;  %v6552_v41 = vpack.c.bf16 %v3998_v51, %v3997_v63 }
0x31a2   :  { %v3316_v60 = vpop.permute.xlu1 %3315 }
0x31a3   :  { %v3321_v61 = vmul.f32 %v3316_v60, %v7731_v17  ;;  %v8087_v60 = vld [vmem:[%s8392_s27] ss:$0 sm:$0xff] }
0x31a5   :  { %v3323_v36 = vadd.f32 %v3321_v61, %v7731_v17  ;;  %v3722_v17 = vld [vmem:[%s8386_s29 + $0x10] sm:$0xff] }
0x31a6   :  { %v3318_v2 = vpop.permute.xlu0 %3317  ;;  %v6528_v14 = vpack.c.bf16 %v3723_v10, %v3722_v17 }
0x31a7   :  { %v3322_v35 = vmul.f32 %v3318_v2, %v7735_v19  ;;  %v3641_v4 = vadd.f32 %v3564_v18, %v3323_v36 }
0x31a8   :  { %6529 = vmatprep.subr.bf16.mxu0 %v6528_v14 }
0x31a9   :  { %v3324_v3 = vadd.f32 %v3322_v35, %v7735_v19  ;;  %6531 = vmatpush3.bf16.msra.mxu0 %v6528_v14  ;;  %v3726_v19 = vld [vmem:[%s8387_s3 + $0x8] sm:$0xff] }
0x31aa   :  { %v6532_v29 = vpack.c.bf16 %v3726_v19, %v3725_v23 }
0x31ab   :  { %v3642_v5 = vadd.f32 %v3637_v54, %v3324_v3  ;;  %v5630_v3 = vld [vmem:[%s8393_s4] ss:$0 sm:$0xff] }
0x31ac   :  { %v1988_v10 = vadd.f32 %v5630_v3, %v7764_v22 }
0x31ad   :  { %v6520_v6 = vpack.c.bf16 %v3642_v5, %v3641_v4 }
0x31af   :  { %6521 = vmatprep.subr.bf16.mxu1 %v6520_v6 }
0x31b0   :  { %6523 = vmatpush3.bf16.msra.mxu1 %v6520_v6 }
0x31b1   :  { %6533 = vmatprep.subr.bf16.mxu1 %v6532_v29 }
0x31b3   :  { %6209 = vmatmul.mubr.msk.f32.vlgmr.msra.gmra.mrb[26].mxu1 %vm1996_vm12, %v8029_v8 }
0x31b4   :  { %6535 = vmatpush3.bf16.msra.mxu1 %v6532_v29 }
0x31b5   :  { %6537 = vmatprep.subr.bf16.mxu1 %v6536_v50 }
0x31b8   :  { %6539 = vmatpush3.bf16.msra.mxu1 %v6536_v50 }
0x31b9   :  { %6541 = vmatprep.subr.bf16.mxu1 %v6540_v37 }
0x31bc   :  { %6543 = vmatpush3.bf16.msra.mxu1 %v6540_v37 }
0x31bd   :  { %6545 = vmatprep.subr.bf16.mxu1 %v6544_v42 }
0x31c0   :  { %6547 = vmatpush3.bf16.msra.mxu1 %v6544_v42 }
0x31c1   :  { %6560 = vmatprep.subr.bf16.mxu1 %v7187_v0 }
0x3286   :  { %v6210_v31 = vpop.f32.mrb[26].mxu1 }
0x3287   :  { %v8042_v11 = vadd.f32 %v6210_v31, %v7723_v12  ;;  %v3709_v9 = vpop.f32.mrb[27].mxu1  ;;  %v3719_v39 = vsub.f32 %v3642_v5, %v6210_v31  ;;  %v5670_v12 = vld [vmem:[%s8388_s8] ss:$0 sm:$0xff]  ;;  %v1993_v5 = vadd.f32 %v7762_v21, %v5630_v3 }
0x3288   :  { %v3718_v38 = vsub.f32 %v3641_v4, %v3709_v9  ;;  %v8045_v33 = vadd.f32 %v3709_v9, %v7728_v16  ;;  %v5678_v21 = vld [vmem:[%s8394_s15] ss:$0 sm:$0xff] }
0x328a   :  { %6219 = vmatprep.mubr.msk.f32.mxu0 %vm188_vm1, %v3718_v38 }
0x328b   :  { %6220 = vmatmul.mubr.msk.f32.vlgmr.msra.gmra.mrb[32].mxu0 %vm188_vm1, %v3719_v39 }
0x328c   :  { %6245 = vmatprep.mubr.msk.f32.mxu0 %vm1996_vm12, %v8012_v40  ;;  %v4001_v40 = vld [vmem:[%s8389_s24] sm:$0xff] }
0x328d   :  { %v8062_v46 = vpack.c.bf16 %v4002_v47, %v4001_v40 }
0x335e   :  { %v6221_v16 = vpop.f32.mrb[32].mxu0 }
0x335f   :  { %v3818_v43 = vadd.f32 %v6221_v16, %v5670_v12  ;;  %v3812_v7 = vpop.f32.mrb[33].mxu0 }
0x3360   :  { %v3813_v32 = vadd.f32 %v5670_v12, %v3812_v7 }
0x3361   :  { %v3822_v44 = vmax.f32 %v3818_v43, 0.0 }
0x3362   :  { %v3821_v45 = vmax.f32 %v3813_v32, 0.0 }
0x3364   :  { %6238 = vmatprep.mubr.msk.f32.mxu1 %vm1914_vm13, %v3821_v45 }
0x3365   :  { %6239 = vmatmul.mubr.msk.f32.vlgmr.msra.gmra.mrb[28].mxu1 %vm1914_vm13, %v3822_v44 }
0x3366   :  { %6267 = vmatprep.mubr.msk.f32.mxu1 %vm7188_vm0, %v7189_v1  ;;  %6562 = vmatpush3.bf16.msra.mxu1 %v8062_v46 }
0x3367   :  { %6563 = vmatprep.subr.bf16.mxu1 %v7187_v0 }
0x336a   :  { %6565 = vmatpush3.bf16.msra.mxu1 %v8066_v49 }
0x336b   :  { %6572 = vmatprep.subr.bf16.mxu1 %v7187_v0 }
0x336d   :  { %6268 = vmatmul.mubr.f32.vlgmr.msra.gmra.mrb[30].mxu1 %v7189_v1 }
0x336e   :  { %6574 = vmatpush3.bf16.msra.mxu1 %v8062_v46  ;;  %6289 = vmatprep.mubr.msk.f32.mxu1 %vm7188_vm0, %v7189_v1 }
0x336f   :  { %6575 = vmatprep.subr.bf16.mxu1 %v7187_v0 }
0x3372   :  { %6577 = vmatpush3.bf16.msra.mxu1 %v8066_v49 }
0x3373   :  { %6584 = vmatprep.subr.bf16.mxu1 %v7187_v0 }
0x3438   :  { %v6240_v18 = vpop.f32.mrb[28].mxu1 }
0x3439   :  { %v3907_v53 = vadd.f32 %v6240_v18, %v5673_v20  ;;  %v3901_v54 = vpop.f32.mrb[29].mxu1 }
0x343a   :  { %v3902_v55 = vadd.f32 %v5673_v20, %v3901_v54 }
0x343b   :  { %v3911_v62 = vadd.f32 %v3907_v53, %v3719_v39 }
0x343c   :  { %v3910_v52 = vadd.f32 %v3902_v55, %v3718_v38 }
0x343e   :  { %v6548_v57 = vpack.c.bf16 %v3911_v62, %v3910_v52 }
0x3440   :  { %6549 = vmatprep.subr.bf16.mxu0 %v6548_v57  ;;  %v4166_v61 = vpop.f32.mrb[30].mxu1 }
0x3441   :  { %6551 = vmatpush3.bf16.msra.mxu0 %v6548_v57  ;;  %v4167_v2 = vadd.f32 %v8087_v60, %v4166_v61  ;;  %v6269_v36 = vpop.f32.mrb[31].mxu1 }
0x3442   :  { %6553 = vmatprep.subr.bf16.mxu0 %v6552_v41 }
0x3443   :  { %v4171_v35 = vrot.slane %v4167_v2, 1 }
0x3444   :  { %6246 = vmatmul.mubr.msk.f32.vlgmr.msra.gmra.mrb[34].mxu0 %vm1996_vm12, %v8029_v8 }
0x3445   :  { %6555 = vmatpush3.bf16.msra.mxu0 %v6552_v41  ;;  %4190 = vrot.lane.b32.xlu1 %v4171_v35, %s7190_s5 }
0x3446   :  { %6557 = vmatprep.subr.bf16.mxu0 %v6556_v15 }
0x3449   :  { %6559 = vmatpush3.bf16.msra.mxu0 %v6556_v15  ;;  %4188 = vrot.lane.b32.xlu1 %v4167_v2, %s7190_s5 }
0x344a   :  { %6566 = vmatprep.subr.bf16.mxu0 %v7187_v0 }
0x34b7   :  { %v4191_v39 = vpop.permute.xlu1 %4190 }
0x34bb   :  { %v4189_v12 = vpop.permute.xlu1 %4188 }
0x3517   :  { %v6247_v4 = vpop.f32.mrb[34].mxu0 }
0x3518   :  { %v3988_v6 = vsub.f32 %v3911_v62, %v6247_v4  ;;  %v3996_v8 = vadd.f32 %v6247_v4, %v8042_v11  ;;  %v3978_v17 = vpop.f32.mrb[35].mxu0 }
0x3519   :  { %v3987_v14 = vsub.f32 %v3910_v52, %v3978_v17  ;;  %v3995_v23 = vadd.f32 %v8045_v33, %v3978_v17 }
0x351a   :  { %v8097_v19 = vadd.f32 %v3988_v6, %v1993_v5 }
0x351b   :  { %v8099_v25 = vadd.f32 %v3987_v14, %v1988_v10  ;;  %6256 = vmatprep.mubr.msk.f32.mxu0 %vm188_vm1, %v3995_v23 }
0x351c   :  { %6257 = vmatmul.mubr.msk.f32.vlgmr.msra.gmra.mrb[36].mxu0 %vm188_vm1, %v3996_v8 }
0x351d   :  { %6568 = vmatpush3.bf16.msra.mxu0 %v8062_v46  ;;  %6278 = vmatprep.mubr.msk.f32.mxu0 %vm7188_vm0, %v7189_v1 }
0x351e   :  { %6569 = vmatprep.subr.bf16.mxu0 %v7187_v0 }
0x3521   :  { %6571 = vmatpush3.bf16.msra.mxu0 %v8066_v49 }
0x3522   :  { %6578 = vmatprep.subr.bf16.mxu0 %v7187_v0 }
0x35ef   :  { %v6258_v22 = vpop.f32.mrb[36].mxu0 }
0x35f0   :  { %v8110_v29 = vadd.f32 %v6258_v22, %v5678_v21  ;;  %v4085_v28 = vpop.f32.mrb[37].mxu0 }
0x35f1   :  { %v8112_v50 = vadd.f32 %v5678_v21, %v4085_v28 }
0x35f2   :  { %v4175_v56 = vadd.f32 %v4171_v35, %v8110_v29 }
0x35f3   :  { %v4174_v34 = vadd.f32 %v4167_v2, %v8112_v50 }
0x35f4   :  { %v5683_v37 = vmul.f32 -1.442695, %v4175_v56 }
0x35f5   :  { %v5682_v31 = vmul.f32 -1.442695, %v4174_v34 }
0x35f6   :  { %6908 = vpow2.f32 %v5683_v37 }
0x35f7   :  { %6910 = vpow2.f32 %v5682_v31 }
0x3600   :  { %v6909_v11 = vpop.eup %6908 }
0x3601   :  { %v6911_v9 = vpop.eup %6910  ;;  %v4183_v38 = vadd.f32 1.0, %v6909_v11 }
0x3602   :  { %v4182_v33 = vadd.f32 1.0, %v6911_v9 }
0x3603   :  { %6912 = vrcp.f32 %v4183_v38 }
0x3604   :  { %6914 = vrcp.f32 %v4182_v33 }
0x360d   :  { %v6913_v26 = vpop.eup %6912 }
0x360e   :  { %v6915_v13 = vpop.eup %6914  ;;  %v4195_v42 = vmul.f32 %v6913_v26, %v4191_v39  ;;  %v4209_v47 = vsub.f32 1.0, %v6913_v26  ;;  %v4221_v20 = vmul.f32 0.0, %v6913_v26 }
0x360f   :  { %v4194_v16 = vmul.f32 %v6915_v13, %v4189_v12  ;;  %v4208_v48 = vsub.f32 1.0, %v6915_v13  ;;  %v4220_v54 = vmul.f32 0.0, %v6915_v13 }
0x3610   :  { %4200 = vrot.lane.b32.xlu0 %v4195_v42, %s7190_s5 }
0x3611   :  { %4198 = vrot.lane.b32.xlu1 %v4194_v16, %s7190_s5 }
0x3682   :  { %v4201_v43 = vpop.permute.xlu0 %4200 }
0x3683   :  { %v4205_v7 = vadd.f32 %v4201_v43, %v8110_v29  ;;  %v4199_v32 = vpop.permute.xlu1 %4198 }
0x3684   :  { %v4204_v45 = vadd.f32 %v4199_v32, %v8112_v50 }
0x3685   :  { %6916 = vtanh.f32 %v4205_v7 }
0x3686   :  { %6918 = vtanh.f32 %v4204_v45 }
0x368f   :  { %v6917_v44 = vpop.eup %6916 }
0x3690   :  { %v6919_v40 = vpop.eup %6918  ;;  %4214 = vrot.lane.b32.xlu0 %v6917_v44, %s7191_s13 }
0x3691   :  { %4212 = vrot.lane.b32.xlu1 %v6919_v40, %s7191_s13 }
0x3702   :  { %v4215_v24 = vpop.permute.xlu0 %4214 }
0x3703   :  { %v4219_v18 = vmul.f32 %v4215_v24, %v4209_v47  ;;  %v4213_v53 = vpop.permute.xlu1 %4212 }
0x3704   :  { %v4218_v55 = vmul.f32 %v4213_v53, %v4208_v48 }
0x3705   :  { %v8122_v62 = vadd.f32 %v4221_v20, %v4219_v18 }
0x3706   :  { %v8124_v63 = vadd.f32 %v4220_v54, %v4218_v55 }
0x3707   :  { %v4226_v51 = vrot.slane %v8122_v62, 7 }
0x3708   :  { %v4352_v33 = vrot.slane %v8124_v63, 7 }
0x3709   :  { %v4227_v52 = vsel %vm406_vm2, %v4226_v51, %v8124_v63 }
0x370a   :  { %4228 = vrot.lane.b32.xlu0 %v4227_v52, %s7191_s13 }
0x377c   :  { %v4229_v57 = vpop.permute.xlu0 %4228 }
0x377d   :  { %6279 = vmatmul.mubr.msk.f32.vlgmr.msra.gmra.mrb[38].mxu0 %vm188_vm1, %v4229_v57 }
0x377e   :  { %6580 = vmatpush3.bf16.msra.mxu0 %v8062_v46  ;;  %6300 = vmatprep.mubr.msk.f32.mxu0 %vm7188_vm0, %v7189_v1 }
0x377f   :  { %6581 = vmatprep.subr.bf16.mxu0 %v7187_v0 }
0x3782   :  { %6583 = vmatpush3.bf16.msra.mxu0 %v8066_v49 }
0x3783   :  { %6590 = vmatprep.subr.bf16.mxu0 %v7187_v0 }
0x3850   :  { %v4298_v41 = vpop.f32.mrb[38].mxu0 }
0x3851   :  { %v4299_v58 = vadd.f32 %v8087_v60, %v4298_v41  ;;  %v6280_v59 = vpop.f32.mrb[39].mxu0 }
0x3853   :  { %v4303_v15 = vrot.slane %v4299_v58, 7  ;;  %4322 = vrot.lane.b32.xlu0 %v4299_v58, %s7190_s5  ;;  %v4307_v61 = vadd.f32 %v4299_v58, %v8110_v29 }
0x3855   :  { %4320 = vrot.lane.b32.xlu1 %v4303_v15, %s7190_s5  ;;  %v4306_v2 = vadd.f32 %v4303_v15, %v8112_v50  ;;  %v5686_v36 = vmul.f32 -1.442695, %v4307_v61 }
0x3857   :  { %v5685_v35 = vmul.f32 -1.442695, %v4306_v2  ;;  %6920 = vpow2.f32 %v5686_v36 }
0x3859   :  { %6922 = vpow2.f32 %v5685_v35 }
0x3861   :  { %v6921_v3 = vpop.eup %6920 }
0x3862   :  { %v4315_v5 = vadd.f32 1.0, %v6921_v3 }
0x3863   :  { %v6923_v4 = vpop.eup %6922 }
0x3864   :  { %v4314_v6 = vadd.f32 1.0, %v6923_v4  ;;  %6924 = vrcp.f32 %v4315_v5 }
0x3866   :  { %6926 = vrcp.f32 %v4314_v6 }
0x386e   :  { %v6925_v8 = vpop.eup %6924 }
0x386f   :  { %v4341_v9 = vsub.f32 1.0, %v6925_v8  ;;  %v4356_v12 = vmul.f32 %v6925_v8, %v4226_v51 }
0x3870   :  { %v6927_v14 = vpop.eup %6926 }
0x3871   :  { %v4340_v38 = vsub.f32 1.0, %v6927_v14  ;;  %v4355_v13 = vmul.f32 %v6927_v14, %v4352_v33 }
0x38c5   :  { %v4323_v17 = vpop.permute.xlu0 %4322 }
0x38c6   :  { %v4327_v10 = vmul.f32 %v6925_v8, %v4323_v17 }
0x38c7   :  { %v4321_v23 = vpop.permute.xlu1 %4320 }
0x38c8   :  { %v4326_v21 = vmul.f32 %v6927_v14, %v4321_v23  ;;  %4332 = vrot.lane.b32.xlu0 %v4327_v10, %s7190_s5 }
0x38ca   :  { %4330 = vrot.lane.b32.xlu1 %v4326_v21, %s7190_s5 }
0x393a   :  { %v4333_v22 = vpop.permute.xlu0 %4332 }
0x393b   :  { %v4337_v28 = vadd.f32 %v4333_v22, %v8110_v29 }
0x393c   :  { %v4331_v56 = vpop.permute.xlu1 %4330 }
0x393d   :  { %6928 = vtanh.f32 %v4337_v28  ;;  %v4336_v34 = vadd.f32 %v4331_v56, %v8112_v50 }
0x393f   :  { %6930 = vtanh.f32 %v4336_v34 }
0x3947   :  { %v6929_v37 = vpop.eup %6928 }
0x3948   :  { %4346 = vrot.lane.b32.xlu0 %v6929_v37, %s7191_s13 }
0x3949   :  { %v6931_v31 = vpop.eup %6930 }
0x394a   :  { %4344 = vrot.lane.b32.xlu1 %v6931_v31, %s7191_s13 }
0x39ba   :  { %v4347_v11 = vpop.permute.xlu0 %4346 }
0x39bb   :  { %v4351_v26 = vmul.f32 %v4347_v11, %v4341_v9 }
0x39bc   :  { %v4345_v39 = vpop.permute.xlu1 %4344 }
0x39bd   :  { %v4350_v42 = vmul.f32 %v4345_v39, %v4340_v38  ;;  %v4358_v43 = vadd.f32 %v4356_v12, %v4351_v26 }
0x39bf   :  { %v8149_v16 = vadd.f32 %v4355_v13, %v4350_v42  ;;  %v4489_v17 = vrot.slane %v4358_v43, 7  ;;  %v5187_v31 = vsel %vm1366_vm3, %v8122_v62, %v4358_v43 }
0x39c1   :  { %v4361_v7 = vrot.slane %v8149_v16, 1  ;;  %v4488_v23 = vrot.slane %v8149_v16, 7  ;;  %v5186_v9 = vsel %vm1366_vm3, %v8124_v63, %v8149_v16 }
0x39c3   :  { %v4362_v32 = vsel %vm406_vm2, %v4358_v43, %v4361_v7 }
0x39c4   :  { %4363 = vrot.lane.b32.xlu1 %v4362_v32, %s7191_s13 }
0x3a36   :  { %v4364_v45 = vpop.permute.xlu1 %4363 }
0x3a37   :  { %6290 = vmatmul.mubr.msk.f32.vlgmr.msra.gmra.mrb[32].mxu1 %vm188_vm1, %v4364_v45 }
0x3a38   :  { %6586 = vmatpush3.bf16.msra.mxu1 %v8062_v46  ;;  %6311 = vmatprep.mubr.msk.f32.mxu1 %vm7188_vm0, %v7189_v1 }
0x3a39   :  { %6587 = vmatprep.subr.bf16.mxu1 %v7187_v0 }
0x3a3c   :  { %6589 = vmatpush3.bf16.msra.mxu1 %v8066_v49 }
0x3a3d   :  { %6596 = vmatprep.subr.bf16.mxu1 %v7187_v0 }
0x3b0a   :  { %v4433_v44 = vpop.f32.mrb[32].mxu1 }
0x3b0b   :  { %v4434_v40 = vadd.f32 %v8087_v60, %v4433_v44  ;;  %v6291_v47 = vpop.f32.mrb[33].mxu1 }
0x3b0d   :  { %v4438_v24 = vrot.slane %v4434_v40, 6  ;;  %v4439_v48 = vrot.slane %v4434_v40, 7 }
0x3b0f   :  { %4458 = vrot.lane.b32.xlu1 %v4439_v48, %s7190_s5  ;;  %4456 = vrot.lane.b32.xlu0 %v4438_v24, %s7190_s5  ;;  %v4442_v20 = vadd.f32 %v4438_v24, %v8112_v50  ;;  %v4443_v18 = vadd.f32 %v4439_v48, %v8110_v29 }
0x3b11   :  { %v5688_v53 = vmul.f32 -1.442695, %v4442_v20  ;;  %v5689_v54 = vmul.f32 -1.442695, %v4443_v18 }
0x3b13   :  { %6932 = vpow2.f32 %v5688_v53 }
0x3b14   :  { %6934 = vpow2.f32 %v5689_v54 }
0x3b1d   :  { %v6933_v55 = vpop.eup %6932 }
0x3b1e   :  { %v6935_v51 = vpop.eup %6934  ;;  %v4450_v52 = vadd.f32 1.0, %v6933_v55 }
0x3b1f   :  { %v4451_v57 = vadd.f32 1.0, %v6935_v51 }
0x3b20   :  { %6936 = vrcp.f32 %v4450_v52 }
0x3b21   :  { %6938 = vrcp.f32 %v4451_v57 }
0x3b2a   :  { %v6937_v41 = vpop.eup %6936 }
0x3b2b   :  { %v6939_v58 = vpop.eup %6938  ;;  %v4476_v14 = vsub.f32 1.0, %v6937_v41  ;;  %v4492_v56 = vmul.f32 %v6937_v41, %v4488_v23 }
0x3b2c   :  { %v4477_v8 = vsub.f32 1.0, %v6939_v58  ;;  %v4493_v21 = vmul.f32 %v6939_v58, %v4489_v17 }
0x3b81   :  { %v4459_v59 = vpop.permute.xlu1 %4458  ;;  %v4457_v15 = vpop.permute.xlu0 %4456 }
0x3b82   :  { %v4463_v61 = vmul.f32 %v6939_v58, %v4459_v59  ;;  %v4462_v2 = vmul.f32 %v6937_v41, %v4457_v15 }
0x3b84   :  { %4468 = vrot.lane.b32.xlu1 %v4463_v61, %s7190_s5  ;;  %4466 = vrot.lane.b32.xlu0 %v4462_v2, %s7190_s5 }
0x3bf6   :  { %v4469_v36 = vpop.permute.xlu1 %4468  ;;  %v4467_v35 = vpop.permute.xlu0 %4466 }
0x3bf7   :  { %v4473_v3 = vadd.f32 %v4469_v36, %v8110_v29  ;;  %v4472_v4 = vadd.f32 %v4467_v35, %v8112_v50 }
0x3bf9   :  { %6940 = vtanh.f32 %v4473_v3 }
0x3bfa   :  { %6942 = vtanh.f32 %v4472_v4 }
0x3c03   :  { %v6941_v5 = vpop.eup %6940 }
0x3c04   :  { %v6943_v6 = vpop.eup %6942  ;;  %4482 = vrot.lane.b32.xlu1 %v6941_v5, %s7191_s13 }
0x3c05   :  { %4480 = vrot.lane.b32.xlu0 %v6943_v6, %s7191_s13 }
0x3c76   :  { %v4483_v10 = vpop.permute.xlu1 %4482 }
0x3c77   :  { %v4487_v22 = vmul.f32 %v4483_v10, %v4477_v8  ;;  %v4481_v28 = vpop.permute.xlu0 %4480 }
0x3c78   :  { %v4486_v34 = vmul.f32 %v4481_v28, %v4476_v14 }
0x3c79   :  { %v4495_v37 = vadd.f32 %v4493_v21, %v4487_v22 }
0x3c7a   :  { %v4494_v11 = vadd.f32 %v4492_v56, %v4486_v34 }
0x3c7b   :  { %v4499_v38 = vrot.slane %v4495_v37, 1  ;;  %v8179_v33 = vsel %vm1369_vm4, %v5187_v31, %v4495_v37  ;;  %v4627_v2 = vrot.slane %v4495_v37, 7 }
0x3c7c   :  { %v4498_v39 = vrot.slane %v4494_v11, 2  ;;  %v8182_v26 = vsel %vm1369_vm4, %v5186_v9, %v4494_v11  ;;  %v4626_v3 = vrot.slane %v4494_v11, 7 }
0x3c7e   :  { %v4500_v13 = vsel %vm406_vm2, %v4499_v38, %v4498_v39 }
0x3c7f   :  { %4501 = vrot.lane.b32.xlu0 %v4500_v13, %s7191_s13 }
0x3cf1   :  { %v4502_v42 = vpop.permute.xlu0 %4501 }
0x3cf2   :  { %6301 = vmatmul.mubr.msk.f32.vlgmr.msra.gmra.mrb[40].mxu0 %vm188_vm1, %v4502_v42 }
0x3cf3   :  { %6592 = vmatpush3.bf16.msra.mxu0 %v8062_v46  ;;  %6322 = vmatprep.mubr.msk.f32.mxu0 %vm7188_vm0, %v7189_v1 }
0x3cf4   :  { %6593 = vmatprep.subr.bf16.mxu0 %v7187_v0 }
0x3cf7   :  { %6595 = vmatpush3.bf16.msra.mxu0 %v8066_v49 }
0x3cf8   :  { %6602 = vmatprep.subr.bf16.mxu0 %v7187_v0 }
0x3dc5   :  { %v4571_v62 = vpop.f32.mrb[40].mxu0 }
0x3dc6   :  { %v4572_v63 = vadd.f32 %v8087_v60, %v4571_v62  ;;  %v6302_v12 = vpop.f32.mrb[41].mxu0 }
0x3dc8   :  { %v4576_v16 = vrot.slane %v4572_v63, 5  ;;  %v4577_v43 = vrot.slane %v4572_v63, 6 }
0x3dca   :  { %4596 = vrot.lane.b32.xlu0 %v4577_v43, %s7190_s5  ;;  %4594 = vrot.lane.b32.xlu1 %v4576_v16, %s7190_s5  ;;  %v4580_v7 = vadd.f32 %v4576_v16, %v8112_v50  ;;  %v4581_v32 = vadd.f32 %v4577_v43, %v8110_v29 }
0x3dcc   :  { %v5691_v45 = vmul.f32 -1.442695, %v4580_v7  ;;  %v5692_v44 = vmul.f32 -1.442695, %v4581_v32 }
0x3dce   :  { %6944 = vpow2.f32 %v5691_v45 }
0x3dcf   :  { %6946 = vpow2.f32 %v5692_v44 }
0x3dd8   :  { %v6945_v40 = vpop.eup %6944 }
0x3dd9   :  { %v6947_v47 = vpop.eup %6946  ;;  %v4588_v24 = vadd.f32 1.0, %v6945_v40 }
0x3dda   :  { %v4589_v48 = vadd.f32 1.0, %v6947_v47 }
0x3ddb   :  { %6948 = vrcp.f32 %v4588_v24 }
0x3ddc   :  { %6950 = vrcp.f32 %v4589_v48 }
0x3de5   :  { %v6949_v20 = vpop.eup %6948 }
0x3de6   :  { %v6951_v18 = vpop.eup %6950  ;;  %v4614_v35 = vsub.f32 1.0, %v6949_v20  ;;  %v4630_v8 = vmul.f32 %v6949_v20, %v4626_v3 }
0x3de7   :  { %v4615_v61 = vsub.f32 1.0, %v6951_v18  ;;  %v4631_v4 = vmul.f32 %v6951_v18, %v4627_v2 }
0x3e3c   :  { %v4597_v53 = vpop.permute.xlu0 %4596  ;;  %v4595_v54 = vpop.permute.xlu1 %4594 }
0x3e3d   :  { %v4601_v55 = vmul.f32 %v6951_v18, %v4597_v53  ;;  %v4600_v51 = vmul.f32 %v6949_v20, %v4595_v54 }
0x3e3f   :  { %4606 = vrot.lane.b32.xlu0 %v4601_v55, %s7190_s5  ;;  %4604 = vrot.lane.b32.xlu1 %v4600_v51, %s7190_s5 }
0x3eb1   :  { %v4607_v52 = vpop.permute.xlu0 %4606  ;;  %v4605_v57 = vpop.permute.xlu1 %4604 }
0x3eb2   :  { %v4611_v41 = vadd.f32 %v4607_v52, %v8110_v29  ;;  %v4610_v58 = vadd.f32 %v4605_v57, %v8112_v50 }
0x3eb4   :  { %6952 = vtanh.f32 %v4611_v41 }
0x3eb5   :  { %6954 = vtanh.f32 %v4610_v58 }
0x3ebe   :  { %v6953_v59 = vpop.eup %6952 }
0x3ebf   :  { %v6955_v15 = vpop.eup %6954  ;;  %4620 = vrot.lane.b32.xlu0 %v6953_v59, %s7191_s13 }
0x3ec0   :  { %4618 = vrot.lane.b32.xlu1 %v6955_v15, %s7191_s13 }
0x3f31   :  { %v4621_v36 = vpop.permute.xlu0 %4620 }
0x3f32   :  { %v4625_v5 = vmul.f32 %v4621_v36, %v4615_v61  ;;  %v4619_v6 = vpop.permute.xlu1 %4618 }
0x3f33   :  { %v4624_v17 = vmul.f32 %v4619_v6, %v4614_v35 }
0x3f34   :  { %v4633_v10 = vadd.f32 %v4631_v4, %v4625_v5 }
0x3f35   :  { %v4632_v14 = vadd.f32 %v4630_v8, %v4624_v17 }
0x3f36   :  { %v4637_v23 = vrot.slane %v4633_v10, 2  ;;  %v5191_v21 = vsel %vm1372_vm5, %v8179_v33, %v4633_v10  ;;  %v4765_v54 = vrot.slane %v4633_v10, 7 }
0x3f37   :  { %v4636_v22 = vrot.slane %v4632_v14, 3  ;;  %v5190_v28 = vsel %vm1372_vm5, %v8182_v26, %v4632_v14  ;;  %v4764_v52 = vrot.slane %v4632_v14, 7 }
0x3f39   :  { %v4638_v56 = vsel %vm406_vm2, %v4637_v23, %v4636_v22 }
0x3f3a   :  { %4639 = vrot.lane.b32.xlu1 %v4638_v56, %s7191_s13 }
0x3fac   :  { %v4640_v34 = vpop.permute.xlu1 %4639 }
0x3fad   :  { %6312 = vmatmul.mubr.msk.f32.vlgmr.msra.gmra.mrb[34].mxu1 %vm188_vm1, %v4640_v34 }
0x3fae   :  { %6598 = vmatpush3.bf16.msra.mxu1 %v8062_v46  ;;  %6333 = vmatprep.mubr.msk.f32.mxu1 %vm7188_vm0, %v7189_v1 }
0x3faf   :  { %6599 = vmatprep.subr.bf16.mxu1 %v7187_v0 }
0x3fb2   :  { %6601 = vmatpush3.bf16.msra.mxu1 %v8066_v49 }
0x4080   :  { %v4709_v37 = vpop.f32.mrb[34].mxu1 }
0x4081   :  { %v4710_v31 = vadd.f32 %v8087_v60, %v4709_v37  ;;  %v6313_v11 = vpop.f32.mrb[35].mxu1 }
0x4083   :  { %v4714_v9 = vrot.slane %v4710_v31, 4  ;;  %v4715_v38 = vrot.slane %v4710_v31, 5 }
0x4085   :  { %4734 = vrot.lane.b32.xlu1 %v4715_v38, %s7190_s5  ;;  %4732 = vrot.lane.b32.xlu0 %v4714_v9, %s7190_s5  ;;  %v4718_v33 = vadd.f32 %v4714_v9, %v8112_v50  ;;  %v4719_v39 = vadd.f32 %v4715_v38, %v8110_v29 }
0x4087   :  { %v5694_v26 = vmul.f32 -1.442695, %v4718_v33  ;;  %v5695_v13 = vmul.f32 -1.442695, %v4719_v39 }
0x4089   :  { %6956 = vpow2.f32 %v5694_v26 }
0x408a   :  { %6958 = vpow2.f32 %v5695_v13 }
0x4093   :  { %v6957_v42 = vpop.eup %6956 }
0x4094   :  { %v6959_v62 = vpop.eup %6958  ;;  %v4726_v63 = vadd.f32 1.0, %v6957_v42 }
0x4095   :  { %v4727_v12 = vadd.f32 1.0, %v6959_v62 }
0x4096   :  { %6960 = vrcp.f32 %v4726_v63 }
0x4097   :  { %6962 = vrcp.f32 %v4727_v12 }
0x40a0   :  { %v6961_v16 = vpop.eup %6960 }
0x40a1   :  { %v6963_v43 = vpop.eup %6962  ;;  %v4752_v51 = vsub.f32 1.0, %v6961_v16  ;;  %v4768_v59 = vmul.f32 %v6961_v16, %v4764_v52 }
0x40a2   :  { %v4753_v53 = vsub.f32 1.0, %v6963_v43  ;;  %v4769_v57 = vmul.f32 %v6963_v43, %v4765_v54 }
0x40f7   :  { %v4735_v7 = vpop.permute.xlu1 %4734  ;;  %v4733_v32 = vpop.permute.xlu0 %4732 }
0x40f8   :  { %v4739_v45 = vmul.f32 %v6963_v43, %v4735_v7  ;;  %v4738_v44 = vmul.f32 %v6961_v16, %v4733_v32 }
0x40fa   :  { %4744 = vrot.lane.b32.xlu1 %v4739_v45, %s7190_s5  ;;  %4742 = vrot.lane.b32.xlu0 %v4738_v44, %s7190_s5 }
0x416c   :  { %v4745_v40 = vpop.permute.xlu1 %4744  ;;  %v4743_v47 = vpop.permute.xlu0 %4742 }
0x416d   :  { %v4749_v24 = vadd.f32 %v4745_v40, %v8110_v29  ;;  %v4748_v48 = vadd.f32 %v4743_v47, %v8112_v50 }
0x416f   :  { %6964 = vtanh.f32 %v4749_v24 }
0x4170   :  { %6966 = vtanh.f32 %v4748_v48 }
0x4179   :  { %v6965_v20 = vpop.eup %6964 }
0x417a   :  { %v6967_v18 = vpop.eup %6966  ;;  %4758 = vrot.lane.b32.xlu1 %v6965_v20, %s7191_s13 }
0x417b   :  { %4756 = vrot.lane.b32.xlu0 %v6967_v18, %s7191_s13 }
0x41ec   :  { %v4759_v55 = vpop.permute.xlu1 %4758 }
0x41ed   :  { %v4763_v41 = vmul.f32 %v4759_v55, %v4753_v53  ;;  %v4757_v58 = vpop.permute.xlu0 %4756 }
0x41ee   :  { %v4762_v15 = vmul.f32 %v4757_v58, %v4752_v51 }
0x41ef   :  { %v4771_v61 = vadd.f32 %v4769_v57, %v4763_v41 }
0x41f0   :  { %v4770_v2 = vadd.f32 %v4768_v59, %v4762_v15 }
0x41f1   :  { %v4775_v36 = vrot.slane %v4771_v61, 3  ;;  %v5193_v35 = vsel %vm1375_vm6, %v5191_v21, %v4771_v61  ;;  %v4903_v12 = vrot.slane %v4771_v61, 7 }
0x41f2   :  { %v4774_v3 = vrot.slane %v4770_v2, 4  ;;  %v5192_v4 = vsel %vm1375_vm6, %v5190_v28, %v4770_v2  ;;  %v4902_v7 = vrot.slane %v4770_v2, 7 }
0x41f4   :  { %v4776_v5 = vsel %vm406_vm2, %v4775_v36, %v4774_v3 }
0x41f5   :  { %4777 = vrot.lane.b32.xlu0 %v4776_v5, %s7191_s13 }
0x4267   :  { %v4778_v6 = vpop.permute.xlu0 %4777 }
0x4268   :  { %6323 = vmatmul.mubr.msk.f32.vlgmr.msra.gmra.mrb[42].mxu0 %vm188_vm1, %v4778_v6 }
0x4269   :  { %6604 = vmatpush3.bf16.msra.mxu0 %v8062_v46  ;;  %6344 = vmatprep.mubr.msk.f32.mxu0 %vm7188_vm0, %v7189_v1 }
0x426a   :  { %6605 = vmatprep.subr.bf16.mxu0 %v7187_v0 }
0x426d   :  { %6607 = vmatpush3.bf16.msra.mxu0 %v8066_v49 }
0x433b   :  { %v4847_v8 = vpop.f32.mrb[42].mxu0 }
0x433c   :  { %v4848_v17 = vadd.f32 %v8087_v60, %v4847_v8  ;;  %v6324_v10 = vpop.f32.mrb[43].mxu0 }
0x433e   :  { %v4852_v14 = vrot.slane %v4848_v17, 3  ;;  %v4853_v23 = vrot.slane %v4848_v17, 4 }
0x4340   :  { %4872 = vrot.lane.b32.xlu0 %v4853_v23, %s7190_s5  ;;  %4870 = vrot.lane.b32.xlu1 %v4852_v14, %s7190_s5  ;;  %v4856_v21 = vadd.f32 %v4852_v14, %v8112_v50  ;;  %v4857_v46 = vadd.f32 %v4853_v23, %v8110_v29 }
0x4342   :  { %v5697_v22 = vmul.f32 -1.442695, %v4856_v21  ;;  %v5698_v1 = vmul.f32 -1.442695, %v4857_v46 }
0x4344   :  { %6968 = vpow2.f32 %v5697_v22 }
0x4345   :  { %6970 = vpow2.f32 %v5698_v1 }
0x434e   :  { %v6969_v0 = vpop.eup %6968 }
0x434f   :  { %v6971_v49 = vpop.eup %6970  ;;  %v4864_v28 = vadd.f32 1.0, %v6969_v0 }
0x4350   :  { %v4865_v56 = vadd.f32 1.0, %v6971_v49 }
0x4351   :  { %6972 = vrcp.f32 %v4864_v28 }
0x4352   :  { %6974 = vrcp.f32 %v4865_v56 }
0x435b   :  { %v6973_v34 = vpop.eup %6972 }
0x435c   :  { %v6975_v37 = vpop.eup %6974  ;;  %v4890_v43 = vsub.f32 1.0, %v6973_v34  ;;  %v4906_v40 = vmul.f32 %v6973_v34, %v4902_v7 }
0x435d   :  { %v4891_v63 = vsub.f32 1.0, %v6975_v37  ;;  %v4907_v32 = vmul.f32 %v6975_v37, %v4903_v12 }
0x43b2   :  { %v4873_v31 = vpop.permute.xlu0 %4872  ;;  %v4871_v11 = vpop.permute.xlu1 %4870 }
0x43b3   :  { %v4877_v9 = vmul.f32 %v6975_v37, %v4873_v31  ;;  %v4876_v38 = vmul.f32 %v6973_v34, %v4871_v11 }
0x43b5   :  { %4882 = vrot.lane.b32.xlu0 %v4877_v9, %s7190_s5  ;;  %4880 = vrot.lane.b32.xlu1 %v4876_v38, %s7190_s5 }
0x4427   :  { %v4883_v33 = vpop.permute.xlu0 %4882  ;;  %v4881_v39 = vpop.permute.xlu1 %4880 }
0x4428   :  { %v4887_v26 = vadd.f32 %v4883_v33, %v8110_v29  ;;  %v4886_v13 = vadd.f32 %v4881_v39, %v8112_v50 }
0x442a   :  { %6976 = vtanh.f32 %v4887_v26 }
0x442b   :  { %6978 = vtanh.f32 %v4886_v13 }
0x4434   :  { %v6977_v42 = vpop.eup %6976 }
0x4435   :  { %v6979_v62 = vpop.eup %6978  ;;  %4896 = vrot.lane.b32.xlu0 %v6977_v42, %s7191_s13 }
0x4436   :  { %4894 = vrot.lane.b32.xlu1 %v6979_v62, %s7191_s13 }
0x44a7   :  { %v4897_v16 = vpop.permute.xlu0 %4896 }
0x44a8   :  { %v4901_v45 = vmul.f32 %v4897_v16, %v4891_v63  ;;  %v4895_v44 = vpop.permute.xlu1 %4894 }
0x44a9   :  { %v4900_v47 = vmul.f32 %v4895_v44, %v4890_v43 }
0x44aa   :  { %v4909_v24 = vadd.f32 %v4907_v32, %v4901_v45 }
0x44ab   :  { %v4908_v48 = vadd.f32 %v4906_v40, %v4900_v47 }
0x44ac   :  { %v4913_v20 = vrot.slane %v4909_v24, 4  ;;  %v5195_v18 = vsel %vm1378_vm7, %v5193_v35, %v4909_v24  ;;  %v5041_v56 = vrot.slane %v4909_v24, 7 }
0x44ad   :  { %v4912_v53 = vrot.slane %v4908_v48, 5  ;;  %v5194_v54 = vsel %vm1378_vm7, %v5192_v4, %v4908_v48  ;;  %v5040_v31 = vrot.slane %v4908_v48, 7 }
0x44af   :  { %v4914_v55 = vsel %vm406_vm2, %v4913_v20, %v4912_v53 }
0x44b0   :  { %4915 = vrot.lane.b32.xlu1 %v4914_v55, %s7191_s13 }
0x4522   :  { %v4916_v51 = vpop.permute.xlu1 %4915 }
0x4523   :  { %6334 = vmatmul.mubr.msk.f32.vlgmr.msra.gmra.mrb[36].mxu1 %vm188_vm1, %v4916_v51 }
0x45f6   :  { %v4985_v52 = vpop.f32.mrb[36].mxu1 }
0x45f7   :  { %v4986_v57 = vadd.f32 %v8087_v60, %v4985_v52  ;;  %v6335_v41 = vpop.f32.mrb[37].mxu1 }
0x45f9   :  { %v4990_v58 = vrot.slane %v4986_v57, 2  ;;  %v4991_v59 = vrot.slane %v4986_v57, 3 }
0x45fb   :  { %5010 = vrot.lane.b32.xlu1 %v4991_v59, %s7190_s5  ;;  %5008 = vrot.lane.b32.xlu0 %v4990_v58, %s7190_s5  ;;  %v4994_v15 = vadd.f32 %v4990_v58, %v8112_v50  ;;  %v4995_v61 = vadd.f32 %v4991_v59, %v8110_v29 }
0x45fd   :  { %v5700_v2 = vmul.f32 -1.442695, %v4994_v15  ;;  %v5701_v36 = vmul.f32 -1.442695, %v4995_v61 }
0x45ff   :  { %6980 = vpow2.f32 %v5700_v2 }
0x4600   :  { %6982 = vpow2.f32 %v5701_v36 }
0x4609   :  { %v6981_v35 = vpop.eup %6980 }
0x460a   :  { %v6983_v3 = vpop.eup %6982  ;;  %v5002_v4 = vadd.f32 1.0, %v6981_v35 }
0x460b   :  { %v5003_v5 = vadd.f32 1.0, %v6983_v3  ;;  %v5216_v3 = vld [vmem:[%s7339_s14 + $0x20] sm:$0xff] }
0x460c   :  { %6984 = vrcp.f32 %v5002_v4  ;;  %v5217_v4 = vld [vmem:[%s7339_s14 + $0x28] sm:$0xff] }
0x460d   :  { %6986 = vrcp.f32 %v5003_v5  ;;  %v5218_v5 = vld [vmem:[%s7339_s14 + $0x30] sm:$0xff] }
0x4616   :  { %v6985_v6 = vpop.eup %6984 }
0x4617   :  { %v6987_v8 = vpop.eup %6986  ;;  %v5028_v37 = vsub.f32 1.0, %v6985_v6  ;;  %v5044_v33 = vmul.f32 %v6985_v6, %v5040_v31 }
0x4618   :  { %v5029_v28 = vsub.f32 1.0, %v6987_v8  ;;  %v5045_v11 = vmul.f32 %v6987_v8, %v5041_v56 }
0x466d   :  { %v5011_v17 = vpop.permute.xlu1 %5010  ;;  %v5009_v10 = vpop.permute.xlu0 %5008 }
0x466e   :  { %v5015_v14 = vmul.f32 %v6987_v8, %v5011_v17  ;;  %v5014_v23 = vmul.f32 %v6985_v6, %v5009_v10  ;;  %v6608_v6 = vpack.c.bf16 %v5217_v4, %v5216_v3  ;;  %v5219_v8 = vld [vmem:[%s7339_s14 + $0x38] sm:$0xff] }
0x466f   :  { %v6612_v17 = vpack.c.bf16 %v5219_v8, %v5218_v5 }
0x4670   :  { %5020 = vrot.lane.b32.xlu1 %v5015_v14, %s7190_s5  ;;  %5018 = vrot.lane.b32.xlu0 %v5014_v23, %s7190_s5 }
0x4671   :  { %6609 = vmatprep.subr.bf16.mxu1 %v6608_v6 }
0x4672   :  { %6611 = vmatpush3.bf16.msra.mxu1 %v6608_v6 }
0x4673   :  { %6613 = vmatprep.subr.bf16.mxu1 %v6612_v17 }
0x4676   :  { %6615 = vmatpush3.bf16.msra.mxu1 %v6612_v17 }
0x46e2   :  { %v5021_v21 = vpop.permute.xlu1 %5020  ;;  %v5019_v46 = vpop.permute.xlu0 %5018 }
0x46e3   :  { %v5025_v22 = vadd.f32 %v5021_v21, %v8110_v29  ;;  %v5024_v1 = vadd.f32 %v5019_v46, %v8112_v50 }
0x46e5   :  { %6988 = vtanh.f32 %v5025_v22 }
0x46e6   :  { %6990 = vtanh.f32 %v5024_v1 }
0x46ef   :  { %v6989_v0 = vpop.eup %6988 }
0x46f0   :  { %v6991_v49 = vpop.eup %6990  ;;  %5034 = vrot.lane.b32.xlu1 %v6989_v0, %s7191_s13 }
0x46f1   :  { %5032 = vrot.lane.b32.xlu0 %v6991_v49, %s7191_s13 }
0x4762   :  { %v5035_v34 = vpop.permute.xlu1 %5034 }
0x4763   :  { %v5039_v9 = vmul.f32 %v5035_v34, %v5029_v28  ;;  %v5033_v38 = vpop.permute.xlu0 %5032 }
0x4764   :  { %v5038_v39 = vmul.f32 %v5033_v38, %v5028_v37 }
0x4765   :  { %v8264_v26 = vadd.f32 %v5045_v11, %v5039_v9  ;;  %v3992_v9 = vmul.f32 0.5, %v8097_v19  ;;  %v5221_v19 = vld [vmem:[%s7339_s14 + $0x48] sm:$0xff] }
0x4766   :  { %v8266_v13 = vadd.f32 %v5044_v33, %v5038_v39  ;;  %v3991_v33 = vmul.f32 0.5, %v8099_v25 }
0x4767   :  { %v5051_v42 = vrot.slane %v8264_v26, 5  ;;  %v8271_v62 = vsel %vm1381_vm8, %v5195_v18, %v8264_v26  ;;  %v5179_v23 = vrot.slane %v8264_v26, 7  ;;  %v5474_v38 = vsel %vm188_vm1, %v3992_v9, 0.0  ;;  %v5214_v26 = vld [vmem:[%s7339_s14 + $0x10] sm:$0xff] }
0x4768   :  { %v5050_v63 = vrot.slane %v8266_v13, 6  ;;  %v8276_v12 = vsel %vm1381_vm8, %v5194_v54, %v8266_v13  ;;  %v5178_v22 = vrot.slane %v8266_v13, 7  ;;  %v5471_v39 = vsel %vm188_vm1, %v3991_v33, 0.0  ;;  %v5215_v13 = vld [vmem:[%s7339_s14 + $0x18] sm:$0xff] }
0x476a   :  { %v5052_v16 = vsel %vm406_vm2, %v5051_v42, %v5050_v63  ;;  %v6620_v63 = vpack.c.bf16 %v5215_v13, %v5214_v26 }
0x476b   :  { %5053 = vrot.lane.b32.xlu0 %v5052_v16, %s7191_s13  ;;  %v5220_v16 = vld [vmem:[%s7339_s14 + $0x40] sm:$0xff] }
0x476c   :  { %v6624_v25 = vpack.c.bf16 %v5221_v19, %v5220_v16 }
0x47dd   :  { %v5054_v43 = vpop.permute.xlu0 %5053 }
0x47de   :  { %6345 = vmatmul.mubr.msk.f32.vlgmr.msra.gmra.mrb[44].mxu0 %vm188_vm1, %v5054_v43  ;;  %v5222_v43 = vld [vmem:[%s7339_s14 + $0x50] sm:$0xff] }
0x48b1   :  { %v5123_v7 = vpop.f32.mrb[44].mxu0 }
0x48b2   :  { %v5124_v32 = vadd.f32 %v8087_v60, %v5123_v7  ;;  %v6346_v45 = vpop.f32.mrb[45].mxu0  ;;  %v5223_v7 = vld [vmem:[%s7339_s14 + $0x58] sm:$0xff] }
0x48b3   :  { %v6628_v45 = vpack.c.bf16 %v5223_v7, %v5222_v43 }
0x48b4   :  { %v5128_v44 = vrot.slane %v5124_v32, 1  ;;  %v5129_v40 = vrot.slane %v5124_v32, 2 }
0x48b6   :  { %5148 = vrot.lane.b32.xlu0 %v5129_v40, %s7190_s5  ;;  %5146 = vrot.lane.b32.xlu1 %v5128_v44, %s7190_s5  ;;  %v5132_v47 = vadd.f32 %v5128_v44, %v8112_v50  ;;  %v5133_v24 = vadd.f32 %v5129_v40, %v8110_v29 }
0x48b8   :  { %v5703_v48 = vmul.f32 -1.442695, %v5132_v47  ;;  %v5704_v20 = vmul.f32 -1.442695, %v5133_v24 }
0x48ba   :  { %6992 = vpow2.f32 %v5703_v48 }
0x48bb   :  { %6994 = vpow2.f32 %v5704_v20 }
0x48c4   :  { %v6993_v18 = vpop.eup %6992 }
0x48c5   :  { %v6995_v53 = vpop.eup %6994  ;;  %v5140_v54 = vadd.f32 1.0, %v6993_v18 }
0x48c6   :  { %v5141_v55 = vadd.f32 1.0, %v6995_v53 }
0x48c7   :  { %6996 = vrcp.f32 %v5140_v54 }
0x48c8   :  { %6998 = vrcp.f32 %v5141_v55 }
0x48d1   :  { %v6997_v60 = vpop.eup %6996 }
0x48d2   :  { %v6999_v51 = vpop.eup %6998  ;;  %v5166_v46 = vsub.f32 1.0, %v6997_v60  ;;  %v5182_v28 = vmul.f32 %v6997_v60, %v5178_v22 }
0x48d3   :  { %v5167_v14 = vsub.f32 1.0, %v6999_v51  ;;  %v5183_v1 = vmul.f32 %v6999_v51, %v5179_v23 }
0x4928   :  { %v5149_v52 = vpop.permute.xlu0 %5148  ;;  %v5147_v57 = vpop.permute.xlu1 %5146 }
0x4929   :  { %v5153_v41 = vmul.f32 %v6999_v51, %v5149_v52  ;;  %v5152_v58 = vmul.f32 %v6997_v60, %v5147_v57  ;;  %v1389_v52 = vrot.slane %v7670_v27, 7 }
0x492b   :  { %5158 = vrot.lane.b32.xlu0 %v5153_v41, %s7190_s5  ;;  %5156 = vrot.lane.b32.xlu1 %v5152_v58, %s7190_s5 }
0x499d   :  { %v5159_v59 = vpop.permute.xlu0 %5158  ;;  %v5157_v15 = vpop.permute.xlu1 %5156 }
0x499e   :  { %v5163_v61 = vadd.f32 %v5159_v59, %v8110_v29  ;;  %v5162_v2 = vadd.f32 %v5157_v15, %v8112_v50  ;;  %v5212_v29 = vld [vmem:[%s7339_s14] sm:$0xff]  ;;  %v5213_v50 = vld [vmem:[%s7339_s14 + $0x8] sm:$0xff]  ;;  %s8395_s14 = sld [smem:[#allocation27_spill]] }
0x499f   :  { %v6616_v10 = vpack.c.bf16 %v5213_v50, %v5212_v29 }
0x49a0   :  { %7000 = vtanh.f32 %v5163_v61 }
0x49a1   :  { %7002 = vtanh.f32 %v5162_v2  ;;  %6617 = vmatprep.subr.bf16.mxu1 %v6616_v10 }
0x49aa   :  { %v7001_v36 = vpop.eup %7000 }
0x49ab   :  { %v7003_v35 = vpop.eup %7002  ;;  %5172 = vrot.lane.b32.xlu0 %v7001_v36, %s7191_s13 }
0x49ac   :  { %5170 = vrot.lane.b32.xlu1 %v7003_v35, %s7191_s13  ;;  %v5711_v35 = vld [vmem:[%s8395_s14] ss:$0 sm:$0xff] }
0x4a1d   :  { %v5173_v21 = vpop.permute.xlu0 %5172 }
0x4a1e   :  { %v5177_v0 = vmul.f32 %v5173_v21, %v5167_v14  ;;  %v5171_v49 = vpop.permute.xlu1 %5170 }
0x4a1f   :  { %v5176_v56 = vmul.f32 %v5171_v49, %v5166_v46 }
0x4a20   :  { %v5185_v34 = vadd.f32 %v5183_v1, %v5177_v0 }
0x4a21   :  { %v5184_v37 = vadd.f32 %v5182_v28, %v5176_v56 }
0x4a22   :  { %v5199_v31 = vsel %vm1384_vm10, %v8271_v62, %v5185_v34 }
0x4a23   :  { %5204 = vrot.lane.b32.xlu0 %v5199_v31, %s7191_s13  ;;  %v5198_v11 = vsel %vm1384_vm10, %v8276_v12, %v5184_v37 }
0x4a24   :  { %5202 = vrot.lane.b32.xlu1 %v5198_v11, %s7191_s13 }
0x4a42   :  { %5475 = vadd.xlane.f32.xlu0 %v5474_v38 }
0x4a48   :  { %5472 = vadd.xlane.f32.xlu1 %v5471_v39 }
0x4a95   :  { %v5205_v42 = vpop.permute.xlu0 %5204 }
0x4a96   :  { %v5203_v62 = vpop.permute.xlu1 %5202  ;;  %v5209_v32 = vrot.slane %v5205_v42, 7  ;;  %v5211_v40 = vrot.slane %v5205_v42, 1 }
0x4a97   :  { %v5208_v12 = vrot.slane %v5203_v62, 7  ;;  %6355 = vmatprep.mubr.msk.f32.mxu1 %vm188_vm1, %v5203_v62  ;;  %v5210_v44 = vrot.slane %v5203_v62, 1 }
0x4a98   :  { %6356 = vmatmul.mubr.msk.f32.vlgmr.msra.gmra.mrb[38].mxu1 %vm188_vm1, %v5205_v42 }
0x4a99   :  { %6619 = vmatpush3.bf16.msra.mxu1 %v6616_v10  ;;  %6366 = vmatprep.mubr.msk.f32.mxu1 %vm188_vm1, %v5208_v12 }
0x4a9a   :  { %6621 = vmatprep.subr.bf16.mxu1 %v6620_v63 }
0x4a9d   :  { %6623 = vmatpush3.bf16.msra.mxu1 %v6620_v63 }
0x4a9e   :  { %6625 = vmatprep.subr.bf16.mxu1 %v6624_v25 }
0x4aa0   :  { %6367 = vmatmul.mubr.msk.f32.vlgmr.msra.gmra.mrb[38].mxu1 %vm188_vm1, %v5209_v32 }
0x4aa1   :  { %6627 = vmatpush3.bf16.msra.mxu1 %v6624_v25  ;;  %6377 = vmatprep.mubr.msk.f32.mxu1 %vm188_vm1, %v5210_v44 }
0x4aa2   :  { %6629 = vmatprep.subr.bf16.mxu1 %v6628_v45 }
0x4aa5   :  { %6631 = vmatpush3.bf16.msra.mxu1 %v6628_v45 }
0x4aa8   :  { %6378 = vmatmul.mubr.msk.f32.vlgmr.msra.gmra.mrb[38].mxu1 %vm188_vm1, %v5211_v40 }
0x4acf   :  { %v5476_v47 = vpop.xlane.xlu0 %5475 }
0x4ad0   :  { %v5478_v24 = vmul.f32 0.03125, %v5476_v47 }
0x4ad2   :  { %v5480_v48 = vsub.f32 %v3992_v9, %v5478_v24 }
0x4ad4   :  { %v5482_v20 = vmul.f32 %v5480_v48, %v5480_v48 }
0x4ad5   :  { %v5473_v18 = vpop.xlane.xlu1 %5472 }
0x4ad6   :  { %v5477_v53 = vmul.f32 0.03125, %v5473_v18  ;;  %v5486_v54 = vsel %vm188_vm1, %v5482_v20, 0.0 }
0x4ad7   :  { %5487 = vadd.xlane.f32.xlu1 %v5486_v54 }
0x4ad8   :  { %v5479_v55 = vsub.f32 %v3991_v33, %v5477_v53 }
0x4ada   :  { %v5481_v60 = vmul.f32 %v5479_v55, %v5479_v55 }
0x4adc   :  { %v5483_v51 = vsel %vm188_vm1, %v5481_v60, 0.0 }
0x4add   :  { %5484 = vadd.xlane.f32.xlu0 %v5483_v51 }
0x4ae8   :  { %1392 = vrot.lane.b32.xlu1 %v1389_v52, %s7191_s13 }
0x4af3   :  { %1390 = vrot.lane.b32.xlu0 %v7672_v30, %s7191_s13  ;;  %v5712_v30 = vld [vmem:[%s8396_s16] ss:$0 sm:$0xff] }
0x4b64   :  { %v5488_v57 = vpop.xlane.xlu1 %5487 }
0x4b65   :  { %v5490_v41 = vmul.f32 0.03125, %v5488_v57 }
0x4b67   :  { %v5492_v58 = vadd.f32 1e-05, %v5490_v41 }
0x4b68   :  { %v1393_v59 = vpop.permute.xlu1 %1392 }
0x4b69   :  { %7004 = vrsqrt.f32 %v5492_v58  ;;  %1399 = vst.msk [vmem:[#allocation11 + $0x1] sm:$0x1] %vm1398_vm14, %v1393_v59 }
0x4b6a   :  { %v5485_v15 = vpop.xlane.xlu0 %5484 }
0x4b6b   :  { %v5489_v61 = vmul.f32 0.03125, %v5485_v15 }
0x4b6d   :  { %v5491_v2 = vadd.f32 1e-05, %v5489_v61 }
0x4b6e   :  { %v1391_v36 = vpop.permute.xlu0 %1390 }
0x4b6f   :  { %7006 = vrsqrt.f32 %v5491_v2  ;;  %1397 = vst.msk [vmem:[#allocation11 - $0x7] sm:$0x80] %vm1396_vm15, %v1391_v36 }
0x4b73   :  { %v7005_v27 = vpop.eup %7004 }
0x4b74   :  { %v5496_v3 = vmul.f32 %v7005_v27, %v5480_v48 }
0x4b76   :  { %v5504_v4 = vmul.f32 %v5711_v35, %v5496_v3 }
0x4b78   :  { %v5512_v5 = vadd.f32 %v5712_v30, %v5504_v4 }
0x4b79   :  { %v7007_v6 = vpop.eup %7006 }
0x4b7a   :  { %v5495_v8 = vmul.f32 %v7007_v6, %v5479_v55  ;;  %5514 = vst.msk [vmem:[#allocation8 + $0x8] sm:$0xff] %vm188_vm1, %v5512_v5 }
0x4b7b   :  { %v6379_v17 = vpop.f32.mrb[38].mxu1 }
0x4b7c   :  { %5468 = vst.msk [vmem:[#allocation9 + $0x8] sm:$0xff] %vm1583_vm9, %v6379_v17  ;;  %v5456_v29 = vpop.f32.mrb[39].mxu1  ;;  %v5503_v50 = vmul.f32 %v5711_v35, %v5495_v8 }
0x4b7d   :  { %5467 = vst.msk [vmem:[#allocation9] sm:$0xff] %vm1583_vm9, %v5456_v29 }
0x4b7e   :  { %7089 = shalt.err (!%p7086_p0)
}
0x4b7f   :  { %s7090_s7 = scalar_lea.hbm %s7349_s30, 256 }
0x4b80   :  { %p7091_p1 = scmp.ne.s32.totalorder %s7349_s30, %s7090_s7  ;;  %p7094_p2 = scmp.lt.u32.totalorder %s7090_s7, %s7349_s30 }
0x4b82   :  { %p7096_p3 = pnand %p7094_p2, %p7091_p1 }
0x4b84   :  { %7099 = shalt.err (!%p7096_p3)
}
0x4b85   :  { %5538 = dma.vmem_to_hbm [thread:$0]  %s5533_s22, 256, %s7349_s30, [#allocation10], %s7184_s26, %s7184_s26, %s7185_s28   ;;  %v5511_v10 = vadd.f32 %v5712_v30, %v5503_v50 }
0x4b86   :  { %s7100_s10 = scalar_lea.vmem %s8332_s0, 32  ;;  %p7105_p5 = scmp.lt.s32.totalorder %s8332_s0, %s8332_s0 }
0x4b87   :  { %p7101_p4 = scmp.ne.s32.totalorder %s8332_s0, %s7100_s10  ;;  %p7106_p6 = scmp.lt.s32.totalorder %s7100_s10, %s7100_s10 }
0x4b89   :  { %p7107_p7 = por %p7106_p6, %p7105_p5 }
0x4b8b   :  { %p7108_p8 = pnand %p7107_p7, %p7101_p4 }
0x4b8d   :  { %7111 = shalt.err (!%p7108_p8)
}
0x4b8e   :  { %s7112_s11 = scalar_lea.hbm %s7354_s6, 32 }
0x4b8f   :  { %p7113_p9 = scmp.ne.s32.totalorder %s7354_s6, %s7112_s11  ;;  %p7116_p10 = scmp.lt.u32.totalorder %s7112_s11, %s7354_s6 }
0x4b91   :  { %p7118_p11 = pnand %p7116_p10, %p7113_p9 }
0x4b93   :  { %7121 = shalt.err (!%p7118_p11)
}
0x4b94   :  { %5548 = dma.vmem_to_hbm [thread:$0]  %s8332_s0, 32, %s7354_s6, [#allocation10]   ;;  %5513 = vst.msk [vmem:[#allocation8] sm:$0xff] %vm188_vm1, %v5511_v10 }
0x4b95   :  { %s7122_s30 = scalar_lea.vmem %s8335_s2, 256  ;;  %p7127_p13 = scmp.lt.s32.totalorder %s8335_s2, %s8335_s2 }
0x4b96   :  { %p7123_p12 = scmp.ne.s32.totalorder %s8335_s2, %s7122_s30  ;;  %p7128_p0 = scmp.lt.s32.totalorder %s7122_s30, %s7122_s30 }
0x4b98   :  { %p7129_p1 = por %p7128_p0, %p7127_p13 }
0x4b9a   :  { %p7130_p2 = pnand %p7129_p1, %p7123_p12 }
0x4b9c   :  { %7133 = shalt.err (!%p7130_p2)
}
0x4b9d   :  { %s7134_s5 = scalar_lea.hbm %s7344_s19, 256 }
0x4b9e   :  { %p7135_p3 = scmp.ne.s32.totalorder %s7344_s19, %s7134_s5  ;;  %p7138_p4 = scmp.lt.u32.totalorder %s7134_s5, %s7344_s19 }
0x4ba0   :  { %p7140_p5 = pnand %p7138_p4, %p7135_p3 }
0x4ba2   :  { %7143 = shalt.err (!%p7140_p5)
}
0x4ba3   :  { %5526 = dma.vmem_to_hbm [thread:$0]  %s8335_s2, 256, %s7344_s19, [#allocation4], %s7184_s26, %s7184_s26, %s7185_s28  }
0x4ba4   :  { %7148 = dma.done.wait [#allocation4], 256  }
0x4ba5   :  { %7149 = vsyncadd [#allocation4], 4294967040 }
0x4ba6   :  { %7150 = dma.done.wait [#allocation10], 288  }
0x4ba7   :  { %7151 = vsyncadd [#allocation10], 4294967008 }
0x4ba8   :  { %5558 = vsyncpa [#allocation3], 1 }
0x4ba9   :  { %5559 = vsyncpa [#allocation6], 1 }
0x4baa   :  { %5560 = vsyncpa [#allocation4], 1 }
0x4bab   :  { %5561 = vsyncpa [#allocation10], 1 }

</bundles_post_ra>
